<compile_context>
chip_gen: v7x
topology: tpu7x:2x2x1
jax: 0.10.0
libtpu: 0.0.40
codegen_flags: <defaults>
</compile_context>

<pallas_src>
import functools

import jax
import jax.numpy as jnp
from jax.experimental import pallas as pl
from jax.experimental.pallas import tpu as pltpu

_BN_EPS = 1e-5


# ---------------------------------------------------------------------------
# Helpers
# ---------------------------------------------------------------------------
def _round_up(x, m):
    return (x + m - 1) // m * m


def _pick_tm(m):
    """Largest M tile (<=512) that divides m, preferring >=2 tiles (v7x megacore)."""
    for t in (512, 256, 128):
        if m % t == 0 and m // t >= 2:
            return t
    for t in (512, 256, 128):
        if m % t == 0:
            return t
    for step in (16, 8):
        t = min(m, 512) // step * step
        while t >= step:
            if m % t == 0:
                return t
            t -= step
    return None


def _vmem_limit(need_bytes):
    return int(min(max(2 * need_bytes, 32 << 20), 128 << 20))


# ---------------------------------------------------------------------------
# Pallas kernels
# ---------------------------------------------------------------------------
def _mm_kernel(*refs, n_in, relu, has_res):
    """sum_i (tm,Ki)x(Ki,tn) MXU matmul + bias [+ residual] [ReLU] -> bf16 tile."""
    o_ref = refs[-1]
    b_ref = refs[2 * n_in]
    r_ref = refs[2 * n_in + 1] if has_res else None

    acc = None
    for t in range(n_in):
        d = jnp.dot(refs[2 * t][...], refs[2 * t + 1][...],
                    preferred_element_type=jnp.float32)
        acc = d if acc is None else acc + d
    y = acc + b_ref[...]
    if has_res:
        y = y + r_ref[...].astype(jnp.float32)
    if relu:
        y = jnp.maximum(y, 0.0)
    o_ref[...] = y.astype(o_ref.dtype)


def _conv3x3_kernel(x_ref, w_ref, b_ref, o_ref, *, wq, wv, rows, relu):
    """Direct stride-1 3x3 conv on a flat padded-row slab.

    x_ref : (1, F, Cp)        bf16 flat padded image slab, F = (H+2)*wq
    w_ref : (3, 3, Cp, tn)    bf16 (BN scale folded, pads zeroed)
    b_ref : (1, tn)           f32 folded BN bias
    o_ref : (1, rows, wv, tn) bf16 compact output rows (wv = round_up(W, 8))
    """
    tm = rows * wq
    base = pl.multiple_of(pl.program_id(1) * tm, 16)

    acc = None
    for dj in range(3):
        z = None
        for di in range(3):
            a = x_ref[0, pl.ds(base + di * wq, tm), :]
            d = jnp.dot(a, w_ref[di, dj], preferred_element_type=jnp.float32)
            z = d if z is None else z + d
        if dj:
            # out[q] needs z[q + dj]: roll rows by tm - dj.  The dj wrapped rows only
            # pollute the discarded right-pad columns (wq - w >= 2).
            z = pltpu.roll(z, tm - dj, axis=0)
        acc = z if acc is None else acc + z

    y = acc + b_ref[...]
    if relu:
        y = jnp.maximum(y, 0.0)
    for r in range(rows):                       # compact, lane-dense stores (drop wq pad cols)
        o_ref[0, r, :, :] = y[r * wq:r * wq + wv, :].astype(o_ref.dtype)


# ---------------------------------------------------------------------------
# Fused 1x1 matmul wrapper (multi-input: also used for the concat-free trans conv)
# ---------------------------------------------------------------------------
def _fused_matmul(pairs, bias_row, *, relu, residual=None):
    """sum_i a_i @ w_i + bias [+ residual] [ReLU] -> (M, Np) bf16.

    a_i: (M, K_i) bf16, w_i: (K_i, Np) bf16 (pads zeroed at init), bias_row: (1, Np) f32.
    No activation padding / output slicing on the hot path.
    """
    m = pairs[0][0].shape[0]
    np_ = pairs[0][1].shape[1]
    tn = 256 if np_ % 256 == 0 else 128
    tm = _pick_tm(m)

    pad_m = 0
    if tm is None:                                   # rare awkward-M fallback
        tm = _round_up(min(m, 512), 8)
        pad_m = _round_up(m, tm) - m
        pairs = [(jnp.pad(a, ((0, pad_m), (0, 0))), w) for a, w in pairs]
        if residual is not None:
            residual = jnp.pad(residual, ((0, pad_m), (0, 0)))
    mp = m + pad_m
    has_res = residual is not None

    in_specs, operands = [], []
    flops = 0
    need = 2 * tn * 4 + 2 * tm * tn * 2 + 4 * tm * tn * 4
    bytes_acc = mp * np_ * 2 + np_ * 4
    for a, w in pairs:
        k = a.shape[1]
        in_specs.append(pl.BlockSpec((tm, k), lambda i, j: (i, 0)))
        in_specs.append(pl.BlockSpec((k, tn), lambda i, j: (0, j)))
        operands += [a, w]
        flops += 2 * mp * k * np_
        need += 2 * (tm * k + k * tn) * 2
        bytes_acc += (mp * k + k * np_) * 2
    in_specs.append(pl.BlockSpec((1, tn), lambda i, j: (0, j)))
    operands.append(bias_row)
    if has_res:
        in_specs.append(pl.BlockSpec((tm, tn), lambda i, j: (i, j)))
        operands.append(residual)
        need += 2 * tm * tn * 2
        bytes_acc += mp * np_ * 2
    o_spec = pl.BlockSpec((tm, tn), lambda i, j: (i, j))

    out = pl.pallas_call(
        functools.partial(_mm_kernel, n_in=len(pairs), relu=relu, has_res=has_res),
        out_shape=jax.ShapeDtypeStruct((mp, np_), jnp.bfloat16),
        grid_spec=pltpu.PrefetchScalarGridSpec(
            num_scalar_prefetch=0, grid=(mp // tm, np_ // tn),
            in_specs=in_specs, out_specs=o_spec),
        compiler_params=pltpu.CompilerParams(
            dimension_semantics=("parallel", "parallel"),
            vmem_limit_bytes=_vmem_limit(need)),
        cost_estimate=pl.CostEstimate(flops=int(flops), transcendentals=0,
                                      bytes_accessed=int(bytes_acc)),
    )(*operands)
    if pad_m:
        out = out[:m]
    return out


def conv1x1_bn_act(x, p, *, stride=1, relu=True, residual=None):
    """x: (N,H,W,Cin_phys) bf16 -> (N,H,W,Np) bf16; fused 1x1 conv + folded BN [+res] [ReLU]."""
    if stride != 1:
        x = x[:, ::stride, ::stride, :]
    n, h, w, c = x.shape
    a = x.reshape(n * h * w, c)
    r = None
    if residual is not None:
        r = residual.reshape(n * h * w, residual.shape[-1])
    out = _fused_matmul([(a, p["w"])], p["bias"], relu=relu, residual=r)
    return out.reshape(n, h, w, out.shape[-1])


def conv1x1_dual_bn_act(y0, y1, p, *, relu=True):
    """Fused trans conv consuming the two CSP branches directly (no channel concat)."""
    n, h, w, _ = y0.shape
    a0 = y0.reshape(n * h * w, y0.shape[-1])
    a1 = y1.reshape(n * h * w, y1.shape[-1])
    out = _fused_matmul([(a0, p["w0"]), (a1, p["w1"])], p["bias"], relu=relu)
    return out.reshape(n, h, w, out.shape[-1])


# ---------------------------------------------------------------------------
# 3x3 conv wrappers
# ---------------------------------------------------------------------------
def _conv3x3_im2col(x, p, *, stride, relu):
    # TODO(synk): the strided (s>1) 3x3 path uses XLA im2col glue (9x HBM expansion of the
    # activation) feeding the fused matmul kernel; the module default s=1 never hits this.
    n, h, w, cp = x.shape
    xp = jnp.pad(x, ((0, 0), (1, 1), (1, 1), (0, 0)))
    ho = (h - 1) // stride + 1
    wo = (w - 1) // stride + 1
    cols = []
    for di in range(3):
        for dj in range(3):
            cols.append(xp[:, di:di + (ho - 1) * stride + 1:stride,
                           dj:dj + (wo - 1) * stride + 1:stride, :])
    a = jnp.concatenate(cols, axis=-1).reshape(n * ho * wo, 9 * cp)
    wk = p["w"].reshape(9 * cp, p["w"].shape[-1])
    out = _fused_matmul([(a, wk)], p["bias"], relu=relu)
    return out.reshape(n, ho, wo, out.shape[-1])


def conv3x3_bn_act(x, p, *, stride=1, relu=True):
    """Direct (no-im2col) stride-1 3x3 conv + folded BN + ReLU."""
    if stride != 1:
        return _conv3x3_im2col(x, p, stride=stride, relu=relu)
    n, h, w, cp = x.shape
    assert cp == p["w"].shape[2], (cp, p["w"].shape)
    np_ = p["w"].shape[-1]
    wq = _round_up(w + 2, 16)        # aligned padded row width
    wv = _round_up(w, 8)             # compact stored row width
    # Roll-trick validity: wrapped rows must land in discarded right-pad columns.
    assert wq - w >= 2, (wq, w)

    xp = jnp.pad(x, ((0, 0), (1, 1), (1, wq - w - 1), (0, 0)))   # spatial halo only
    f = (h + 2) * wq
    x_flat = xp.reshape(n, f, cp)

    rows = h                         # output image rows per tile
    for r in range(1, h + 1):
        if h % r == 0 and r * wq >= 256:
            rows = r
            break
    tm = rows * wq
    m_tiles = h // rows
    tn = 256 if np_ % 256 == 0 else 128
    grid = (n, m_tiles, np_ // tn)

    # TODO(synk): for very large H*W*Cp the whole-slab block (double-buffered) can outgrow
    # VMEM (64 MiB physical on v7x, 16 MiB scoped default on v5e); switch to a row-windowed
    # manual DMA (pl.ANY + make_async_copy) in that regime.
    need = (2 * (f * cp * 2 + 9 * cp * tn * 2 + tn * 4 + rows * wv * tn * 2)
            + 6 * tm * tn * 4)
    ce = pl.CostEstimate(
        flops=int(2 * n * h * w * 9 * cp * np_), transcendentals=0,
        bytes_accessed=int(n * (f * cp + h * wv * np_) * 2 + 9 * cp * np_ * 2))

    out = pl.pallas_call(
        functools.partial(_conv3x3_kernel, wq=wq, wv=wv, rows=rows, relu=relu),
        out_shape=jax.ShapeDtypeStruct((n, h, wv, np_), jnp.bfloat16),
        grid_spec=pltpu.PrefetchScalarGridSpec(
            num_scalar_prefetch=0, grid=grid,
            in_specs=[
                # slab block index depends only on b -> DMA'd once per image
                pl.BlockSpec((1, f, cp), lambda b, i, j: (b, 0, 0)),
                pl.BlockSpec((3, 3, cp, tn), lambda b, i, j: (0, 0, 0, j)),
                pl.BlockSpec((1, tn), lambda b, i, j: (0, j)),
            ],
            out_specs=pl.BlockSpec((1, rows, wv, tn), lambda b, i, j: (b, i, 0, j))),
        compiler_params=pltpu.CompilerParams(
            dimension_semantics=("parallel", "parallel", "parallel"),
            vmem_limit_bytes=_vmem_limit(need)),
        cost_estimate=ce,
    )(x_flat, p["w"], p["bias"])

    if wv != w:
        out = out[:, :, :w, :]
    return out


# ---------------------------------------------------------------------------
# Parameters (deterministic synthetic init; BN folded in inference mode)
# ---------------------------------------------------------------------------
def _bn_fold(cout):
    gamma = jnp.ones((cout,), jnp.float32)
    beta = jnp.zeros((cout,), jnp.float32)
    mean = jnp.zeros((cout,), jnp.float32)
    var = jnp.ones((cout,), jnp.float32)
    scale = gamma / jnp.sqrt(var + _BN_EPS)
    bias = beta - mean * scale
    return scale, bias


def _bias_row(bias, cout, np_):
    return jnp.zeros((1, np_), jnp.float32).at[0, :cout].set(bias)


def _conv1x1_params(key, cin, cout, *, k_total, k_off=0):
    w = 0.02 * jax.random.normal(key, (cout, cin), jnp.float32)
    scale, bias = _bn_fold(cout)
    wf = w * scale[:, None]                          # fold BN scale into weights
    np_ = _round_up(cout, 128)
    wk = jnp.zeros((k_total, np_), jnp.float32)
    wk = wk.at[k_off:k_off + cin, :cout].set(wf.T)   # K-offset folds channel-splits
    return {"w": wk.astype(jnp.bfloat16), "bias": _bias_row(bias, cout, np_),
            "cout": cout}


def _conv3x3_params(key, cin, cout, *, cin_pad):
    w = 0.02 * jax.random.normal(key, (cout, cin, 3, 3), jnp.float32)
    scale, bias = _bn_fold(cout)
    wf = w * scale[:, None, None, None]
    np_ = _round_up(cout, 128)
    w3 = jnp.zeros((3, 3, cin_pad, np_), jnp.float32)
    w3 = w3.at[:, :, :cin, :cout].set(jnp.transpose(wf, (2, 3, 1, 0)))
    return {"w": w3.astype(jnp.bfloat16), "bias": _bias_row(bias, cout, np_),
            "cout": cout}


def _trans_params(key, cin0, cin1, cout, *, k0_total, k1_total):
    w = 0.02 * jax.random.normal(key, (cout, cin0 + cin1), jnp.float32)
    scale, bias = _bn_fold(cout)
    wf = w * scale[:, None]
    np_ = _round_up(cout, 128)
    w0 = jnp.zeros((k0_total, np_), jnp.float32).at[:cin0, :cout].set(wf[:, :cin0].T)
    w1 = jnp.zeros((k1_total, np_), jnp.float32).at[:cin1, :cout].set(wf[:, cin0:].T)
    return {"w0": w0.astype(jnp.bfloat16), "w1": w1.astype(jnp.bfloat16),
            "bias": _bias_row(bias, cout, np_), "cout": cout}


def init_cspneck_params(key, in_chs, out_chs, num_layer, s=1):
    exp = 4
    half_in = in_chs // 2
    mid = out_chs // 2
    width = out_chs * exp // 2
    keys = iter(jax.random.split(key, 4 + 4 * num_layer))
    params = {"s": s, "out_chs": out_chs}
    # c1 branch reads channels [0, half_in) of the unsplit input (K offset in the weight).
    params["c1"] = _conv1x1_params(next(keys), half_in, width, k_total=in_chs, k_off=0)
    blocks = []
    cin = half_in
    for b in range(num_layer):
        stride = s if b == 0 else 1
        if b == 0:    # first block reads channels [half_in, in_chs) of the unsplit input
            k_total, k_off = in_chs, half_in
        else:
            k_total, k_off = _round_up(cin, 128), 0
        blk = {"stride": stride,
               "c1": _conv1x1_params(next(keys), cin, mid, k_total=k_total, k_off=k_off),
               "c2": _conv3x3_params(next(keys), mid, mid, cin_pad=_round_up(mid, 128)),
               "c3": _conv1x1_params(next(keys), mid, mid * exp,
                                     k_total=_round_up(mid, 128))}
        if b == 0:                                   # downsample=True only on block 0
            blk["ds"] = _conv1x1_params(next(keys), cin, mid * exp,
                                        k_total=k_total, k_off=k_off)
        blocks.append(blk)
        cin = mid * exp
    params["blocks"] = blocks
    params["trans"] = _trans_params(next(keys), width, mid * exp, out_chs * exp,
                                    k0_total=_round_up(width, 128),
                                    k1_total=_round_up(mid * exp, 128))
    return params


# ---------------------------------------------------------------------------
# Forward pass (matches cspneck.forward)
# ---------------------------------------------------------------------------
def bottleneck_forward(x, p):
    s = p["stride"]
    out = conv1x1_bn_act(x, p["c1"], relu=True)
    out = conv3x3_bn_act(out, p["c2"], stride=s, relu=True)
    if "ds" in p:
        identity = conv1x1_bn_act(x, p["ds"], stride=s, relu=False)
    else:
        identity = x
    # residual add + final ReLU are fused into the last 1x1 conv's epilogue
    return conv1x1_bn_act(out, p["c3"], relu=True, residual=identity)


def cspneck_forward(params, x_nchw):
    # Boundary layout/dtype conversions stay in XLA (contract is NCHW f32 in/out).
    x = jnp.transpose(x_nchw, (0, 2, 3, 1)).astype(jnp.bfloat16)           # NCHW -> NHWC
    y0 = conv1x1_bn_act(x, params["c1"], stride=params["s"], relu=True)    # c1 branch
    y1 = x                                                                 # c2 branch
    for blk in params["blocks"]:
        y1 = bottleneck_forward(y1, blk)
    y = conv1x1_dual_bn_act(y0, y1, params["trans"], relu=True)            # trans(cat(x0,x1))
    cout = params["out_chs"] * 4
    if y.shape[-1] != cout:
        y = y[..., :cout]
    return jnp.transpose(y, (0, 3, 1, 2)).astype(jnp.float32)              # -> NCHW f32


# ---------------------------------------------------------------------------
# Main
# ---------------------------------------------------------------------------
if __name__ == "__main__":
    key = jax.random.PRNGKey(0)
    k_params, k_x = jax.random.split(key)

    in_chs, out_chs, num_layer, s = 64, 32, 2, 1
    params = init_cspneck_params(k_params, in_chs, out_chs, num_layer, s=s)

    # Small NCHW input (tiling decisions are shape-adaptive; use a realistic
    # batch/resolution for real benchmarking).
    x = jax.random.normal(k_x, (2, in_chs, 16, 16), jnp.float32)

    fwd = jax.jit(lambda inp: cspneck_forward(params, inp))
    out = jax.block_until_ready(fwd(x))

    assert out.shape == (2, out_chs * 4, 16, 16), out.shape
    assert bool(jnp.all(jnp.isfinite(out)))
    print("KERNEL_OK")
</pallas_src>

<mosaic_0001>
module attributes {stable_mosaic.version = 11 : i64} {
  func.func @_mm_kernel(%arg0: i32, %arg1: i32, %arg2: memref<256x64xbf16, #tpu.memory_space<vmem>>, %arg3: memref<64x128xbf16, #tpu.memory_space<vmem>>, %arg4: memref<1x128xf32, #tpu.memory_space<vmem>>, %arg5: memref<256x128xbf16, #tpu.memory_space<vmem>>) attributes {dimension_semantics = [#tpu.dimension_semantics<parallel>, #tpu.dimension_semantics<parallel>], iteration_bounds = array<i64: 2, 1>, scalar_prefetch = 0 : i64, scratch_operands = 0 : i64, tpu.core_type = #tpu.core_type<tc>, window_params = [{transform_indices = @transform_0, window_bounds = array<i64: 256, 64>}, {transform_indices = @transform_1, window_bounds = array<i64: 64, 128>}, {transform_indices = @transform_2, window_bounds = array<i64: 1, 128>}, {transform_indices = @transform_3, window_bounds = array<i64: 256, 128>}]} {
    %c0 = arith.constant 0 : index
    %c0_0 = arith.constant 0 : index
    %0 = vector.load %arg2[%c0, %c0_0] : memref<256x64xbf16, #tpu.memory_space<vmem>>, vector<256x64xbf16>
    %c0_1 = arith.constant 0 : index
    %c0_2 = arith.constant 0 : index
    %1 = vector.load %arg3[%c0_1, %c0_2] : memref<64x128xbf16, #tpu.memory_space<vmem>>, vector<64x128xbf16>
    %cst = arith.constant dense<0.000000e+00> : vector<256x128xf32>
    %2 = tpu.matmul %0, %1, %cst {dimension_numbers = #tpu.dot_dimension_numbers<[1], [0], [0], [1], [0, 0, 1, 1], [], []>} : vector<256x64xbf16>, vector<64x128xbf16>, vector<256x128xf32> -> vector<256x128xf32>
    %c0_3 = arith.constant 0 : index
    %c0_4 = arith.constant 0 : index
    %3 = vector.load %arg4[%c0_3, %c0_4] : memref<1x128xf32, #tpu.memory_space<vmem>>, vector<1x128xf32>
    %4 = vector.broadcast %3 : vector<1x128xf32> to vector<256x128xf32>
    %5 = arith.addf %2, %4 : vector<256x128xf32>
    %cst_5 = arith.constant 0.000000e+00 : f32
    %6 = vector.broadcast %cst_5 : f32 to vector<256x128xf32>
    %7 = arith.maximumf %5, %6 : vector<256x128xf32>
    %8 = arith.truncf %7 : vector<256x128xf32> to vector<256x128xbf16>
    %c0_6 = arith.constant 0 : index
    %c0_7 = arith.constant 0 : index
    %9 = vector.load %arg5[%c0_6, %c0_7] : memref<256x128xbf16, #tpu.memory_space<vmem>>, vector<256x128xbf16>
    tpu.vector_store %arg5[%c0_6, %c0_7], %8 {strides = array<i32>} : memref<256x128xbf16, #tpu.memory_space<vmem>>, vector<256x128xbf16>,
    return
  }
  func.func @transform_0(%arg0: i32, %arg1: i32) -> (i32, i32) {
    %c0_i32 = arith.constant 0 : i32
    %c0_i32_0 = arith.constant 0 : i32
    return %arg0, %c0_i32 : i32, i32
  }
  func.func @transform_1(%arg0: i32, %arg1: i32) -> (i32, i32) {
    %c0_i32 = arith.constant 0 : i32
    %c0_i32_0 = arith.constant 0 : i32
    return %c0_i32, %arg1 : i32, i32
  }
  func.func @transform_2(%arg0: i32, %arg1: i32) -> (i32, i32) {
    %c0_i32 = arith.constant 0 : i32
    %c0_i32_0 = arith.constant 0 : i32
    return %c0_i32, %arg1 : i32, i32
  }
  func.func @transform_3(%arg0: i32, %arg1: i32) -> (i32, i32) {
    %c0_i32 = arith.constant 0 : i32
    return %arg0, %arg1 : i32, i32
  }
}

module attributes {stable_mosaic.version = 11 : i64} {
  func.func @_mm_kernel(%arg0: i32, %arg1: i32, %arg2: memref<256x64xbf16, #tpu.memory_space<vmem>>, %arg3: memref<64x128xbf16, #tpu.memory_space<vmem>>, %arg4: memref<1x128xf32, #tpu.memory_space<vmem>>, %arg5: memref<256x128xbf16, #tpu.memory_space<vmem>>) attributes {dimension_semantics = [#tpu.dimension_semantics<parallel>, #tpu.dimension_semantics<parallel>], iteration_bounds = array<i64: 2, 1>, scalar_prefetch = 0 : i64, scratch_operands = 0 : i64, tpu.core_type = #tpu.core_type<tc>, window_params = [{transform_indices = @transform_0, window_bounds = array<i64: 256, 64>}, {transform_indices = @transform_1, window_bounds = array<i64: 64, 128>}, {transform_indices = @transform_2, window_bounds = array<i64: 1, 128>}, {transform_indices = @transform_3, window_bounds = array<i64: 256, 128>}]} {
    %c0 = arith.constant 0 : index
    %c0_0 = arith.constant 0 : index
    %0 = vector.load %arg2[%c0, %c0_0] : memref<256x64xbf16, #tpu.memory_space<vmem>>, vector<256x64xbf16>
    %c0_1 = arith.constant 0 : index
    %c0_2 = arith.constant 0 : index
    %1 = vector.load %arg3[%c0_1, %c0_2] : memref<64x128xbf16, #tpu.memory_space<vmem>>, vector<64x128xbf16>
    %cst = arith.constant dense<0.000000e+00> : vector<256x128xf32>
    %2 = tpu.matmul %0, %1, %cst {dimension_numbers = #tpu.dot_dimension_numbers<[1], [0], [0], [1], [0, 0, 1, 1], [], []>} : vector<256x64xbf16>, vector<64x128xbf16>, vector<256x128xf32> -> vector<256x128xf32>
    %c0_3 = arith.constant 0 : index
    %c0_4 = arith.constant 0 : index
    %3 = vector.load %arg4[%c0_3, %c0_4] : memref<1x128xf32, #tpu.memory_space<vmem>>, vector<1x128xf32>
    %4 = vector.broadcast %3 : vector<1x128xf32> to vector<256x128xf32>
    %5 = arith.addf %2, %4 : vector<256x128xf32>
    %6 = arith.truncf %5 : vector<256x128xf32> to vector<256x128xbf16>
    %c0_5 = arith.constant 0 : index
    %c0_6 = arith.constant 0 : index
    %7 = vector.load %arg5[%c0_5, %c0_6] : memref<256x128xbf16, #tpu.memory_space<vmem>>, vector<256x128xbf16>
    tpu.vector_store %arg5[%c0_5, %c0_6], %6 {strides = array<i32>} : memref<256x128xbf16, #tpu.memory_space<vmem>>, vector<256x128xbf16>,
    return
  }
  func.func @transform_0(%arg0: i32, %arg1: i32) -> (i32, i32) {
    %c0_i32 = arith.constant 0 : i32
    %c0_i32_0 = arith.constant 0 : i32
    return %arg0, %c0_i32 : i32, i32
  }
  func.func @transform_1(%arg0: i32, %arg1: i32) -> (i32, i32) {
    %c0_i32 = arith.constant 0 : i32
    %c0_i32_0 = arith.constant 0 : i32
    return %c0_i32, %arg1 : i32, i32
  }
  func.func @transform_2(%arg0: i32, %arg1: i32) -> (i32, i32) {
    %c0_i32 = arith.constant 0 : i32
    %c0_i32_0 = arith.constant 0 : i32
    return %c0_i32, %arg1 : i32, i32
  }
  func.func @transform_3(%arg0: i32, %arg1: i32) -> (i32, i32) {
    %c0_i32 = arith.constant 0 : i32
    return %arg0, %arg1 : i32, i32
  }
}

module attributes {stable_mosaic.version = 11 : i64} {
  func.func @_conv3x3_kernel(%arg0: i32, %arg1: i32, %arg2: i32, %arg3: memref<1x576x128xbf16, #tpu.memory_space<vmem>>, %arg4: memref<3x3x128x128xbf16, #tpu.memory_space<vmem>>, %arg5: memref<1x128xf32, #tpu.memory_space<vmem>>, %arg6: memref<1x8x16x128xbf16, #tpu.memory_space<vmem>>) attributes {dimension_semantics = [#tpu.dimension_semantics<parallel>, #tpu.dimension_semantics<parallel>, #tpu.dimension_semantics<parallel>], iteration_bounds = array<i64: 2, 2, 1>, scalar_prefetch = 0 : i64, scratch_operands = 0 : i64, tpu.core_type = #tpu.core_type<tc>, window_params = [{transform_indices = @transform_0, window_bounds = array<i64: 1, 576, 128>}, {transform_indices = @transform_1, window_bounds = array<i64: 3, 3, 128, 128>}, {transform_indices = @transform_2, window_bounds = array<i64: 1, 128>}, {transform_indices = @transform_3, window_bounds = array<i64: 1, 8, 16, 128>}]} {
    %c256_i32 = arith.constant 256 : i32
    %0 = arith.muli %arg1, %c256_i32 : i32
    %1 = tpu.assume_multiple %0, 16 : i32
    %c0_i32 = arith.constant 0 : i32
    %2 = arith.addi %1, %c0_i32 : i32
    %c0 = arith.constant 0 : index
    %3 = arith.index_cast %2 : i32 to index
    %c0_0 = arith.constant 0 : index
    %4 = vector.load %arg3[%c0, %3, %c0_0] : memref<1x576x128xbf16, #tpu.memory_space<vmem>>, vector<1x256x128xbf16>
    %5 = vector.shape_cast %4 : vector<1x256x128xbf16> to vector<256x128xbf16>
    %c0_1 = arith.constant 0 : index
    %c0_2 = arith.constant 0 : index
    %c0_3 = arith.constant 0 : index
    %c0_4 = arith.constant 0 : index
    %6 = vector.load %arg4[%c0_1, %c0_2, %c0_3, %c0_4] : memref<3x3x128x128xbf16, #tpu.memory_space<vmem>>, vector<1x1x128x128xbf16>
    %7 = vector.shape_cast %6 : vector<1x1x128x128xbf16> to vector<128x128xbf16>
    %cst = arith.constant dense<0.000000e+00> : vector<256x128xf32>
    %8 = tpu.matmul %5, %7, %cst {dimension_numbers = #tpu.dot_dimension_numbers<[1], [0], [0], [1], [0, 0, 1, 1], [], []>} : vector<256x128xbf16>, vector<128x128xbf16>, vector<256x128xf32> -> vector<256x128xf32>
    %c32_i32 = arith.constant 32 : i32
    %9 = arith.addi %1, %c32_i32 : i32
    %c0_5 = arith.constant 0 : index
    %10 = arith.index_cast %9 : i32 to index
    %c0_6 = arith.constant 0 : index
    %11 = vector.load %arg3[%c0_5, %10, %c0_6] : memref<1x576x128xbf16, #tpu.memory_space<vmem>>, vector<1x256x128xbf16>
    %12 = vector.shape_cast %11 : vector<1x256x128xbf16> to vector<256x128xbf16>
    %c1 = arith.constant 1 : index
    %c0_7 = arith.constant 0 : index
    %c0_8 = arith.constant 0 : index
    %c0_9 = arith.constant 0 : index
    %13 = vector.load %arg4[%c1, %c0_7, %c0_8, %c0_9] : memref<3x3x128x128xbf16, #tpu.memory_space<vmem>>, vector<1x1x128x128xbf16>
    %14 = vector.shape_cast %13 : vector<1x1x128x128xbf16> to vector<128x128xbf16>
    %cst_10 = arith.constant dense<0.000000e+00> : vector<256x128xf32>
    %15 = tpu.matmul %12, %14, %cst_10 {dimension_numbers = #tpu.dot_dimension_numbers<[1], [0], [0], [1], [0, 0, 1, 1], [], []>} : vector<256x128xbf16>, vector<128x128xbf16>, vector<256x128xf32> -> vector<256x128xf32>
    %16 = arith.addf %8, %15 : vector<256x128xf32>
    %c64_i32 = arith.constant 64 : i32
    %17 = arith.addi %1, %c64_i32 : i32
    %c0_11 = arith.constant 0 : index
    %18 = arith.index_cast %17 : i32 to index
    %c0_12 = arith.constant 0 : index
    %19 = vector.load %arg3[%c0_11, %18, %c0_12] : memref<1x576x128xbf16, #tpu.memory_space<vmem>>, vector<1x256x128xbf16>
    %20 = vector.shape_cast %19 : vector<1x256x128xbf16> to vector<256x128xbf16>
    %c2 = arith.constant 2 : index
    %c0_13 = arith.constant 0 : index
    %c0_14 = arith.constant 0 : index
    %c0_15 = arith.constant 0 : index
    %21 = vector.load %arg4[%c2, %c0_13, %c0_14, %c0_15] : memref<3x3x128x128xbf16, #tpu.memory_space<vmem>>, vector<1x1x128x128xbf16>
    %22 = vector.shape_cast %21 : vector<1x1x128x128xbf16> to vector<128x128xbf16>
    %cst_16 = arith.constant dense<0.000000e+00> : vector<256x128xf32>
    %23 = tpu.matmul %20, %22, %cst_16 {dimension_numbers = #tpu.dot_dimension_numbers<[1], [0], [0], [1], [0, 0, 1, 1], [], []>} : vector<256x128xbf16>, vector<128x128xbf16>, vector<256x128xf32> -> vector<256x128xf32>
    %24 = arith.addf %16, %23 : vector<256x128xf32>
    %c0_i32_17 = arith.constant 0 : i32
    %25 = arith.addi %1, %c0_i32_17 : i32
    %c0_18 = arith.constant 0 : index
    %26 = arith.index_cast %25 : i32 to index
    %c0_19 = arith.constant 0 : index
    %27 = vector.load %arg3[%c0_18, %26, %c0_19] : memref<1x576x128xbf16, #tpu.memory_space<vmem>>, vector<1x256x128xbf16>
    %28 = vector.shape_cast %27 : vector<1x256x128xbf16> to vector<256x128xbf16>
    %c0_20 = arith.constant 0 : index
    %c1_21 = arith.constant 1 : index
    %c0_22 = arith.constant 0 : index
    %c0_23 = arith.constant 0 : index
    %29 = vector.load %arg4[%c0_20, %c1_21, %c0_22, %c0_23] : memref<3x3x128x128xbf16, #tpu.memory_space<vmem>>, vector<1x1x128x128xbf16>
    %30 = vector.shape_cast %29 : vector<1x1x128x128xbf16> to vector<128x128xbf16>
    %cst_24 = arith.constant dense<0.000000e+00> : vector<256x128xf32>
    %31 = tpu.matmul %28, %30, %cst_24 {dimension_numbers = #tpu.dot_dimension_numbers<[1], [0], [0], [1], [0, 0, 1, 1], [], []>} : vector<256x128xbf16>, vector<128x128xbf16>, vector<256x128xf32> -> vector<256x128xf32>
    %c32_i32_25 = arith.constant 32 : i32
    %32 = arith.addi %1, %c32_i32_25 : i32
    %c0_26 = arith.constant 0 : index
    %33 = arith.index_cast %32 : i32 to index
    %c0_27 = arith.constant 0 : index
    %34 = vector.load %arg3[%c0_26, %33, %c0_27] : memref<1x576x128xbf16, #tpu.memory_space<vmem>>, vector<1x256x128xbf16>
    %35 = vector.shape_cast %34 : vector<1x256x128xbf16> to vector<256x128xbf16>
    %c1_28 = arith.constant 1 : index
    %c1_29 = arith.constant 1 : index
    %c0_30 = arith.constant 0 : index
    %c0_31 = arith.constant 0 : index
    %36 = vector.load %arg4[%c1_28, %c1_29, %c0_30, %c0_31] : memref<3x3x128x128xbf16, #tpu.memory_space<vmem>>, vector<1x1x128x128xbf16>
    %37 = vector.shape_cast %36 : vector<1x1x128x128xbf16> to vector<128x128xbf16>
    %cst_32 = arith.constant dense<0.000000e+00> : vector<256x128xf32>
    %38 = tpu.matmul %35, %37, %cst_32 {dimension_numbers = #tpu.dot_dimension_numbers<[1], [0], [0], [1], [0, 0, 1, 1], [], []>} : vector<256x128xbf16>, vector<128x128xbf16>, vector<256x128xf32> -> vector<256x128xf32>
    %39 = arith.addf %31, %38 : vector<256x128xf32>
    %c64_i32_33 = arith.constant 64 : i32
    %40 = arith.addi %1, %c64_i32_33 : i32
    %c0_34 = arith.constant 0 : index
    %41 = arith.index_cast %40 : i32 to index
    %c0_35 = arith.constant 0 : index
    %42 = vector.load %arg3[%c0_34, %41, %c0_35] : memref<1x576x128xbf16, #tpu.memory_space<vmem>>, vector<1x256x128xbf16>
    %43 = vector.shape_cast %42 : vector<1x256x128xbf16> to vector<256x128xbf16>
    %c2_36 = arith.constant 2 : index
    %c1_37 = arith.constant 1 : index
    %c0_38 = arith.constant 0 : index
    %c0_39 = arith.constant 0 : index
    %44 = vector.load %arg4[%c2_36, %c1_37, %c0_38, %c0_39] : memref<3x3x128x128xbf16, #tpu.memory_space<vmem>>, vector<1x1x128x128xbf16>
    %45 = vector.shape_cast %44 : vector<1x1x128x128xbf16> to vector<128x128xbf16>
    %cst_40 = arith.constant dense<0.000000e+00> : vector<256x128xf32>
    %46 = tpu.matmul %43, %45, %cst_40 {dimension_numbers = #tpu.dot_dimension_numbers<[1], [0], [0], [1], [0, 0, 1, 1], [], []>} : vector<256x128xbf16>, vector<128x128xbf16>, vector<256x128xf32> -> vector<256x128xf32>
    %47 = arith.addf %39, %46 : vector<256x128xf32>
    %c255_i32 = arith.constant 255 : i32
    %48 = tpu.dynamic_rotate %47 by %c255_i32 dim 0 : vector<256x128xf32>, i32 -> vector<256x128xf32>
    %49 = arith.addf %24, %48 : vector<256x128xf32>
    %c0_i32_41 = arith.constant 0 : i32
    %50 = arith.addi %1, %c0_i32_41 : i32
    %c0_42 = arith.constant 0 : index
    %51 = arith.index_cast %50 : i32 to index
    %c0_43 = arith.constant 0 : index
    %52 = vector.load %arg3[%c0_42, %51, %c0_43] : memref<1x576x128xbf16, #tpu.memory_space<vmem>>, vector<1x256x128xbf16>
    %53 = vector.shape_cast %52 : vector<1x256x128xbf16> to vector<256x128xbf16>
    %c0_44 = arith.constant 0 : index
    %c2_45 = arith.constant 2 : index
    %c0_46 = arith.constant 0 : index
    %c0_47 = arith.constant 0 : index
    %54 = vector.load %arg4[%c0_44, %c2_45, %c0_46, %c0_47] : memref<3x3x128x128xbf16, #tpu.memory_space<vmem>>, vector<1x1x128x128xbf16>
    %55 = vector.shape_cast %54 : vector<1x1x128x128xbf16> to vector<128x128xbf16>
    %cst_48 = arith.constant dense<0.000000e+00> : vector<256x128xf32>
    %56 = tpu.matmul %53, %55, %cst_48 {dimension_numbers = #tpu.dot_dimension_numbers<[1], [0], [0], [1], [0, 0, 1, 1], [], []>} : vector<256x128xbf16>, vector<128x128xbf16>, vector<256x128xf32> -> vector<256x128xf32>
    %c32_i32_49 = arith.constant 32 : i32
    %57 = arith.addi %1, %c32_i32_49 : i32
    %c0_50 = arith.constant 0 : index
    %58 = arith.index_cast %57 : i32 to index
    %c0_51 = arith.constant 0 : index
    %59 = vector.load %arg3[%c0_50, %58, %c0_51] : memref<1x576x128xbf16, #tpu.memory_space<vmem>>, vector<1x256x128xbf16>
    %60 = vector.shape_cast %59 : vector<1x256x128xbf16> to vector<256x128xbf16>
    %c1_52 = arith.constant 1 : index
    %c2_53 = arith.constant 2 : index
    %c0_54 = arith.constant 0 : index
    %c0_55 = arith.constant 0 : index
    %61 = vector.load %arg4[%c1_52, %c2_53, %c0_54, %c0_55] : memref<3x3x128x128xbf16, #tpu.memory_space<vmem>>, vector<1x1x128x128xbf16>
    %62 = vector.shape_cast %61 : vector<1x1x128x128xbf16> to vector<128x128xbf16>
    %cst_56 = arith.constant dense<0.000000e+00> : vector<256x128xf32>
    %63 = tpu.matmul %60, %62, %cst_56 {dimension_numbers = #tpu.dot_dimension_numbers<[1], [0], [0], [1], [0, 0, 1, 1], [], []>} : vector<256x128xbf16>, vector<128x128xbf16>, vector<256x128xf32> -> vector<256x128xf32>
    %64 = arith.addf %56, %63 : vector<256x128xf32>
    %c64_i32_57 = arith.constant 64 : i32
    %65 = arith.addi %1, %c64_i32_57 : i32
    %c0_58 = arith.constant 0 : index
    %66 = arith.index_cast %65 : i32 to index
    %c0_59 = arith.constant 0 : index
    %67 = vector.load %arg3[%c0_58, %66, %c0_59] : memref<1x576x128xbf16, #tpu.memory_space<vmem>>, vector<1x256x128xbf16>
    %68 = vector.shape_cast %67 : vector<1x256x128xbf16> to vector<256x128xbf16>
    %c2_60 = arith.constant 2 : index
    %c2_61 = arith.constant 2 : index
    %c0_62 = arith.constant 0 : index
    %c0_63 = arith.constant 0 : index
    %69 = vector.load %arg4[%c2_60, %c2_61, %c0_62, %c0_63] : memref<3x3x128x128xbf16, #tpu.memory_space<vmem>>, vector<1x1x128x128xbf16>
    %70 = vector.shape_cast %69 : vector<1x1x128x128xbf16> to vector<128x128xbf16>
    %cst_64 = arith.constant dense<0.000000e+00> : vector<256x128xf32>
    %71 = tpu.matmul %68, %70, %cst_64 {dimension_numbers = #tpu.dot_dimension_numbers<[1], [0], [0], [1], [0, 0, 1, 1], [], []>} : vector<256x128xbf16>, vector<128x128xbf16>, vector<256x128xf32> -> vector<256x128xf32>
    %72 = arith.addf %64, %71 : vector<256x128xf32>
    %c254_i32 = arith.constant 254 : i32
    %73 = tpu.dynamic_rotate %72 by %c254_i32 dim 0 : vector<256x128xf32>, i32 -> vector<256x128xf32>
    %74 = arith.addf %49, %73 : vector<256x128xf32>
    %c0_65 = arith.constant 0 : index
    %c0_66 = arith.constant 0 : index
    %75 = vector.load %arg5[%c0_65, %c0_66] : memref<1x128xf32, #tpu.memory_space<vmem>>, vector<1x128xf32>
    %76 = vector.broadcast %75 : vector<1x128xf32> to vector<256x128xf32>
    %77 = arith.addf %74, %76 : vector<256x128xf32>
    %cst_67 = arith.constant 0.000000e+00 : f32
    %78 = vector.broadcast %cst_67 : f32 to vector<256x128xf32>
    %79 = arith.maximumf %77, %78 : vector<256x128xf32>
    %80 = vector.extract_strided_slice %79 {offsets = [0, 0], sizes = [16, 128], strides = [1, 1]} : vector<256x128xf32> to vector<16x128xf32>
    %81 = arith.truncf %80 : vector<16x128xf32> to vector<16x128xbf16>
    %c0_68 = arith.constant 0 : index
    %c0_69 = arith.constant 0 : index
    %c0_70 = arith.constant 0 : index
    %c0_71 = arith.constant 0 : index
    %82 = vector.load %arg6[%c0_68, %c0_69, %c0_70, %c0_71] : memref<1x8x16x128xbf16, #tpu.memory_space<vmem>>, vector<1x1x16x128xbf16>
    %83 = vector.shape_cast %82 : vector<1x1x16x128xbf16> to vector<16x128xbf16>
    %84 = vector.shape_cast %81 : vector<16x128xbf16> to vector<1x1x16x128xbf16>
    tpu.vector_store %arg6[%c0_68, %c0_69, %c0_70, %c0_71], %84 {strides = array<i32>} : memref<1x8x16x128xbf16, #tpu.memory_space<vmem>>, vector<1x1x16x128xbf16>,
    %85 = vector.extract_strided_slice %79 {offsets = [32, 0], sizes = [16, 128], strides = [1, 1]} : vector<256x128xf32> to vector<16x128xf32>
    %86 = arith.truncf %85 : vector<16x128xf32> to vector<16x128xbf16>
    %c0_72 = arith.constant 0 : index
    %c1_73 = arith.constant 1 : index
    %c0_74 = arith.constant 0 : index
    %c0_75 = arith.constant 0 : index
    %87 = vector.load %arg6[%c0_72, %c1_73, %c0_74, %c0_75] : memref<1x8x16x128xbf16, #tpu.memory_space<vmem>>, vector<1x1x16x128xbf16>
    %88 = vector.shape_cast %87 : vector<1x1x16x128xbf16> to vector<16x128xbf16>
    %89 = vector.shape_cast %86 : vector<16x128xbf16> to vector<1x1x16x128xbf16>
    tpu.vector_store %arg6[%c0_72, %c1_73, %c0_74, %c0_75], %89 {strides = array<i32>} : memref<1x8x16x128xbf16, #tpu.memory_space<vmem>>, vector<1x1x16x128xbf16>,
    %90 = vector.extract_strided_slice %79 {offsets = [64, 0], sizes = [16, 128], strides = [1, 1]} : vector<256x128xf32> to vector<16x128xf32>
    %91 = arith.truncf %90 : vector<16x128xf32> to vector<16x128xbf16>
    %c0_76 = arith.constant 0 : index
    %c2_77 = arith.constant 2 : index
    %c0_78 = arith.constant 0 : index
    %c0_79 = arith.constant 0 : index
    %92 = vector.load %arg6[%c0_76, %c2_77, %c0_78, %c0_79] : memref<1x8x16x128xbf16, #tpu.memory_space<vmem>>, vector<1x1x16x128xbf16>
    %93 = vector.shape_cast %92 : vector<1x1x16x128xbf16> to vector<16x128xbf16>
    %94 = vector.shape_cast %91 : vector<16x128xbf16> to vector<1x1x16x128xbf16>
    tpu.vector_store %arg6[%c0_76, %c2_77, %c0_78, %c0_79], %94 {strides = array<i32>} : memref<1x8x16x128xbf16, #tpu.memory_space<vmem>>, vector<1x1x16x128xbf16>,
    %95 = vector.extract_strided_slice %79 {offsets = [96, 0], sizes = [16, 128], strides = [1, 1]} : vector<256x128xf32> to vector<16x128xf32>
    %96 = arith.truncf %95 : vector<16x128xf32> to vector<16x128xbf16>
    %c0_80 = arith.constant 0 : index
    %c3 = arith.constant 3 : index
    %c0_81 = arith.constant 0 : index
    %c0_82 = arith.constant 0 : index
    %97 = vector.load %arg6[%c0_80, %c3, %c0_81, %c0_82] : memref<1x8x16x128xbf16, #tpu.memory_space<vmem>>, vector<1x1x16x128xbf16>
    %98 = vector.shape_cast %97 : vector<1x1x16x128xbf16> to vector<16x128xbf16>
    %99 = vector.shape_cast %96 : vector<16x128xbf16> to vector<1x1x16x128xbf16>
    tpu.vector_store %arg6[%c0_80, %c3, %c0_81, %c0_82], %99 {strides = array<i32>} : memref<1x8x16x128xbf16, #tpu.memory_space<vmem>>, vector<1x1x16x128xbf16>,
    %100 = vector.extract_strided_slice %79 {offsets = [128, 0], sizes = [16, 128], strides = [1, 1]} : vector<256x128xf32> to vector<16x128xf32>
    %101 = arith.truncf %100 : vector<16x128xf32> to vector<16x128xbf16>
    %c0_83 = arith.constant 0 : index
    %c4 = arith.constant 4 : index
    %c0_84 = arith.constant 0 : index
    %c0_85 = arith.constant 0 : index
    %102 = vector.load %arg6[%c0_83, %c4, %c0_84, %c0_85] : memref<1x8x16x128xbf16, #tpu.memory_space<vmem>>, vector<1x1x16x128xbf16>
    %103 = vector.shape_cast %102 : vector<1x1x16x128xbf16> to vector<16x128xbf16>
    %104 = vector.shape_cast %101 : vector<16x128xbf16> to vector<1x1x16x128xbf16>
    tpu.vector_store %arg6[%c0_83, %c4, %c0_84, %c0_85], %104 {strides = array<i32>} : memref<1x8x16x128xbf16, #tpu.memory_space<vmem>>, vector<1x1x16x128xbf16>,
    %105 = vector.extract_strided_slice %79 {offsets = [160, 0], sizes = [16, 128], strides = [1, 1]} : vector<256x128xf32> to vector<16x128xf32>
    %106 = arith.truncf %105 : vector<16x128xf32> to vector<16x128xbf16>
    %c0_86 = arith.constant 0 : index
    %c5 = arith.constant 5 : index
    %c0_87 = arith.constant 0 : index
    %c0_88 = arith.constant 0 : index
    %107 = vector.load %arg6[%c0_86, %c5, %c0_87, %c0_88] : memref<1x8x16x128xbf16, #tpu.memory_space<vmem>>, vector<1x1x16x128xbf16>
    %108 = vector.shape_cast %107 : vector<1x1x16x128xbf16> to vector<16x128xbf16>
    %109 = vector.shape_cast %106 : vector<16x128xbf16> to vector<1x1x16x128xbf16>
    tpu.vector_store %arg6[%c0_86, %c5, %c0_87, %c0_88], %109 {strides = array<i32>} : memref<1x8x16x128xbf16, #tpu.memory_space<vmem>>, vector<1x1x16x128xbf16>,
    %110 = vector.extract_strided_slice %79 {offsets = [192, 0], sizes = [16, 128], strides = [1, 1]} : vector<256x128xf32> to vector<16x128xf32>
    %111 = arith.truncf %110 : vector<16x128xf32> to vector<16x128xbf16>
    %c0_89 = arith.constant 0 : index
    %c6 = arith.constant 6 : index
    %c0_90 = arith.constant 0 : index
    %c0_91 = arith.constant 0 : index
    %112 = vector.load %arg6[%c0_89, %c6, %c0_90, %c0_91] : memref<1x8x16x128xbf16, #tpu.memory_space<vmem>>, vector<1x1x16x128xbf16>
    %113 = vector.shape_cast %112 : vector<1x1x16x128xbf16> to vector<16x128xbf16>
    %114 = vector.shape_cast %111 : vector<16x128xbf16> to vector<1x1x16x128xbf16>
    tpu.vector_store %arg6[%c0_89, %c6, %c0_90, %c0_91], %114 {strides = array<i32>} : memref<1x8x16x128xbf16, #tpu.memory_space<vmem>>, vector<1x1x16x128xbf16>,
    %115 = vector.extract_strided_slice %79 {offsets = [224, 0], sizes = [16, 128], strides = [1, 1]} : vector<256x128xf32> to vector<16x128xf32>
    %116 = arith.truncf %115 : vector<16x128xf32> to vector<16x128xbf16>
    %c0_92 = arith.constant 0 : index
    %c7 = arith.constant 7 : index
    %c0_93 = arith.constant 0 : index
    %c0_94 = arith.constant 0 : index
    %117 = vector.load %arg6[%c0_92, %c7, %c0_93, %c0_94] : memref<1x8x16x128xbf16, #tpu.memory_space<vmem>>, vector<1x1x16x128xbf16>
    %118 = vector.shape_cast %117 : vector<1x1x16x128xbf16> to vector<16x128xbf16>
    %119 = vector.shape_cast %116 : vector<16x128xbf16> to vector<1x1x16x128xbf16>
    tpu.vector_store %arg6[%c0_92, %c7, %c0_93, %c0_94], %119 {strides = array<i32>} : memref<1x8x16x128xbf16, #tpu.memory_space<vmem>>, vector<1x1x16x128xbf16>,
    return
  }
  func.func @transform_0(%arg0: i32, %arg1: i32, %arg2: i32) -> (i32, i32, i32) {
    %c0_i32 = arith.constant 0 : i32
    %c0_i32_0 = arith.constant 0 : i32
    %c0_i32_1 = arith.constant 0 : i32
    return %arg0, %c0_i32, %c0_i32_0 : i32, i32, i32
  }
  func.func @transform_1(%arg0: i32, %arg1: i32, %arg2: i32) -> (i32, i32, i32, i32) {
    %c0_i32 = arith.constant 0 : i32
    %c0_i32_0 = arith.constant 0 : i32
    %c0_i32_1 = arith.constant 0 : i32
    %c0_i32_2 = arith.constant 0 : i32
    return %c0_i32, %c0_i32_0, %c0_i32_1, %arg2 : i32, i32, i32, i32
  }
  func.func @transform_2(%arg0: i32, %arg1: i32, %arg2: i32) -> (i32, i32) {
    %c0_i32 = arith.constant 0 : i32
    %c0_i32_0 = arith.constant 0 : i32
    return %c0_i32, %arg2 : i32, i32
  }
  func.func @transform_3(%arg0: i32, %arg1: i32, %arg2: i32) -> (i32, i32, i32, i32) {
    %c0_i32 = arith.constant 0 : i32
    %c0_i32_0 = arith.constant 0 : i32
    return %arg0, %arg1, %c0_i32, %arg2 : i32, i32, i32, i32
  }
}

module attributes {stable_mosaic.version = 11 : i64} {
  func.func @_mm_kernel(%arg0: i32, %arg1: i32, %arg2: memref<256x128xbf16, #tpu.memory_space<vmem>>, %arg3: memref<128x128xbf16, #tpu.memory_space<vmem>>, %arg4: memref<1x128xf32, #tpu.memory_space<vmem>>, %arg5: memref<256x128xbf16, #tpu.memory_space<vmem>>, %arg6: memref<256x128xbf16, #tpu.memory_space<vmem>>) attributes {dimension_semantics = [#tpu.dimension_semantics<parallel>, #tpu.dimension_semantics<parallel>], iteration_bounds = array<i64: 2, 1>, scalar_prefetch = 0 : i64, scratch_operands = 0 : i64, tpu.core_type = #tpu.core_type<tc>, window_params = [{transform_indices = @transform_0, window_bounds = array<i64: 256, 128>}, {transform_indices = @transform_1, window_bounds = array<i64: 128, 128>}, {transform_indices = @transform_2, window_bounds = array<i64: 1, 128>}, {transform_indices = @transform_3, window_bounds = array<i64: 256, 128>}, {transform_indices = @transform_4, window_bounds = array<i64: 256, 128>}]} {
    %c0 = arith.constant 0 : index
    %c0_0 = arith.constant 0 : index
    %0 = vector.load %arg2[%c0, %c0_0] : memref<256x128xbf16, #tpu.memory_space<vmem>>, vector<256x128xbf16>
    %c0_1 = arith.constant 0 : index
    %c0_2 = arith.constant 0 : index
    %1 = vector.load %arg3[%c0_1, %c0_2] : memref<128x128xbf16, #tpu.memory_space<vmem>>, vector<128x128xbf16>
    %cst = arith.constant dense<0.000000e+00> : vector<256x128xf32>
    %2 = tpu.matmul %0, %1, %cst {dimension_numbers = #tpu.dot_dimension_numbers<[1], [0], [0], [1], [0, 0, 1, 1], [], []>} : vector<256x128xbf16>, vector<128x128xbf16>, vector<256x128xf32> -> vector<256x128xf32>
    %c0_3 = arith.constant 0 : index
    %c0_4 = arith.constant 0 : index
    %3 = vector.load %arg4[%c0_3, %c0_4] : memref<1x128xf32, #tpu.memory_space<vmem>>, vector<1x128xf32>
    %4 = vector.broadcast %3 : vector<1x128xf32> to vector<256x128xf32>
    %5 = arith.addf %2, %4 : vector<256x128xf32>
    %c0_5 = arith.constant 0 : index
    %c0_6 = arith.constant 0 : index
    %6 = vector.load %arg5[%c0_5, %c0_6] : memref<256x128xbf16, #tpu.memory_space<vmem>>, vector<256x128xbf16>
    %7 = arith.extf %6 : vector<256x128xbf16> to vector<256x128xf32>
    %8 = arith.addf %5, %7 : vector<256x128xf32>
    %cst_7 = arith.constant 0.000000e+00 : f32
    %9 = vector.broadcast %cst_7 : f32 to vector<256x128xf32>
    %10 = arith.maximumf %8, %9 : vector<256x128xf32>
    %11 = arith.truncf %10 : vector<256x128xf32> to vector<256x128xbf16>
    %c0_8 = arith.constant 0 : index
    %c0_9 = arith.constant 0 : index
    %12 = vector.load %arg6[%c0_8, %c0_9] : memref<256x128xbf16, #tpu.memory_space<vmem>>, vector<256x128xbf16>
    tpu.vector_store %arg6[%c0_8, %c0_9], %11 {strides = array<i32>} : memref<256x128xbf16, #tpu.memory_space<vmem>>, vector<256x128xbf16>,
    return
  }
  func.func @transform_0(%arg0: i32, %arg1: i32) -> (i32, i32) {
    %c0_i32 = arith.constant 0 : i32
    %c0_i32_0 = arith.constant 0 : i32
    return %arg0, %c0_i32 : i32, i32
  }
  func.func @transform_1(%arg0: i32, %arg1: i32) -> (i32, i32) {
    %c0_i32 = arith.constant 0 : i32
    %c0_i32_0 = arith.constant 0 : i32
    return %c0_i32, %arg1 : i32, i32
  }
  func.func @transform_2(%arg0: i32, %arg1: i32) -> (i32, i32) {
    %c0_i32 = arith.constant 0 : i32
    %c0_i32_0 = arith.constant 0 : i32
    return %c0_i32, %arg1 : i32, i32
  }
  func.func @transform_3(%arg0: i32, %arg1: i32) -> (i32, i32) {
    %c0_i32 = arith.constant 0 : i32
    return %arg0, %arg1 : i32, i32
  }
  func.func @transform_4(%arg0: i32, %arg1: i32) -> (i32, i32) {
    %c0_i32 = arith.constant 0 : i32
    return %arg0, %arg1 : i32, i32
  }
}

module attributes {stable_mosaic.version = 11 : i64} {
  func.func @_mm_kernel(%arg0: i32, %arg1: i32, %arg2: memref<256x128xbf16, #tpu.memory_space<vmem>>, %arg3: memref<128x128xbf16, #tpu.memory_space<vmem>>, %arg4: memref<1x128xf32, #tpu.memory_space<vmem>>, %arg5: memref<256x128xbf16, #tpu.memory_space<vmem>>) attributes {dimension_semantics = [#tpu.dimension_semantics<parallel>, #tpu.dimension_semantics<parallel>], iteration_bounds = array<i64: 2, 1>, scalar_prefetch = 0 : i64, scratch_operands = 0 : i64, tpu.core_type = #tpu.core_type<tc>, window_params = [{transform_indices = @transform_0, window_bounds = array<i64: 256, 128>}, {transform_indices = @transform_1, window_bounds = array<i64: 128, 128>}, {transform_indices = @transform_2, window_bounds = array<i64: 1, 128>}, {transform_indices = @transform_3, window_bounds = array<i64: 256, 128>}]} {
    %c0 = arith.constant 0 : index
    %c0_0 = arith.constant 0 : index
    %0 = vector.load %arg2[%c0, %c0_0] : memref<256x128xbf16, #tpu.memory_space<vmem>>, vector<256x128xbf16>
    %c0_1 = arith.constant 0 : index
    %c0_2 = arith.constant 0 : index
    %1 = vector.load %arg3[%c0_1, %c0_2] : memref<128x128xbf16, #tpu.memory_space<vmem>>, vector<128x128xbf16>
    %cst = arith.constant dense<0.000000e+00> : vector<256x128xf32>
    %2 = tpu.matmul %0, %1, %cst {dimension_numbers = #tpu.dot_dimension_numbers<[1], [0], [0], [1], [0, 0, 1, 1], [], []>} : vector<256x128xbf16>, vector<128x128xbf16>, vector<256x128xf32> -> vector<256x128xf32>
    %c0_3 = arith.constant 0 : index
    %c0_4 = arith.constant 0 : index
    %3 = vector.load %arg4[%c0_3, %c0_4] : memref<1x128xf32, #tpu.memory_space<vmem>>, vector<1x128xf32>
    %4 = vector.broadcast %3 : vector<1x128xf32> to vector<256x128xf32>
    %5 = arith.addf %2, %4 : vector<256x128xf32>
    %cst_5 = arith.constant 0.000000e+00 : f32
    %6 = vector.broadcast %cst_5 : f32 to vector<256x128xf32>
    %7 = arith.maximumf %5, %6 : vector<256x128xf32>
    %8 = arith.truncf %7 : vector<256x128xf32> to vector<256x128xbf16>
    %c0_6 = arith.constant 0 : index
    %c0_7 = arith.constant 0 : index
    %9 = vector.load %arg5[%c0_6, %c0_7] : memref<256x128xbf16, #tpu.memory_space<vmem>>, vector<256x128xbf16>
    tpu.vector_store %arg5[%c0_6, %c0_7], %8 {strides = array<i32>} : memref<256x128xbf16, #tpu.memory_space<vmem>>, vector<256x128xbf16>,
    return
  }
  func.func @transform_0(%arg0: i32, %arg1: i32) -> (i32, i32) {
    %c0_i32 = arith.constant 0 : i32
    %c0_i32_0 = arith.constant 0 : i32
    return %arg0, %c0_i32 : i32, i32
  }
  func.func @transform_1(%arg0: i32, %arg1: i32) -> (i32, i32) {
    %c0_i32 = arith.constant 0 : i32
    %c0_i32_0 = arith.constant 0 : i32
    return %c0_i32, %arg1 : i32, i32
  }
  func.func @transform_2(%arg0: i32, %arg1: i32) -> (i32, i32) {
    %c0_i32 = arith.constant 0 : i32
    %c0_i32_0 = arith.constant 0 : i32
    return %c0_i32, %arg1 : i32, i32
  }
  func.func @transform_3(%arg0: i32, %arg1: i32) -> (i32, i32) {
    %c0_i32 = arith.constant 0 : i32
    return %arg0, %arg1 : i32, i32
  }
}

module attributes {stable_mosaic.version = 11 : i64} {
  func.func @_mm_kernel(%arg0: i32, %arg1: i32, %arg2: memref<256x128xbf16, #tpu.memory_space<vmem>>, %arg3: memref<128x128xbf16, #tpu.memory_space<vmem>>, %arg4: memref<256x128xbf16, #tpu.memory_space<vmem>>, %arg5: memref<128x128xbf16, #tpu.memory_space<vmem>>, %arg6: memref<1x128xf32, #tpu.memory_space<vmem>>, %arg7: memref<256x128xbf16, #tpu.memory_space<vmem>>) attributes {dimension_semantics = [#tpu.dimension_semantics<parallel>, #tpu.dimension_semantics<parallel>], iteration_bounds = array<i64: 2, 1>, scalar_prefetch = 0 : i64, scratch_operands = 0 : i64, tpu.core_type = #tpu.core_type<tc>, window_params = [{transform_indices = @transform_0, window_bounds = array<i64: 256, 128>}, {transform_indices = @transform_1, window_bounds = array<i64: 128, 128>}, {transform_indices = @transform_2, window_bounds = array<i64: 256, 128>}, {transform_indices = @transform_3, window_bounds = array<i64: 128, 128>}, {transform_indices = @transform_4, window_bounds = array<i64: 1, 128>}, {transform_indices = @transform_5, window_bounds = array<i64: 256, 128>}]} {
    %c0 = arith.constant 0 : index
    %c0_0 = arith.constant 0 : index
    %0 = vector.load %arg2[%c0, %c0_0] : memref<256x128xbf16, #tpu.memory_space<vmem>>, vector<256x128xbf16>
    %c0_1 = arith.constant 0 : index
    %c0_2 = arith.constant 0 : index
    %1 = vector.load %arg3[%c0_1, %c0_2] : memref<128x128xbf16, #tpu.memory_space<vmem>>, vector<128x128xbf16>
    %cst = arith.constant dense<0.000000e+00> : vector<256x128xf32>
    %2 = tpu.matmul %0, %1, %cst {dimension_numbers = #tpu.dot_dimension_numbers<[1], [0], [0], [1], [0, 0, 1, 1], [], []>} : vector<256x128xbf16>, vector<128x128xbf16>, vector<256x128xf32> -> vector<256x128xf32>
    %c0_3 = arith.constant 0 : index
    %c0_4 = arith.constant 0 : index
    %3 = vector.load %arg4[%c0_3, %c0_4] : memref<256x128xbf16, #tpu.memory_space<vmem>>, vector<256x128xbf16>
    %c0_5 = arith.constant 0 : index
    %c0_6 = arith.constant 0 : index
    %4 = vector.load %arg5[%c0_5, %c0_6] : memref<128x128xbf16, #tpu.memory_space<vmem>>, vector<128x128xbf16>
    %cst_7 = arith.constant dense<0.000000e+00> : vector<256x128xf32>
    %5 = tpu.matmul %3, %4, %cst_7 {dimension_numbers = #tpu.dot_dimension_numbers<[1], [0], [0], [1], [0, 0, 1, 1], [], []>} : vector<256x128xbf16>, vector<128x128xbf16>, vector<256x128xf32> -> vector<256x128xf32>
    %6 = arith.addf %2, %5 : vector<256x128xf32>
    %c0_8 = arith.constant 0 : index
    %c0_9 = arith.constant 0 : index
    %7 = vector.load %arg6[%c0_8, %c0_9] : memref<1x128xf32, #tpu.memory_space<vmem>>, vector<1x128xf32>
    %8 = vector.broadcast %7 : vector<1x128xf32> to vector<256x128xf32>
    %9 = arith.addf %6, %8 : vector<256x128xf32>
    %cst_10 = arith.constant 0.000000e+00 : f32
    %10 = vector.broadcast %cst_10 : f32 to vector<256x128xf32>
    %11 = arith.maximumf %9, %10 : vector<256x128xf32>
    %12 = arith.truncf %11 : vector<256x128xf32> to vector<256x128xbf16>
    %c0_11 = arith.constant 0 : index
    %c0_12 = arith.constant 0 : index
    %13 = vector.load %arg7[%c0_11, %c0_12] : memref<256x128xbf16, #tpu.memory_space<vmem>>, vector<256x128xbf16>
    tpu.vector_store %arg7[%c0_11, %c0_12], %12 {strides = array<i32>} : memref<256x128xbf16, #tpu.memory_space<vmem>>, vector<256x128xbf16>,
    return
  }
  func.func @transform_0(%arg0: i32, %arg1: i32) -> (i32, i32) {
    %c0_i32 = arith.constant 0 : i32
    %c0_i32_0 = arith.constant 0 : i32
    return %arg0, %c0_i32 : i32, i32
  }
  func.func @transform_1(%arg0: i32, %arg1: i32) -> (i32, i32) {
    %c0_i32 = arith.constant 0 : i32
    %c0_i32_0 = arith.constant 0 : i32
    return %c0_i32, %arg1 : i32, i32
  }
  func.func @transform_2(%arg0: i32, %arg1: i32) -> (i32, i32) {
    %c0_i32 = arith.constant 0 : i32
    %c0_i32_0 = arith.constant 0 : i32
    return %arg0, %c0_i32 : i32, i32
  }
  func.func @transform_3(%arg0: i32, %arg1: i32) -> (i32, i32) {
    %c0_i32 = arith.constant 0 : i32
    %c0_i32_0 = arith.constant 0 : i32
    return %c0_i32, %arg1 : i32, i32
  }
  func.func @transform_4(%arg0: i32, %arg1: i32) -> (i32, i32) {
    %c0_i32 = arith.constant 0 : i32
    %c0_i32_0 = arith.constant 0 : i32
    return %c0_i32, %arg1 : i32, i32
  }
  func.func @transform_5(%arg0: i32, %arg1: i32) -> (i32, i32) {
    %c0_i32 = arith.constant 0 : i32
    return %arg0, %arg1 : i32, i32
  }
}

</mosaic_0001>

<bundles_post_ra>
// kernel: _lambda_.10
= control target key start
LH: loop header
LB: loop body
LE: loop exit
PB: predicated region body
PF: predicated region fallthrough
CT: control target
= control target key end

     0   :  { %s1246_s12 = smov 0   ;;  %s1248_s13 = smov 0   ;;  %s1387_s0 = inlined_call_operand.vmem [shape: bf16[512,64], index: 0, kind: input, shape index: {}]   ;;  %s1388_s1 = inlined_call_operand.vmem [shape: bf16[64,128], index: 1, kind: input, shape index: {}]   ;;  %s1389_s2 = inlined_call_operand.vmem [shape: f32[1,128], index: 2, kind: input, shape index: {}]   ;;  %s1390_s3 = inlined_call_operand.vmem [shape: bf16[512,128], index: 3, kind: output, shape index: {}]  }
   0x1   :  { %s1250_s14 = smov 0  }
   0x2 LB: > { %s25_s15 = sadd.s32 1, %s1220_s13  ;;  %p887_p0 = scmp.ge.s32.totalorder %s1224_s14, 1  ;;  %s1224_s14 = sphi %s1250_s14, %s13_s14   ;;  %s1220_s13 = sphi %s1248_s13, %s1392_s13   ;;  %s1216_s12 = sphi %s1246_s12, %s1391_s12  }
   0x3   : > { %p27_p1 = scmp.ge.s32.totalorder %s25_s15, 2  ;;  %p169_p2 = scmp.lt.s32.totalorder %s1224_s14, 3 }
   0x5   : > { %s1394_s15 = smov (%p27_p1, %s25_s15), 0  ;;  %p170_p3 = pnand %p887_p0, %p169_p2 }
   0x6   : > { %v1182_v0 = vld [vmem:[%s1388_s1] sm:$0xff] (!%p170_p3)   ;;  %s888_s18 = sshll.u32 (!%p170_p3), %s1216_s12, 5  ;;  %v1183_v1 = vld [vmem:[%s1388_s1 + $0x8] sm:$0xff] (!%p170_p3)   ;;  %v1184_v2 = vld [vmem:[%s1388_s1 + $0x10] sm:$0xff] (!%p170_p3)   ;;  %vm377_vm0 = vcmask (!%p170_p3), 523264  }
   0x7   : > { %173 = sbr.rel (%p170_p3) target bundleno = 269 (0x10d), region = 32  ;;  %p204_p4 = scmp.lt.s32.totalorder (!%p170_p3), %s888_s18, 63  ;;  %1110 = vmatprep.subr.bf16.mxu0 (!%p170_p3), %v1182_v0  ;;  %1150 = vmatprep.subr.bf16.mxu1 (!%p170_p3), %v1182_v0  ;;  %v1185_v3 = vld [vmem:[%s1388_s1 + $0x18] sm:$0xff] (!%p170_p3)   ;;  %v1321_v20 = vld [vmem:[%s1389_s2] ss:$0 sm:$0xff] (!%p170_p3) }
   0x8   : > { %1111 = vmatpush3.bf16.msra.mxu0 (!%p170_p3), %v1182_v0  ;;  %1154 = vmatpush3.bf16.msra.mxu1 (!%p170_p3), %v1182_v0 }
   0x9   : > { %1112 = vmatprep.subr.bf16.mxu0 (!%p170_p3), %v1183_v1  ;;  %1151 = vmatprep.subr.bf16.mxu1 (!%p170_p3), %v1183_v1 }
   0xc   : > { %1113 = vmatpush3.bf16.msra.mxu0 (!%p170_p3), %v1183_v1  ;;  %1155 = vmatpush3.bf16.msra.mxu1 (!%p170_p3), %v1183_v1 }
   0xd   : > { %1114 = vmatprep.subr.bf16.mxu0 (!%p170_p3), %v1184_v2  ;;  %1152 = vmatprep.subr.bf16.mxu1 (!%p170_p3), %v1184_v2 }
   0xe   : > { %s1396_s18 = smov (!%p204_p4, %s888_s18), 63 }
   0xf   : > { %s889_s23 = sshll.u32 %s1396_s18, 2 }
  0x10   : > { %s1284_s28 = scalar_lea.vmem %s1387_s0, %s889_s23  ;;  %1115 = vmatpush3.bf16.msra.mxu0 %v1184_v2  ;;  %1156 = vmatpush3.bf16.msra.mxu1 %v1184_v2  ;;  %s1336_s6 = scalar_lea.vmem %s1390_s3, %s889_s23 }
  0x11   : > { %v1186_v4 = vld [vmem:[%s1284_s28] sm:$0xff]   ;;  %1116 = vmatprep.subr.bf16.mxu0 %v1185_v3  ;;  %1153 = vmatprep.subr.bf16.mxu1 %v1185_v3  ;;  %v1188_v6 = vld [vmem:[%s1284_s28 + $0x8] sm:$0xff]   ;;  %v1190_v8 = vld [vmem:[%s1284_s28 + $0x10] sm:$0xff]  }
  0x12   : > { %v1187_v5 = vld [vmem:[%s1284_s28 + $0x40] sm:$0xff]   ;;  %1118 = vmatprep.mubr.msk.bf16.mxu0 %vm377_vm0, %v1186_v4  ;;  %v1189_v7 = vld [vmem:[%s1284_s28 + $0x48] sm:$0xff]   ;;  %v1191_v9 = vld [vmem:[%s1284_s28 + $0x50] sm:$0xff]  }
  0x13   : > { %1134 = vmatprep.mubr.msk.bf16.mxu1 %vm377_vm0, %v1187_v5  ;;  %v1192_v10 = vld [vmem:[%s1284_s28 + $0x18] sm:$0xff]   ;;  %v1194_v12 = vld [vmem:[%s1284_s28 + $0x20] sm:$0xff]   ;;  %v1196_v14 = vld [vmem:[%s1284_s28 + $0x28] sm:$0xff]  }
  0x14   : > { %1117 = vmatpush3.bf16.msra.mxu0 %v1185_v3  ;;  %1157 = vmatpush3.bf16.msra.mxu1 %v1185_v3  ;;  %v1193_v11 = vld [vmem:[%s1284_s28 + $0x58] sm:$0xff]   ;;  %v1195_v13 = vld [vmem:[%s1284_s28 + $0x60] sm:$0xff]   ;;  %v1197_v15 = vld [vmem:[%s1284_s28 + $0x68] sm:$0xff]  }
  0x15   : > { %v1198_v16 = vld [vmem:[%s1284_s28 + $0x30] sm:$0xff]   ;;  %v1200_v18 = vld [vmem:[%s1284_s28 + $0x38] sm:$0xff]  }
  0x16   : > { %v1199_v17 = vld [vmem:[%s1284_s28 + $0x70] sm:$0xff]   ;;  %v1201_v19 = vld [vmem:[%s1284_s28 + $0x78] sm:$0xff]  }
  0x17   : > { %1119 = vmatmul.mubr.msk.bf16.vlgmr.msra.gmra.mrb[0].mxu0 %vm377_vm0, %v1188_v6  ;;  %1135 = vmatmul.mubr.msk.bf16.vlgmr.msra.gmra.mrb[0].mxu1 %vm377_vm0, %v1189_v7 }
  0x18   : > { %1122 = vmatprep.mubr.msk.bf16.mxu0 %vm377_vm0, %v1190_v8  ;;  %1138 = vmatprep.mubr.msk.bf16.mxu1 %vm377_vm0, %v1191_v9 }
  0x1f   : > { %1123 = vmatmul.mubr.msk.bf16.gmra.mrb[4].mxu0 %vm377_vm0, %v1192_v10  ;;  %1139 = vmatmul.mubr.msk.bf16.gmra.mrb[4].mxu1 %vm377_vm0, %v1193_v11 }
  0x20   : > { %1126 = vmatprep.mubr.msk.bf16.mxu0 %vm377_vm0, %v1194_v12  ;;  %1142 = vmatprep.mubr.msk.bf16.mxu1 %vm377_vm0, %v1195_v13 }
  0x27   : > { %1127 = vmatmul.mubr.msk.bf16.gmra.mrb[8].mxu0 %vm377_vm0, %v1196_v14  ;;  %1143 = vmatmul.mubr.msk.bf16.gmra.mrb[8].mxu1 %vm377_vm0, %v1197_v15 }
  0x28   : > { %1130 = vmatprep.mubr.msk.bf16.mxu0 %vm377_vm0, %v1198_v16  ;;  %1146 = vmatprep.mubr.msk.bf16.mxu1 %vm377_vm0, %v1199_v17 }
  0x2f   : > { %1131 = vmatmul.mubr.msk.bf16.gmra.mrb[12].mxu0 %vm377_vm0, %v1200_v18  ;;  %1147 = vmatmul.mubr.msk.bf16.gmra.mrb[12].mxu1 %vm377_vm0, %v1201_v19 }
  0xea   : > { %v1120_v21 = vpop.f32.mrb[0].mxu0  ;;  %v1136_v22 = vpop.f32.mrb[0].mxu1 }
  0xeb   : > { %v469_v23 = vadd.f32 %v1120_v21, %v1321_v20  ;;  %v533_v24 = vadd.f32 %v1136_v22, %v1321_v20  ;;  %v460_v25 = vpop.f32.mrb[1].mxu0  ;;  %v524_v26 = vpop.f32.mrb[1].mxu1 }
  0xec   : > { %v461_v27 = vadd.f32 %v1321_v20, %v460_v25  ;;  %v525_v28 = vadd.f32 %v1321_v20, %v524_v26  ;;  %v1121_v29 = vpop.f32.mrb[2].mxu0  ;;  %v1137_v30 = vpop.f32.mrb[2].mxu1 }
  0xed   : > { %v472_v31 = vadd.f32 %v1121_v29, %v1321_v20  ;;  %v536_v32 = vadd.f32 %v1137_v30, %v1321_v20  ;;  %v463_v33 = vpop.f32.mrb[3].mxu0  ;;  %v527_v34 = vpop.f32.mrb[3].mxu1  ;;  %v589_v37 = vmax.f32 %v469_v23, 0.0  ;;  %v605_v38 = vmax.f32 %v533_v24, 0.0 }
  0xee   : > { %v464_v35 = vadd.f32 %v1321_v20, %v463_v33  ;;  %v528_v36 = vadd.f32 %v1321_v20, %v527_v34  ;;  %v587_v41 = vmax.f32 %v461_v27, 0.0  ;;  %v603_v42 = vmax.f32 %v525_v28, 0.0 }
  0xef   : > { %v590_v39 = vmax.f32 %v472_v31, 0.0  ;;  %v606_v40 = vmax.f32 %v536_v32, 0.0 }
  0xf0   : > { %v588_v43 = vmax.f32 %v464_v35, 0.0  ;;  %v604_v44 = vmax.f32 %v528_v36, 0.0 }
  0xf1   : > { %v1003_v45 = vpack.c.bf16 %v590_v39, %v589_v37  ;;  %v1043_v46 = vpack.c.bf16 %v606_v40, %v605_v38 }
  0xf2   : > { %v998_v47 = vpack.c.bf16 %v588_v43, %v587_v41  ;;  %v1038_v48 = vpack.c.bf16 %v604_v44, %v603_v42  ;;  %v1124_v49 = vpop.f32.mrb[4].mxu0  ;;  %v1140_v50 = vpop.f32.mrb[4].mxu1 }
  0xf3   : > { %1075 = vst [vmem:[%s1336_s6 + $0x8] sm:$0xff] %v1003_v45   ;;  %1083 = vst [vmem:[%s1336_s6 + $0x48] sm:$0xff] %v1043_v46   ;;  %v485_v51 = vadd.f32 %v1124_v49, %v1321_v20  ;;  %v549_v52 = vadd.f32 %v1140_v50, %v1321_v20  ;;  %v476_v53 = vpop.f32.mrb[5].mxu0  ;;  %v540_v54 = vpop.f32.mrb[5].mxu1 }
  0xf4   : > { %999 = vst [vmem:[%s1336_s6] sm:$0xff] %v998_v47   ;;  %1082 = vst [vmem:[%s1336_s6 + $0x40] sm:$0xff] %v1038_v48   ;;  %v477_v55 = vadd.f32 %v1321_v20, %v476_v53  ;;  %v541_v56 = vadd.f32 %v1321_v20, %v540_v54  ;;  %v1125_v57 = vpop.f32.mrb[6].mxu0  ;;  %v1141_v58 = vpop.f32.mrb[6].mxu1 }
  0xf5   : > { %v488_v59 = vadd.f32 %v1125_v57, %v1321_v20  ;;  %v552_v60 = vadd.f32 %v1141_v58, %v1321_v20  ;;  %v479_v61 = vpop.f32.mrb[7].mxu0  ;;  %v543_v62 = vpop.f32.mrb[7].mxu1  ;;  %v593_v1 = vmax.f32 %v485_v51, 0.0  ;;  %v609_v2 = vmax.f32 %v549_v52, 0.0 }
  0xf6   : > { %v480_v63 = vadd.f32 %v1321_v20, %v479_v61  ;;  %v544_v0 = vadd.f32 %v1321_v20, %v543_v62  ;;  %v591_v5 = vmax.f32 %v477_v55, 0.0  ;;  %v607_v6 = vmax.f32 %v541_v56, 0.0 }
  0xf7   : > { %v594_v3 = vmax.f32 %v488_v59, 0.0  ;;  %v610_v4 = vmax.f32 %v552_v60, 0.0 }
  0xf8   : > { %v592_v7 = vmax.f32 %v480_v63, 0.0  ;;  %v608_v8 = vmax.f32 %v544_v0, 0.0 }
  0xf9   : > { %v1013_v9 = vpack.c.bf16 %v594_v3, %v593_v1  ;;  %v1053_v10 = vpack.c.bf16 %v610_v4, %v609_v2 }
  0xfa   : > { %v1008_v11 = vpack.c.bf16 %v592_v7, %v591_v5  ;;  %v1048_v12 = vpack.c.bf16 %v608_v8, %v607_v6  ;;  %v1128_v13 = vpop.f32.mrb[8].mxu0  ;;  %v1144_v14 = vpop.f32.mrb[8].mxu1 }
  0xfb   : > { %1077 = vst [vmem:[%s1336_s6 + $0x18] sm:$0xff] %v1013_v9   ;;  %1085 = vst [vmem:[%s1336_s6 + $0x58] sm:$0xff] %v1053_v10   ;;  %v501_v15 = vadd.f32 %v1128_v13, %v1321_v20  ;;  %v565_v16 = vadd.f32 %v1144_v14, %v1321_v20  ;;  %v492_v17 = vpop.f32.mrb[9].mxu0  ;;  %v556_v18 = vpop.f32.mrb[9].mxu1 }
  0xfc   : > { %1076 = vst [vmem:[%s1336_s6 + $0x10] sm:$0xff] %v1008_v11   ;;  %1084 = vst [vmem:[%s1336_s6 + $0x50] sm:$0xff] %v1048_v12   ;;  %v493_v19 = vadd.f32 %v1321_v20, %v492_v17  ;;  %v557_v21 = vadd.f32 %v1321_v20, %v556_v18  ;;  %v1129_v22 = vpop.f32.mrb[10].mxu0  ;;  %v1145_v23 = vpop.f32.mrb[10].mxu1 }
  0xfd   : > { %v504_v24 = vadd.f32 %v1129_v22, %v1321_v20  ;;  %v568_v25 = vadd.f32 %v1145_v23, %v1321_v20  ;;  %v495_v26 = vpop.f32.mrb[11].mxu0  ;;  %v559_v27 = vpop.f32.mrb[11].mxu1  ;;  %v597_v30 = vmax.f32 %v501_v15, 0.0  ;;  %v613_v31 = vmax.f32 %v565_v16, 0.0 }
  0xfe   : > { %v496_v28 = vadd.f32 %v1321_v20, %v495_v26  ;;  %v560_v29 = vadd.f32 %v1321_v20, %v559_v27  ;;  %v595_v34 = vmax.f32 %v493_v19, 0.0  ;;  %v611_v35 = vmax.f32 %v557_v21, 0.0 }
  0xff   : > { %v598_v32 = vmax.f32 %v504_v24, 0.0  ;;  %v614_v33 = vmax.f32 %v568_v25, 0.0 }
 0x100   : > { %v596_v36 = vmax.f32 %v496_v28, 0.0  ;;  %v612_v37 = vmax.f32 %v560_v29, 0.0 }
 0x101   : > { %v1023_v38 = vpack.c.bf16 %v598_v32, %v597_v30  ;;  %v1063_v39 = vpack.c.bf16 %v614_v33, %v613_v31 }
 0x102   : > { %v1018_v40 = vpack.c.bf16 %v596_v36, %v595_v34  ;;  %v1058_v41 = vpack.c.bf16 %v612_v37, %v611_v35  ;;  %v1132_v42 = vpop.f32.mrb[12].mxu0  ;;  %v1148_v43 = vpop.f32.mrb[12].mxu1 }
 0x103   : > { %1079 = vst [vmem:[%s1336_s6 + $0x28] sm:$0xff] %v1023_v38   ;;  %1087 = vst [vmem:[%s1336_s6 + $0x68] sm:$0xff] %v1063_v39   ;;  %v517_v44 = vadd.f32 %v1132_v42, %v1321_v20  ;;  %v581_v45 = vadd.f32 %v1148_v43, %v1321_v20  ;;  %v508_v46 = vpop.f32.mrb[13].mxu0  ;;  %v572_v47 = vpop.f32.mrb[13].mxu1 }
 0x104   : > { %1078 = vst [vmem:[%s1336_s6 + $0x20] sm:$0xff] %v1018_v40   ;;  %1086 = vst [vmem:[%s1336_s6 + $0x60] sm:$0xff] %v1058_v41   ;;  %v509_v48 = vadd.f32 %v1321_v20, %v508_v46  ;;  %v573_v49 = vadd.f32 %v1321_v20, %v572_v47  ;;  %v1133_v50 = vpop.f32.mrb[14].mxu0  ;;  %v1149_v51 = vpop.f32.mrb[14].mxu1 }
 0x105   : > { %v520_v52 = vadd.f32 %v1133_v50, %v1321_v20  ;;  %v584_v53 = vadd.f32 %v1149_v51, %v1321_v20  ;;  %v511_v54 = vpop.f32.mrb[15].mxu0  ;;  %v575_v55 = vpop.f32.mrb[15].mxu1  ;;  %v601_v58 = vmax.f32 %v517_v44, 0.0  ;;  %v617_v59 = vmax.f32 %v581_v45, 0.0 }
 0x106   : > { %v512_v56 = vadd.f32 %v1321_v20, %v511_v54  ;;  %v576_v57 = vadd.f32 %v1321_v20, %v575_v55  ;;  %v599_v62 = vmax.f32 %v509_v48, 0.0  ;;  %v615_v63 = vmax.f32 %v573_v49, 0.0 }
 0x107   : > { %v602_v60 = vmax.f32 %v520_v52, 0.0  ;;  %v618_v61 = vmax.f32 %v584_v53, 0.0 }
 0x108   : > { %v600_v0 = vmax.f32 %v512_v56, 0.0  ;;  %v616_v1 = vmax.f32 %v576_v57, 0.0 }
 0x109   : > { %v1033_v2 = vpack.c.bf16 %v602_v60, %v601_v58  ;;  %v1073_v3 = vpack.c.bf16 %v618_v61, %v617_v59 }
 0x10a   : > { %v1028_v4 = vpack.c.bf16 %v600_v0, %v599_v62  ;;  %v1068_v5 = vpack.c.bf16 %v616_v1, %v615_v63 }
 0x10b   : > { %1081 = vst [vmem:[%s1336_s6 + $0x38] sm:$0xff] %v1033_v2   ;;  %1089 = vst [vmem:[%s1336_s6 + $0x78] sm:$0xff] %v1073_v3  }
 0x10c   : > { %1080 = vst [vmem:[%s1336_s6 + $0x30] sm:$0xff] %v1028_v4   ;;  %1088 = vst [vmem:[%s1336_s6 + $0x70] sm:$0xff] %v1068_v5  }
 0x10d PF: > { %s13_s14 = sadd.s32 1, %s1224_s14   ;;  %s1391_s12 = smov %s1220_s13 }
 0x10e   : > { %p10_p5 = scmp.ge.s32.totalorder %s13_s14, 4   ;;  %s1392_s13 = smov %s1394_s15 }
 0x110   :  { %12 = sbr.rel (!%p10_p5) target bundleno = 2 (0x2), region = 68 }

// kernel: _lambda_.12
= control target key start
LH: loop header
LB: loop body
LE: loop exit
PB: predicated region body
PF: predicated region fallthrough
CT: control target
= control target key end

     0   :  { %s1214_s12 = smov 0   ;;  %s1216_s13 = smov 0   ;;  %s1355_s0 = inlined_call_operand.vmem [shape: bf16[512,64], index: 0, kind: input, shape index: {}]   ;;  %s1356_s1 = inlined_call_operand.vmem [shape: bf16[64,128], index: 1, kind: input, shape index: {}]   ;;  %s1357_s2 = inlined_call_operand.vmem [shape: f32[1,128], index: 2, kind: input, shape index: {}]   ;;  %s1358_s3 = inlined_call_operand.vmem [shape: bf16[512,128], index: 3, kind: output, shape index: {}]  }
   0x1   :  { %s1218_s14 = smov 0  }
   0x2 LB: > { %s25_s15 = sadd.s32 1, %s1188_s13  ;;  %p855_p0 = scmp.ge.s32.totalorder %s1192_s14, 1  ;;  %s1192_s14 = sphi %s1218_s14, %s13_s14   ;;  %s1188_s13 = sphi %s1216_s13, %s1360_s13   ;;  %s1184_s12 = sphi %s1214_s12, %s1359_s12  }
   0x3   : > { %p27_p1 = scmp.ge.s32.totalorder %s25_s15, 2  ;;  %p169_p2 = scmp.lt.s32.totalorder %s1192_s14, 3 }
   0x5   : > { %s1362_s15 = smov (%p27_p1, %s25_s15), 0  ;;  %p170_p3 = pnand %p855_p0, %p169_p2 }
   0x6   : > { %v1150_v0 = vld [vmem:[%s1356_s1] sm:$0xff] (!%p170_p3)   ;;  %s856_s18 = sshll.u32 (!%p170_p3), %s1184_s12, 5  ;;  %v1151_v1 = vld [vmem:[%s1356_s1 + $0x8] sm:$0xff] (!%p170_p3)   ;;  %v1152_v2 = vld [vmem:[%s1356_s1 + $0x10] sm:$0xff] (!%p170_p3)   ;;  %vm377_vm0 = vcmask (!%p170_p3), 523264  }
   0x7   : > { %173 = sbr.rel (%p170_p3) target bundleno = 267 (0x10b), region = 32  ;;  %p204_p4 = scmp.lt.s32.totalorder (!%p170_p3), %s856_s18, 63  ;;  %1078 = vmatprep.subr.bf16.mxu0 (!%p170_p3), %v1150_v0  ;;  %1118 = vmatprep.subr.bf16.mxu1 (!%p170_p3), %v1150_v0  ;;  %v1153_v3 = vld [vmem:[%s1356_s1 + $0x18] sm:$0xff] (!%p170_p3)   ;;  %v1289_v21 = vld [vmem:[%s1357_s2] ss:$0 sm:$0xff] (!%p170_p3) }
   0x8   : > { %1079 = vmatpush3.bf16.msra.mxu0 (!%p170_p3), %v1150_v0  ;;  %1122 = vmatpush3.bf16.msra.mxu1 (!%p170_p3), %v1150_v0 }
   0x9   : > { %1080 = vmatprep.subr.bf16.mxu0 (!%p170_p3), %v1151_v1  ;;  %1119 = vmatprep.subr.bf16.mxu1 (!%p170_p3), %v1151_v1 }
   0xc   : > { %1081 = vmatpush3.bf16.msra.mxu0 (!%p170_p3), %v1151_v1  ;;  %1123 = vmatpush3.bf16.msra.mxu1 (!%p170_p3), %v1151_v1 }
   0xd   : > { %1082 = vmatprep.subr.bf16.mxu0 (!%p170_p3), %v1152_v2  ;;  %1120 = vmatprep.subr.bf16.mxu1 (!%p170_p3), %v1152_v2 }
   0xe   : > { %s1364_s18 = smov (!%p204_p4, %s856_s18), 63 }
   0xf   : > { %s857_s23 = sshll.u32 %s1364_s18, 2 }
  0x10   : > { %s1252_s28 = scalar_lea.vmem %s1355_s0, %s857_s23  ;;  %1083 = vmatpush3.bf16.msra.mxu0 %v1152_v2  ;;  %1124 = vmatpush3.bf16.msra.mxu1 %v1152_v2  ;;  %s1302_s6 = scalar_lea.vmem %s1358_s3, %s857_s23 }
  0x11   : > { %v1154_v4 = vld [vmem:[%s1252_s28] sm:$0xff]   ;;  %1084 = vmatprep.subr.bf16.mxu0 %v1153_v3  ;;  %1121 = vmatprep.subr.bf16.mxu1 %v1153_v3  ;;  %v1156_v6 = vld [vmem:[%s1252_s28 + $0x8] sm:$0xff]   ;;  %v1158_v8 = vld [vmem:[%s1252_s28 + $0x10] sm:$0xff]  }
  0x12   : > { %v1155_v5 = vld [vmem:[%s1252_s28 + $0x40] sm:$0xff]   ;;  %1086 = vmatprep.mubr.msk.bf16.mxu0 %vm377_vm0, %v1154_v4  ;;  %v1157_v7 = vld [vmem:[%s1252_s28 + $0x48] sm:$0xff]   ;;  %v1159_v9 = vld [vmem:[%s1252_s28 + $0x50] sm:$0xff]  }
  0x13   : > { %1102 = vmatprep.mubr.msk.bf16.mxu1 %vm377_vm0, %v1155_v5  ;;  %v1160_v10 = vld [vmem:[%s1252_s28 + $0x18] sm:$0xff]   ;;  %v1162_v12 = vld [vmem:[%s1252_s28 + $0x20] sm:$0xff]   ;;  %v1164_v14 = vld [vmem:[%s1252_s28 + $0x28] sm:$0xff]  }
  0x14   : > { %1085 = vmatpush3.bf16.msra.mxu0 %v1153_v3  ;;  %1125 = vmatpush3.bf16.msra.mxu1 %v1153_v3  ;;  %v1161_v11 = vld [vmem:[%s1252_s28 + $0x58] sm:$0xff]   ;;  %v1163_v13 = vld [vmem:[%s1252_s28 + $0x60] sm:$0xff]   ;;  %v1165_v15 = vld [vmem:[%s1252_s28 + $0x68] sm:$0xff]  }
  0x15   : > { %v1166_v16 = vld [vmem:[%s1252_s28 + $0x30] sm:$0xff]   ;;  %v1168_v18 = vld [vmem:[%s1252_s28 + $0x38] sm:$0xff]  }
  0x16   : > { %v1167_v17 = vld [vmem:[%s1252_s28 + $0x70] sm:$0xff]   ;;  %v1169_v19 = vld [vmem:[%s1252_s28 + $0x78] sm:$0xff]  }
  0x17   : > { %1087 = vmatmul.mubr.msk.bf16.vlgmr.msra.gmra.mrb[0].mxu0 %vm377_vm0, %v1156_v6  ;;  %1103 = vmatmul.mubr.msk.bf16.vlgmr.msra.gmra.mrb[0].mxu1 %vm377_vm0, %v1157_v7 }
  0x18   : > { %1090 = vmatprep.mubr.msk.bf16.mxu0 %vm377_vm0, %v1158_v8  ;;  %1106 = vmatprep.mubr.msk.bf16.mxu1 %vm377_vm0, %v1159_v9 }
  0x1f   : > { %1091 = vmatmul.mubr.msk.bf16.gmra.mrb[4].mxu0 %vm377_vm0, %v1160_v10  ;;  %1107 = vmatmul.mubr.msk.bf16.gmra.mrb[4].mxu1 %vm377_vm0, %v1161_v11 }
  0x20   : > { %1094 = vmatprep.mubr.msk.bf16.mxu0 %vm377_vm0, %v1162_v12  ;;  %1110 = vmatprep.mubr.msk.bf16.mxu1 %vm377_vm0, %v1163_v13 }
  0x27   : > { %1095 = vmatmul.mubr.msk.bf16.gmra.mrb[8].mxu0 %vm377_vm0, %v1164_v14  ;;  %1111 = vmatmul.mubr.msk.bf16.gmra.mrb[8].mxu1 %vm377_vm0, %v1165_v15 }
  0x28   : > { %1098 = vmatprep.mubr.msk.bf16.mxu0 %vm377_vm0, %v1166_v16  ;;  %1114 = vmatprep.mubr.msk.bf16.mxu1 %vm377_vm0, %v1167_v17 }
  0x2f   : > { %1099 = vmatmul.mubr.msk.bf16.gmra.mrb[12].mxu0 %vm377_vm0, %v1168_v18  ;;  %1115 = vmatmul.mubr.msk.bf16.gmra.mrb[12].mxu1 %vm377_vm0, %v1169_v19 }
  0xea   : > { %v1088_v20 = vpop.f32.mrb[0].mxu0  ;;  %v1104_v22 = vpop.f32.mrb[0].mxu1 }
  0xeb   : > { %v460_v23 = vpop.f32.mrb[1].mxu0  ;;  %v524_v24 = vpop.f32.mrb[1].mxu1  ;;  %v469_v27 = vadd.f32 %v1088_v20, %v1289_v21  ;;  %v533_v28 = vadd.f32 %v1104_v22, %v1289_v21 }
  0xec   : > { %v1089_v25 = vpop.f32.mrb[2].mxu0  ;;  %v1105_v26 = vpop.f32.mrb[2].mxu1  ;;  %v461_v33 = vadd.f32 %v1289_v21, %v460_v23  ;;  %v525_v34 = vadd.f32 %v1289_v21, %v524_v24 }
  0xed   : > { %v472_v29 = vadd.f32 %v1089_v25, %v1289_v21  ;;  %v536_v30 = vadd.f32 %v1105_v26, %v1289_v21  ;;  %v463_v31 = vpop.f32.mrb[3].mxu0  ;;  %v527_v32 = vpop.f32.mrb[3].mxu1 }
  0xee   : > { %v464_v35 = vadd.f32 %v1289_v21, %v463_v31  ;;  %v528_v36 = vadd.f32 %v1289_v21, %v527_v32 }
  0xef   : > { %v971_v37 = vpack.c.bf16 %v472_v29, %v469_v27  ;;  %v1011_v38 = vpack.c.bf16 %v536_v30, %v533_v28 }
  0xf0   : > { %v966_v39 = vpack.c.bf16 %v464_v35, %v461_v33  ;;  %v1006_v40 = vpack.c.bf16 %v528_v36, %v525_v34 }
  0xf1   : > { %1043 = vst [vmem:[%s1302_s6 + $0x8] sm:$0xff] %v971_v37   ;;  %1051 = vst [vmem:[%s1302_s6 + $0x48] sm:$0xff] %v1011_v38  }
  0xf2   : > { %967 = vst [vmem:[%s1302_s6] sm:$0xff] %v966_v39   ;;  %1050 = vst [vmem:[%s1302_s6 + $0x40] sm:$0xff] %v1006_v40   ;;  %v1092_v41 = vpop.f32.mrb[4].mxu0  ;;  %v1108_v42 = vpop.f32.mrb[4].mxu1 }
  0xf3   : > { %v476_v43 = vpop.f32.mrb[5].mxu0  ;;  %v540_v44 = vpop.f32.mrb[5].mxu1  ;;  %v485_v47 = vadd.f32 %v1092_v41, %v1289_v21  ;;  %v549_v48 = vadd.f32 %v1108_v42, %v1289_v21 }
  0xf4   : > { %v1093_v45 = vpop.f32.mrb[6].mxu0  ;;  %v1109_v46 = vpop.f32.mrb[6].mxu1  ;;  %v477_v53 = vadd.f32 %v1289_v21, %v476_v43  ;;  %v541_v54 = vadd.f32 %v1289_v21, %v540_v44 }
  0xf5   : > { %v488_v49 = vadd.f32 %v1093_v45, %v1289_v21  ;;  %v552_v50 = vadd.f32 %v1109_v46, %v1289_v21  ;;  %v479_v51 = vpop.f32.mrb[7].mxu0  ;;  %v543_v52 = vpop.f32.mrb[7].mxu1 }
  0xf6   : > { %v480_v55 = vadd.f32 %v1289_v21, %v479_v51  ;;  %v544_v56 = vadd.f32 %v1289_v21, %v543_v52 }
  0xf7   : > { %v981_v57 = vpack.c.bf16 %v488_v49, %v485_v47  ;;  %v1021_v58 = vpack.c.bf16 %v552_v50, %v549_v48 }
  0xf8   : > { %v976_v59 = vpack.c.bf16 %v480_v55, %v477_v53  ;;  %v1016_v60 = vpack.c.bf16 %v544_v56, %v541_v54 }
  0xf9   : > { %1045 = vst [vmem:[%s1302_s6 + $0x18] sm:$0xff] %v981_v57   ;;  %1053 = vst [vmem:[%s1302_s6 + $0x58] sm:$0xff] %v1021_v58  }
  0xfa   : > { %1044 = vst [vmem:[%s1302_s6 + $0x10] sm:$0xff] %v976_v59   ;;  %1052 = vst [vmem:[%s1302_s6 + $0x50] sm:$0xff] %v1016_v60   ;;  %v1096_v61 = vpop.f32.mrb[8].mxu0  ;;  %v1112_v62 = vpop.f32.mrb[8].mxu1 }
  0xfb   : > { %v492_v63 = vpop.f32.mrb[9].mxu0  ;;  %v556_v0 = vpop.f32.mrb[9].mxu1  ;;  %v501_v3 = vadd.f32 %v1096_v61, %v1289_v21  ;;  %v565_v4 = vadd.f32 %v1112_v62, %v1289_v21 }
  0xfc   : > { %v1097_v1 = vpop.f32.mrb[10].mxu0  ;;  %v1113_v2 = vpop.f32.mrb[10].mxu1  ;;  %v493_v9 = vadd.f32 %v1289_v21, %v492_v63  ;;  %v557_v10 = vadd.f32 %v1289_v21, %v556_v0 }
  0xfd   : > { %v504_v5 = vadd.f32 %v1097_v1, %v1289_v21  ;;  %v568_v6 = vadd.f32 %v1113_v2, %v1289_v21  ;;  %v495_v7 = vpop.f32.mrb[11].mxu0  ;;  %v559_v8 = vpop.f32.mrb[11].mxu1 }
  0xfe   : > { %v496_v11 = vadd.f32 %v1289_v21, %v495_v7  ;;  %v560_v12 = vadd.f32 %v1289_v21, %v559_v8 }
  0xff   : > { %v991_v13 = vpack.c.bf16 %v504_v5, %v501_v3  ;;  %v1031_v14 = vpack.c.bf16 %v568_v6, %v565_v4 }
 0x100   : > { %v986_v15 = vpack.c.bf16 %v496_v11, %v493_v9  ;;  %v1026_v16 = vpack.c.bf16 %v560_v12, %v557_v10 }
 0x101   : > { %1047 = vst [vmem:[%s1302_s6 + $0x28] sm:$0xff] %v991_v13   ;;  %1055 = vst [vmem:[%s1302_s6 + $0x68] sm:$0xff] %v1031_v14  }
 0x102   : > { %1046 = vst [vmem:[%s1302_s6 + $0x20] sm:$0xff] %v986_v15   ;;  %1054 = vst [vmem:[%s1302_s6 + $0x60] sm:$0xff] %v1026_v16   ;;  %v1100_v17 = vpop.f32.mrb[12].mxu0  ;;  %v1116_v18 = vpop.f32.mrb[12].mxu1 }
 0x103   : > { %v508_v19 = vpop.f32.mrb[13].mxu0  ;;  %v572_v20 = vpop.f32.mrb[13].mxu1  ;;  %v517_v24 = vadd.f32 %v1100_v17, %v1289_v21  ;;  %v581_v25 = vadd.f32 %v1116_v18, %v1289_v21 }
 0x104   : > { %v1101_v22 = vpop.f32.mrb[14].mxu0  ;;  %v1117_v23 = vpop.f32.mrb[14].mxu1  ;;  %v509_v30 = vadd.f32 %v1289_v21, %v508_v19  ;;  %v573_v31 = vadd.f32 %v1289_v21, %v572_v20 }
 0x105   : > { %v520_v26 = vadd.f32 %v1101_v22, %v1289_v21  ;;  %v584_v27 = vadd.f32 %v1117_v23, %v1289_v21  ;;  %v511_v28 = vpop.f32.mrb[15].mxu0  ;;  %v575_v29 = vpop.f32.mrb[15].mxu1 }
 0x106   : > { %v512_v32 = vadd.f32 %v1289_v21, %v511_v28  ;;  %v576_v33 = vadd.f32 %v1289_v21, %v575_v29 }
 0x107   : > { %v1001_v34 = vpack.c.bf16 %v520_v26, %v517_v24  ;;  %v1041_v35 = vpack.c.bf16 %v584_v27, %v581_v25 }
 0x108   : > { %v996_v36 = vpack.c.bf16 %v512_v32, %v509_v30  ;;  %v1036_v37 = vpack.c.bf16 %v576_v33, %v573_v31 }
 0x109   : > { %1049 = vst [vmem:[%s1302_s6 + $0x38] sm:$0xff] %v1001_v34   ;;  %1057 = vst [vmem:[%s1302_s6 + $0x78] sm:$0xff] %v1041_v35  }
 0x10a   : > { %1048 = vst [vmem:[%s1302_s6 + $0x30] sm:$0xff] %v996_v36   ;;  %1056 = vst [vmem:[%s1302_s6 + $0x70] sm:$0xff] %v1036_v37  }
 0x10b PF: > { %s13_s14 = sadd.s32 1, %s1192_s14   ;;  %s1359_s12 = smov %s1188_s13 }
 0x10c   : > { %p10_p5 = scmp.ge.s32.totalorder %s13_s14, 4   ;;  %s1360_s13 = smov %s1362_s15 }
 0x10e   :  { %12 = sbr.rel (!%p10_p5) target bundleno = 2 (0x2), region = 68 }

// kernel: _lambda_.13
= control target key start
LH: loop header
LB: loop body
LE: loop exit
PB: predicated region body
PF: predicated region fallthrough
CT: control target
= control target key end

     0   :  { %s1514_s15 = smov 0   ;;  %s1516_s16 = smov 0   ;;  %s1758_s0 = inlined_call_operand.vmem [shape: bf16[512,128], index: 0, kind: input, shape index: {}]   ;;  %s1759_s1 = inlined_call_operand.vmem [shape: bf16[128,128], index: 1, kind: input, shape index: {}]   ;;  %s1760_s2 = inlined_call_operand.vmem [shape: f32[1,128], index: 2, kind: input, shape index: {}]   ;;  %s1761_s3 = inlined_call_operand.vmem [shape: bf16[512,128], index: 3, kind: input, shape index: {}]   ;;  %s1762_s4 = inlined_call_operand.vmem [shape: bf16[512,128], index: 4, kind: output, shape index: {}]  }
   0x1   :  { %s1518_s17 = smov 0  }
   0x2 LB: > { %s26_s18 = sadd.s32 1, %s1483_s16  ;;  %p1057_p0 = scmp.ge.s32.totalorder %s1487_s17, 1  ;;  %s1487_s17 = sphi %s1518_s17, %s14_s17   ;;  %s1483_s16 = sphi %s1516_s16, %s1764_s16   ;;  %s1479_s15 = sphi %s1514_s15, %s1763_s15  }
   0x3   : > { %p28_p1 = scmp.ge.s32.totalorder %s26_s18, 2  ;;  %p210_p2 = scmp.lt.s32.totalorder %s1487_s17, 3 }
   0x5   : > { %s1766_s18 = smov (%p28_p1, %s26_s18), 0  ;;  %p211_p3 = pnand %p1057_p0, %p210_p2 }
   0x6   : > { %v1441_v0 = vld [vmem:[%s1759_s1] sm:$0xff] (!%p211_p3)   ;;  %s1058_s21 = sshll.u32 (!%p211_p3), %s1479_s15, 5  ;;  %v1442_v1 = vld [vmem:[%s1759_s1 + $0x8] sm:$0xff] (!%p211_p3)   ;;  %v1443_v2 = vld [vmem:[%s1759_s1 + $0x10] sm:$0xff] (!%p211_p3)  }
   0x7   : > { %214 = sbr.rel (%p211_p3) target bundleno = 288 (0x120), region = 36  ;;  %p255_p4 = scmp.lt.s32.totalorder (!%p211_p3), %s1058_s21, 63  ;;  %1353 = vmatprep.subr.bf16.mxu0 (!%p211_p3), %v1441_v0  ;;  %1401 = vmatprep.subr.bf16.mxu1 (!%p211_p3), %v1441_v0  ;;  %v1444_v3 = vld [vmem:[%s1759_s1 + $0x18] sm:$0xff] (!%p211_p3)   ;;  %v1445_v6 = vld [vmem:[%s1759_s1 + $0x20] sm:$0xff] (!%p211_p3)   ;;  %v1446_v7 = vld [vmem:[%s1759_s1 + $0x28] sm:$0xff] (!%p211_p3)  }
   0x8   : > { %1354 = vmatpush3.bf16.msra.mxu0 (!%p211_p3), %v1441_v0  ;;  %1409 = vmatpush3.bf16.msra.mxu1 (!%p211_p3), %v1441_v0  ;;  %v1447_v8 = vld [vmem:[%s1759_s1 + $0x30] sm:$0xff] (!%p211_p3)   ;;  %v1448_v9 = vld [vmem:[%s1759_s1 + $0x38] sm:$0xff] (!%p211_p3)   ;;  %v1605_v36 = vld [vmem:[%s1760_s2] ss:$0 sm:$0xff] (!%p211_p3) }
   0x9   : > { %1355 = vmatprep.subr.bf16.mxu0 (!%p211_p3), %v1442_v1  ;;  %1402 = vmatprep.subr.bf16.mxu1 (!%p211_p3), %v1442_v1 }
   0xc   : > { %1356 = vmatpush3.bf16.msra.mxu0 (!%p211_p3), %v1442_v1  ;;  %1410 = vmatpush3.bf16.msra.mxu1 (!%p211_p3), %v1442_v1 }
   0xd   : > { %1357 = vmatprep.subr.bf16.mxu0 (!%p211_p3), %v1443_v2  ;;  %1403 = vmatprep.subr.bf16.mxu1 (!%p211_p3), %v1443_v2 }
   0xe   : > { %s1768_s21 = smov (!%p255_p4, %s1058_s21), 63 }
   0xf   : > { %s1541_s26 = sshll.u32 %s1768_s21, 2 }
  0x10   : > { %s1547_s29 = scalar_lea.vmem %s1758_s0, %s1541_s26  ;;  %1358 = vmatpush3.bf16.msra.mxu0 %v1443_v2  ;;  %1411 = vmatpush3.bf16.msra.mxu1 %v1443_v2  ;;  %s1584_s19 = scalar_lea.vmem %s1761_s3, %s1541_s26 }
  0x11   : > { %v1449_v4 = vld [vmem:[%s1547_s29] sm:$0xff]   ;;  %1359 = vmatprep.subr.bf16.mxu0 %v1444_v3  ;;  %1404 = vmatprep.subr.bf16.mxu1 %v1444_v3  ;;  %v1451_v10 = vld [vmem:[%s1547_s29 + $0x8] sm:$0xff]   ;;  %v1453_v12 = vld [vmem:[%s1547_s29 + $0x10] sm:$0xff]   ;;  %s1647_s24 = scalar_lea.vmem %s1762_s4, %s1541_s26 }
  0x12   : > { %v1450_v5 = vld [vmem:[%s1547_s29 + $0x40] sm:$0xff]   ;;  %1369 = vmatprep.mubr.bf16.mxu0 %v1449_v4  ;;  %v1452_v11 = vld [vmem:[%s1547_s29 + $0x48] sm:$0xff]   ;;  %v1454_v13 = vld [vmem:[%s1547_s29 + $0x50] sm:$0xff]  }
  0x13   : > { %1385 = vmatprep.mubr.bf16.mxu1 %v1450_v5  ;;  %v1455_v14 = vld [vmem:[%s1547_s29 + $0x18] sm:$0xff]   ;;  %v1457_v16 = vld [vmem:[%s1547_s29 + $0x20] sm:$0xff]   ;;  %v1459_v18 = vld [vmem:[%s1547_s29 + $0x28] sm:$0xff]  }
  0x14   : > { %1360 = vmatpush3.bf16.msra.mxu0 %v1444_v3  ;;  %1412 = vmatpush3.bf16.msra.mxu1 %v1444_v3  ;;  %v1456_v15 = vld [vmem:[%s1547_s29 + $0x58] sm:$0xff]   ;;  %v1458_v17 = vld [vmem:[%s1547_s29 + $0x60] sm:$0xff]   ;;  %v1460_v19 = vld [vmem:[%s1547_s29 + $0x68] sm:$0xff]  }
  0x15   : > { %1361 = vmatprep.subr.bf16.mxu0 %v1445_v6  ;;  %1405 = vmatprep.subr.bf16.mxu1 %v1445_v6  ;;  %v1461_v20 = vld [vmem:[%s1547_s29 + $0x30] sm:$0xff]   ;;  %v1463_v22 = vld [vmem:[%s1547_s29 + $0x38] sm:$0xff]   ;;  %v1299_v24 = vld [vmem:[%s1584_s19 + $0x8] sm:$0xff]  }
  0x16   : > { %v1462_v21 = vld [vmem:[%s1547_s29 + $0x70] sm:$0xff]   ;;  %v1464_v23 = vld [vmem:[%s1547_s29 + $0x78] sm:$0xff]   ;;  %v1307_v25 = vld [vmem:[%s1584_s19 + $0x48] sm:$0xff]   ;;  %v1161_v32 = vunpack.c.l.bf16 %v1299_v24  ;;  %v1162_v37 = vunpack.c.h.bf16 %v1299_v24 }
  0x17   : > { %v1156_v26 = vld [vmem:[%s1584_s19] sm:$0xff]   ;;  %v1591_v28 = vld [vmem:[%s1584_s19 + $0x18] sm:$0xff]   ;;  %v1597_v30 = vld [vmem:[%s1584_s19 + $0x10] sm:$0xff]   ;;  %v1193_v33 = vunpack.c.l.bf16 %v1307_v25  ;;  %v1194_v38 = vunpack.c.h.bf16 %v1307_v25 }
  0x18   : > { %1362 = vmatpush3.bf16.msra.mxu0 %v1445_v6  ;;  %1413 = vmatpush3.bf16.msra.mxu1 %v1445_v6  ;;  %v1306_v27 = vld [vmem:[%s1584_s19 + $0x40] sm:$0xff]   ;;  %v1594_v29 = vld [vmem:[%s1584_s19 + $0x58] sm:$0xff]   ;;  %v1600_v31 = vld [vmem:[%s1584_s19 + $0x50] sm:$0xff]   ;;  %v1157_v34 = vunpack.c.l.bf16 %v1156_v26  ;;  %v1158_v39 = vunpack.c.h.bf16 %v1156_v26  ;;  %v1169_v43 = vunpack.c.l.bf16 %v1591_v28  ;;  %v1165_v45 = vunpack.c.l.bf16 %v1597_v30 }
  0x19   : > { %1363 = vmatprep.subr.bf16.mxu0 %v1446_v7  ;;  %1406 = vmatprep.subr.bf16.mxu1 %v1446_v7  ;;  %v1189_v35 = vunpack.c.l.bf16 %v1306_v27  ;;  %v1190_v40 = vunpack.c.h.bf16 %v1306_v27  ;;  %v1608_v41 = vld [vmem:[%s1584_s19 + $0x28] sm:$0xff]   ;;  %v1201_v44 = vunpack.c.l.bf16 %v1594_v29  ;;  %v1197_v46 = vunpack.c.l.bf16 %v1600_v31  ;;  %v1618_v47 = vld [vmem:[%s1584_s19 + $0x20] sm:$0xff]  }
  0x1a   : > { %v1611_v42 = vld [vmem:[%s1584_s19 + $0x68] sm:$0xff]   ;;  %v1621_v48 = vld [vmem:[%s1584_s19 + $0x60] sm:$0xff]   ;;  %v1170_v51 = vunpack.c.h.bf16 %v1591_v28  ;;  %v1202_v52 = vunpack.c.h.bf16 %v1594_v29  ;;  %v1166_v53 = vunpack.c.h.bf16 %v1597_v30  ;;  %v1198_v54 = vunpack.c.h.bf16 %v1600_v31 }
  0x1b   : > { %v1177_v59 = vunpack.c.l.bf16 %v1608_v41  ;;  %v1209_v60 = vunpack.c.l.bf16 %v1611_v42  ;;  %v1173_v1 = vunpack.c.l.bf16 %v1618_v47  ;;  %v1205_v2 = vunpack.c.l.bf16 %v1621_v48 }
  0x1c   : > { %1364 = vmatpush3.bf16.msra.mxu0 %v1446_v7  ;;  %1414 = vmatpush3.bf16.msra.mxu1 %v1446_v7 }
  0x1d   : > { %1365 = vmatprep.subr.bf16.mxu0 %v1447_v8  ;;  %1407 = vmatprep.subr.bf16.mxu1 %v1447_v8 }
  0x20   : > { %1366 = vmatpush3.bf16.msra.mxu0 %v1447_v8  ;;  %1415 = vmatpush3.bf16.msra.mxu1 %v1447_v8 }
  0x21   : > { %1367 = vmatprep.subr.bf16.mxu0 %v1448_v9  ;;  %1408 = vmatprep.subr.bf16.mxu1 %v1448_v9 }
  0x24   : > { %1368 = vmatpush3.bf16.msra.mxu0 %v1448_v9  ;;  %1416 = vmatpush3.bf16.msra.mxu1 %v1448_v9 }
  0x27   : > { %1370 = vmatmul.mubr.bf16.vlgmr.msra.gmra.mrb[0].mxu0 %v1451_v10  ;;  %1386 = vmatmul.mubr.bf16.vlgmr.msra.gmra.mrb[0].mxu1 %v1452_v11 }
  0x28   : > { %1373 = vmatprep.mubr.bf16.mxu0 %v1453_v12  ;;  %1389 = vmatprep.mubr.bf16.mxu1 %v1454_v13 }
  0x2f   : > { %1374 = vmatmul.mubr.bf16.gmra.mrb[4].mxu0 %v1455_v14  ;;  %1390 = vmatmul.mubr.bf16.gmra.mrb[4].mxu1 %v1456_v15  ;;  %v1178_v15 = vunpack.c.h.bf16 %v1608_v41 }
  0x30   : > { %1377 = vmatprep.mubr.bf16.mxu0 %v1457_v16  ;;  %1393 = vmatprep.mubr.bf16.mxu1 %v1458_v17  ;;  %v1210_v16 = vunpack.c.h.bf16 %v1611_v42 }
  0x37   : > { %1378 = vmatmul.mubr.bf16.gmra.mrb[8].mxu0 %v1459_v18  ;;  %1394 = vmatmul.mubr.bf16.gmra.mrb[8].mxu1 %v1460_v19  ;;  %v1174_v19 = vunpack.c.h.bf16 %v1618_v47 }
  0x38   : > { %1381 = vmatprep.mubr.bf16.mxu0 %v1461_v20  ;;  %1397 = vmatprep.mubr.bf16.mxu1 %v1462_v21  ;;  %v1206_v20 = vunpack.c.h.bf16 %v1621_v48 }
  0x3f   : > { %1382 = vmatmul.mubr.bf16.gmra.mrb[12].mxu0 %v1463_v22  ;;  %1398 = vmatmul.mubr.bf16.gmra.mrb[12].mxu1 %v1464_v23 }
  0xfa   : > { %v1371_v49 = vpop.f32.mrb[0].mxu0  ;;  %v1387_v50 = vpop.f32.mrb[0].mxu1 }
  0xfb   : > { %v528_v55 = vadd.f32 %v1371_v49, %v1605_v36  ;;  %v592_v56 = vadd.f32 %v1387_v50, %v1605_v36  ;;  %v519_v57 = vpop.f32.mrb[1].mxu0  ;;  %v583_v58 = vpop.f32.mrb[1].mxu1 }
  0xfc   : > { %v520_v61 = vadd.f32 %v1605_v36, %v519_v57  ;;  %v584_v62 = vadd.f32 %v1605_v36, %v583_v58  ;;  %v1372_v63 = vpop.f32.mrb[2].mxu0  ;;  %v1388_v0 = vpop.f32.mrb[2].mxu1 }
  0xfd   : > { %v712_v3 = vadd.f32 %v1161_v32, %v528_v55  ;;  %v728_v4 = vadd.f32 %v1193_v33, %v592_v56  ;;  %v531_v5 = vadd.f32 %v1372_v63, %v1605_v36  ;;  %v595_v6 = vadd.f32 %v1388_v0, %v1605_v36  ;;  %v522_v7 = vpop.f32.mrb[3].mxu0  ;;  %v586_v8 = vpop.f32.mrb[3].mxu1  ;;  %v1657_v63 = vld [vmem:[%s1584_s19 + $0x78] sm:$0xff]  }
  0xfe   : > { %v710_v9 = vadd.f32 %v1157_v34, %v520_v61  ;;  %v726_v10 = vadd.f32 %v1189_v35, %v584_v62  ;;  %v523_v11 = vadd.f32 %v1605_v36, %v522_v7  ;;  %v587_v12 = vadd.f32 %v1605_v36, %v586_v8  ;;  %v1654_v62 = vld [vmem:[%s1584_s19 + $0x38] sm:$0xff]   ;;  %v1668_v8 = vld [vmem:[%s1584_s19 + $0x30] sm:$0xff]  }
  0xff   : > { %v713_v13 = vadd.f32 %v1162_v37, %v531_v5  ;;  %v729_v14 = vadd.f32 %v1194_v38, %v595_v6  ;;  %v744_v21 = vmax.f32 %v712_v3, 0.0  ;;  %v760_v22 = vmax.f32 %v728_v4, 0.0 }
 0x100   : > { %v711_v17 = vadd.f32 %v1158_v39, %v523_v11  ;;  %v727_v18 = vadd.f32 %v1190_v40, %v587_v12  ;;  %v742_v25 = vmax.f32 %v710_v9, 0.0  ;;  %v758_v26 = vmax.f32 %v726_v10, 0.0  ;;  %v1671_v9 = vld [vmem:[%s1584_s19 + $0x70] sm:$0xff]  }
 0x101   : > { %v745_v23 = vmax.f32 %v713_v13, 0.0  ;;  %v761_v24 = vmax.f32 %v729_v14, 0.0  ;;  %v1185_v14 = vunpack.c.l.bf16 %v1654_v62 }
 0x102   : > { %v743_v27 = vmax.f32 %v711_v17, 0.0  ;;  %v759_v32 = vmax.f32 %v727_v18, 0.0  ;;  %v1375_v33 = vpop.f32.mrb[4].mxu0  ;;  %v1391_v34 = vpop.f32.mrb[4].mxu1  ;;  %v1217_v17 = vunpack.c.l.bf16 %v1657_v63  ;;  %v1181_v18 = vunpack.c.l.bf16 %v1668_v8 }
 0x103   : > { %v1227_v35 = vpack.c.bf16 %v745_v23, %v744_v21  ;;  %v1267_v37 = vpack.c.bf16 %v761_v24, %v760_v22  ;;  %v544_v38 = vadd.f32 %v1375_v33, %v1605_v36  ;;  %v608_v39 = vadd.f32 %v1391_v34, %v1605_v36  ;;  %v535_v40 = vpop.f32.mrb[5].mxu0  ;;  %v599_v49 = vpop.f32.mrb[5].mxu1 }
 0x104   : > { %v1222_v50 = vpack.c.bf16 %v743_v27, %v742_v25  ;;  %v1262_v55 = vpack.c.bf16 %v759_v32, %v758_v26  ;;  %v536_v56 = vadd.f32 %v1605_v36, %v535_v40  ;;  %v600_v57 = vadd.f32 %v1605_v36, %v599_v49  ;;  %v1376_v58 = vpop.f32.mrb[6].mxu0  ;;  %v1392_v61 = vpop.f32.mrb[6].mxu1 }
 0x105   : > { %1314 = vst [vmem:[%s1647_s24 + $0x8] sm:$0xff] %v1227_v35   ;;  %1322 = vst [vmem:[%s1647_s24 + $0x48] sm:$0xff] %v1267_v37   ;;  %v716_v0 = vadd.f32 %v1169_v43, %v544_v38  ;;  %v732_v3 = vadd.f32 %v1201_v44, %v608_v39  ;;  %v547_v4 = vadd.f32 %v1376_v58, %v1605_v36  ;;  %v538_v6 = vpop.f32.mrb[7].mxu0  ;;  %v602_v7 = vpop.f32.mrb[7].mxu1  ;;  %v1213_v21 = vunpack.c.l.bf16 %v1671_v9 }
 0x106   : > { %v611_v5 = vadd.f32 %v1392_v61, %v1605_v36  ;;  %1223 = vst [vmem:[%s1647_s24] sm:$0xff] %v1222_v50   ;;  %1321 = vst [vmem:[%s1647_s24 + $0x40] sm:$0xff] %v1262_v55   ;;  %v714_v10 = vadd.f32 %v1165_v45, %v536_v56  ;;  %v730_v43 = vadd.f32 %v1197_v46, %v600_v57 }
 0x107   : > { %v539_v44 = vadd.f32 %v1605_v36, %v538_v6  ;;  %v603_v11 = vadd.f32 %v1605_v36, %v602_v7  ;;  %v717_v12 = vadd.f32 %v1170_v51, %v547_v4  ;;  %v748_v22 = vmax.f32 %v716_v0, 0.0 }
 0x108   : > { %v733_v13 = vadd.f32 %v1202_v52, %v611_v5  ;;  %v764_v28 = vmax.f32 %v732_v3, 0.0  ;;  %v746_v29 = vmax.f32 %v714_v10, 0.0  ;;  %v762_v52 = vmax.f32 %v730_v43, 0.0 }
 0x109   : > { %v715_v45 = vadd.f32 %v1166_v53, %v539_v44  ;;  %v731_v46 = vadd.f32 %v1198_v54, %v603_v11  ;;  %v749_v51 = vmax.f32 %v717_v12, 0.0  ;;  %v1186_v5 = vunpack.c.h.bf16 %v1654_v62 }
 0x10a   : > { %v765_v23 = vmax.f32 %v733_v13, 0.0  ;;  %v1379_v26 = vpop.f32.mrb[8].mxu0  ;;  %v1395_v30 = vpop.f32.mrb[8].mxu1  ;;  %v1218_v6 = vunpack.c.h.bf16 %v1657_v63  ;;  %v1182_v7 = vunpack.c.h.bf16 %v1668_v8  ;;  %v1214_v10 = vunpack.c.h.bf16 %v1671_v9 }
 0x10b   : > { %v747_v24 = vmax.f32 %v715_v45, 0.0  ;;  %v763_v25 = vmax.f32 %v731_v46, 0.0  ;;  %v1237_v53 = vpack.c.bf16 %v749_v51, %v748_v22  ;;  %v560_v31 = vadd.f32 %v1379_v26, %v1605_v36  ;;  %v551_v32 = vpop.f32.mrb[9].mxu0  ;;  %v615_v33 = vpop.f32.mrb[9].mxu1 }
 0x10c   : > { %v1277_v27 = vpack.c.bf16 %v765_v23, %v764_v28  ;;  %v624_v54 = vadd.f32 %v1395_v30, %v1605_v36  ;;  %v552_v37 = vadd.f32 %v1605_v36, %v551_v32  ;;  %v616_v38 = vadd.f32 %v1605_v36, %v615_v33  ;;  %v1380_v39 = vpop.f32.mrb[10].mxu0  ;;  %v1396_v40 = vpop.f32.mrb[10].mxu1 }
 0x10d   : > { %v1232_v34 = vpack.c.bf16 %v747_v24, %v746_v29  ;;  %v1272_v35 = vpack.c.bf16 %v763_v25, %v762_v52  ;;  %1316 = vst [vmem:[%s1647_s24 + $0x18] sm:$0xff] %v1237_v53   ;;  %v720_v49 = vadd.f32 %v1177_v59, %v560_v31  ;;  %v563_v55 = vadd.f32 %v1380_v39, %v1605_v36  ;;  %v554_v57 = vpop.f32.mrb[11].mxu0  ;;  %v618_v58 = vpop.f32.mrb[11].mxu1 }
 0x10e   : > { %1324 = vst [vmem:[%s1647_s24 + $0x58] sm:$0xff] %v1277_v27   ;;  %v736_v50 = vadd.f32 %v1209_v60, %v624_v54  ;;  %v627_v56 = vadd.f32 %v1396_v40, %v1605_v36  ;;  %v718_v61 = vadd.f32 %v1173_v1, %v552_v37  ;;  %v734_v0 = vadd.f32 %v1205_v2, %v616_v38 }
 0x10f   : > { %1315 = vst [vmem:[%s1647_s24 + $0x10] sm:$0xff] %v1232_v34   ;;  %1323 = vst [vmem:[%s1647_s24 + $0x50] sm:$0xff] %v1272_v35   ;;  %v555_v3 = vadd.f32 %v1605_v36, %v554_v57  ;;  %v619_v59 = vadd.f32 %v1605_v36, %v618_v58  ;;  %v721_v60 = vadd.f32 %v1178_v15, %v563_v55  ;;  %v752_v43 = vmax.f32 %v720_v49, 0.0 }
 0x110   : > { %v737_v4 = vadd.f32 %v1210_v16, %v627_v56  ;;  %v768_v41 = vmax.f32 %v736_v50, 0.0  ;;  %v750_v42 = vmax.f32 %v718_v61, 0.0  ;;  %v766_v16 = vmax.f32 %v734_v0, 0.0 }
 0x111   : > { %v719_v1 = vadd.f32 %v1174_v19, %v555_v3  ;;  %v735_v2 = vadd.f32 %v1206_v20, %v619_v59  ;;  %v753_v15 = vmax.f32 %v721_v60, 0.0 }
 0x112   : > { %v769_v44 = vmax.f32 %v737_v4, 0.0  ;;  %v1383_v13 = vpop.f32.mrb[12].mxu0  ;;  %v1399_v47 = vpop.f32.mrb[12].mxu1 }
 0x113   : > { %v751_v11 = vmax.f32 %v719_v1, 0.0  ;;  %v767_v12 = vmax.f32 %v735_v2, 0.0  ;;  %v1247_v19 = vpack.c.bf16 %v753_v15, %v752_v43  ;;  %v576_v48 = vadd.f32 %v1383_v13, %v1605_v36  ;;  %v567_v46 = vpop.f32.mrb[13].mxu0  ;;  %v631_v22 = vpop.f32.mrb[13].mxu1 }
 0x114   : > { %v1287_v45 = vpack.c.bf16 %v769_v44, %v768_v41  ;;  %v640_v20 = vadd.f32 %v1399_v47, %v1605_v36  ;;  %v568_v23 = vadd.f32 %v1605_v36, %v567_v46  ;;  %v632_v29 = vadd.f32 %v1605_v36, %v631_v22  ;;  %v1384_v52 = vpop.f32.mrb[14].mxu0  ;;  %v1400_v24 = vpop.f32.mrb[14].mxu1 }
 0x115   : > { %v1242_v28 = vpack.c.bf16 %v751_v11, %v750_v42  ;;  %v1282_v51 = vpack.c.bf16 %v767_v12, %v766_v16  ;;  %1318 = vst [vmem:[%s1647_s24 + $0x28] sm:$0xff] %v1247_v19   ;;  %v724_v25 = vadd.f32 %v1185_v14, %v576_v48  ;;  %v579_v30 = vadd.f32 %v1384_v52, %v1605_v36  ;;  %v570_v27 = vpop.f32.mrb[15].mxu0  ;;  %v634_v31 = vpop.f32.mrb[15].mxu1 }
 0x116   : > { %1326 = vst [vmem:[%s1647_s24 + $0x68] sm:$0xff] %v1287_v45   ;;  %v740_v26 = vadd.f32 %v1217_v17, %v640_v20  ;;  %v643_v53 = vadd.f32 %v1400_v24, %v1605_v36  ;;  %v722_v54 = vadd.f32 %v1181_v18, %v568_v23  ;;  %v738_v32 = vadd.f32 %v1213_v21, %v632_v29 }
 0x117   : > { %1317 = vst [vmem:[%s1647_s24 + $0x20] sm:$0xff] %v1242_v28   ;;  %1325 = vst [vmem:[%s1647_s24 + $0x60] sm:$0xff] %v1282_v51   ;;  %v571_v62 = vadd.f32 %v1605_v36, %v570_v27  ;;  %v635_v14 = vadd.f32 %v1605_v36, %v634_v31  ;;  %v725_v63 = vadd.f32 %v1186_v5, %v579_v30  ;;  %v756_v35 = vmax.f32 %v724_v25, 0.0 }
 0x118   : > { %v741_v17 = vadd.f32 %v1218_v6, %v643_v53  ;;  %v772_v37 = vmax.f32 %v740_v26, 0.0  ;;  %v754_v18 = vmax.f32 %v722_v54, 0.0  ;;  %v770_v39 = vmax.f32 %v738_v32, 0.0 }
 0x119   : > { %v723_v33 = vadd.f32 %v1182_v7, %v571_v62  ;;  %v739_v34 = vadd.f32 %v1214_v10, %v635_v14  ;;  %v757_v38 = vmax.f32 %v725_v63, 0.0 }
 0x11a   : > { %v773_v8 = vmax.f32 %v741_v17, 0.0 }
 0x11b   : > { %v755_v9 = vmax.f32 %v723_v33, 0.0  ;;  %v771_v21 = vmax.f32 %v739_v34, 0.0  ;;  %v1257_v40 = vpack.c.bf16 %v757_v38, %v756_v35 }
 0x11c   : > { %v1297_v49 = vpack.c.bf16 %v773_v8, %v772_v37 }
 0x11d   : > { %v1252_v50 = vpack.c.bf16 %v755_v9, %v754_v18  ;;  %v1292_v36 = vpack.c.bf16 %v771_v21, %v770_v39  ;;  %1320 = vst [vmem:[%s1647_s24 + $0x38] sm:$0xff] %v1257_v40  }
 0x11e   : > { %1328 = vst [vmem:[%s1647_s24 + $0x78] sm:$0xff] %v1297_v49  }
 0x11f   : > { %1319 = vst [vmem:[%s1647_s24 + $0x30] sm:$0xff] %v1252_v50   ;;  %1327 = vst [vmem:[%s1647_s24 + $0x70] sm:$0xff] %v1292_v36  }
 0x120 PF: > { %s14_s17 = sadd.s32 1, %s1487_s17   ;;  %s1763_s15 = smov %s1483_s16 }
 0x121   : > { %p11_p5 = scmp.ge.s32.totalorder %s14_s17, 4   ;;  %s1764_s16 = smov %s1766_s18 }
 0x123   :  { %13 = sbr.rel (!%p11_p5) target bundleno = 2 (0x2), region = 75 }

// kernel: _lambda_.14
= control target key start
LH: loop header
LB: loop body
LE: loop exit
PB: predicated region body
PF: predicated region fallthrough
CT: control target
= control target key end

     0   :  { %s1257_s12 = smov 0   ;;  %s1259_s13 = smov 0   ;;  %s1394_s0 = inlined_call_operand.vmem [shape: bf16[512,128], index: 0, kind: input, shape index: {}]   ;;  %s1395_s1 = inlined_call_operand.vmem [shape: bf16[128,128], index: 1, kind: input, shape index: {}]   ;;  %s1396_s2 = inlined_call_operand.vmem [shape: f32[1,128], index: 2, kind: input, shape index: {}]   ;;  %s1397_s3 = inlined_call_operand.vmem [shape: bf16[512,128], index: 3, kind: output, shape index: {}]  }
   0x1   :  { %s1261_s14 = smov 0  }
   0x2 LB: > { %s25_s15 = sadd.s32 1, %s1231_s13  ;;  %p886_p0 = scmp.ge.s32.totalorder %s1235_s14, 1  ;;  %s1235_s14 = sphi %s1261_s14, %s13_s14   ;;  %s1231_s13 = sphi %s1259_s13, %s1399_s13   ;;  %s1227_s12 = sphi %s1257_s12, %s1398_s12  }
   0x3   : > { %p27_p1 = scmp.ge.s32.totalorder %s25_s15, 2  ;;  %p169_p2 = scmp.lt.s32.totalorder %s1235_s14, 3 }
   0x5   : > { %s1401_s15 = smov (%p27_p1, %s25_s15), 0  ;;  %p170_p3 = pnand %p886_p0, %p169_p2 }
   0x6   : > { %v1189_v0 = vld [vmem:[%s1395_s1] sm:$0xff] (!%p170_p3)   ;;  %s887_s18 = sshll.u32 (!%p170_p3), %s1227_s12, 5  ;;  %v1190_v1 = vld [vmem:[%s1395_s1 + $0x8] sm:$0xff] (!%p170_p3)   ;;  %v1191_v2 = vld [vmem:[%s1395_s1 + $0x10] sm:$0xff] (!%p170_p3)  }
   0x7   : > { %173 = sbr.rel (%p170_p3) target bundleno = 285 (0x11d), region = 32  ;;  %p204_p4 = scmp.lt.s32.totalorder (!%p170_p3), %s887_s18, 63  ;;  %1101 = vmatprep.subr.bf16.mxu0 (!%p170_p3), %v1189_v0  ;;  %1149 = vmatprep.subr.bf16.mxu1 (!%p170_p3), %v1189_v0  ;;  %v1192_v3 = vld [vmem:[%s1395_s1 + $0x18] sm:$0xff] (!%p170_p3)   ;;  %v1193_v6 = vld [vmem:[%s1395_s1 + $0x20] sm:$0xff] (!%p170_p3)   ;;  %v1194_v7 = vld [vmem:[%s1395_s1 + $0x28] sm:$0xff] (!%p170_p3)  }
   0x8   : > { %1102 = vmatpush3.bf16.msra.mxu0 (!%p170_p3), %v1189_v0  ;;  %1157 = vmatpush3.bf16.msra.mxu1 (!%p170_p3), %v1189_v0  ;;  %v1195_v8 = vld [vmem:[%s1395_s1 + $0x30] sm:$0xff] (!%p170_p3)   ;;  %v1196_v9 = vld [vmem:[%s1395_s1 + $0x38] sm:$0xff] (!%p170_p3)   ;;  %v1328_v24 = vld [vmem:[%s1396_s2] ss:$0 sm:$0xff] (!%p170_p3) }
   0x9   : > { %1103 = vmatprep.subr.bf16.mxu0 (!%p170_p3), %v1190_v1  ;;  %1150 = vmatprep.subr.bf16.mxu1 (!%p170_p3), %v1190_v1 }
   0xc   : > { %1104 = vmatpush3.bf16.msra.mxu0 (!%p170_p3), %v1190_v1  ;;  %1158 = vmatpush3.bf16.msra.mxu1 (!%p170_p3), %v1190_v1 }
   0xd   : > { %1105 = vmatprep.subr.bf16.mxu0 (!%p170_p3), %v1191_v2  ;;  %1151 = vmatprep.subr.bf16.mxu1 (!%p170_p3), %v1191_v2 }
   0xe   : > { %s1403_s18 = smov (!%p204_p4, %s887_s18), 63 }
   0xf   : > { %s888_s23 = sshll.u32 %s1403_s18, 2 }
  0x10   : > { %s1292_s26 = scalar_lea.vmem %s1394_s0, %s888_s23  ;;  %1106 = vmatpush3.bf16.msra.mxu0 %v1191_v2  ;;  %1159 = vmatpush3.bf16.msra.mxu1 %v1191_v2  ;;  %s1343_s17 = scalar_lea.vmem %s1397_s3, %s888_s23 }
  0x11   : > { %v1197_v4 = vld [vmem:[%s1292_s26] sm:$0xff]   ;;  %1107 = vmatprep.subr.bf16.mxu0 %v1192_v3  ;;  %1152 = vmatprep.subr.bf16.mxu1 %v1192_v3  ;;  %v1199_v10 = vld [vmem:[%s1292_s26 + $0x8] sm:$0xff]   ;;  %v1201_v12 = vld [vmem:[%s1292_s26 + $0x10] sm:$0xff]  }
  0x12   : > { %v1198_v5 = vld [vmem:[%s1292_s26 + $0x40] sm:$0xff]   ;;  %1117 = vmatprep.mubr.bf16.mxu0 %v1197_v4  ;;  %v1200_v11 = vld [vmem:[%s1292_s26 + $0x48] sm:$0xff]   ;;  %v1202_v13 = vld [vmem:[%s1292_s26 + $0x50] sm:$0xff]  }
  0x13   : > { %1133 = vmatprep.mubr.bf16.mxu1 %v1198_v5  ;;  %v1203_v14 = vld [vmem:[%s1292_s26 + $0x18] sm:$0xff]   ;;  %v1205_v16 = vld [vmem:[%s1292_s26 + $0x20] sm:$0xff]   ;;  %v1207_v18 = vld [vmem:[%s1292_s26 + $0x28] sm:$0xff]  }
  0x14   : > { %1108 = vmatpush3.bf16.msra.mxu0 %v1192_v3  ;;  %1160 = vmatpush3.bf16.msra.mxu1 %v1192_v3  ;;  %v1204_v15 = vld [vmem:[%s1292_s26 + $0x58] sm:$0xff]   ;;  %v1206_v17 = vld [vmem:[%s1292_s26 + $0x60] sm:$0xff]   ;;  %v1208_v19 = vld [vmem:[%s1292_s26 + $0x68] sm:$0xff]  }
  0x15   : > { %1109 = vmatprep.subr.bf16.mxu0 %v1193_v6  ;;  %1153 = vmatprep.subr.bf16.mxu1 %v1193_v6  ;;  %v1209_v20 = vld [vmem:[%s1292_s26 + $0x30] sm:$0xff]   ;;  %v1211_v22 = vld [vmem:[%s1292_s26 + $0x38] sm:$0xff]  }
  0x16   : > { %v1210_v21 = vld [vmem:[%s1292_s26 + $0x70] sm:$0xff]   ;;  %v1212_v23 = vld [vmem:[%s1292_s26 + $0x78] sm:$0xff]  }
  0x18   : > { %1110 = vmatpush3.bf16.msra.mxu0 %v1193_v6  ;;  %1161 = vmatpush3.bf16.msra.mxu1 %v1193_v6 }
  0x19   : > { %1111 = vmatprep.subr.bf16.mxu0 %v1194_v7  ;;  %1154 = vmatprep.subr.bf16.mxu1 %v1194_v7 }
  0x1c   : > { %1112 = vmatpush3.bf16.msra.mxu0 %v1194_v7  ;;  %1162 = vmatpush3.bf16.msra.mxu1 %v1194_v7 }
  0x1d   : > { %1113 = vmatprep.subr.bf16.mxu0 %v1195_v8  ;;  %1155 = vmatprep.subr.bf16.mxu1 %v1195_v8 }
  0x20   : > { %1114 = vmatpush3.bf16.msra.mxu0 %v1195_v8  ;;  %1163 = vmatpush3.bf16.msra.mxu1 %v1195_v8 }
  0x21   : > { %1115 = vmatprep.subr.bf16.mxu0 %v1196_v9  ;;  %1156 = vmatprep.subr.bf16.mxu1 %v1196_v9 }
  0x24   : > { %1116 = vmatpush3.bf16.msra.mxu0 %v1196_v9  ;;  %1164 = vmatpush3.bf16.msra.mxu1 %v1196_v9 }
  0x27   : > { %1118 = vmatmul.mubr.bf16.vlgmr.msra.gmra.mrb[0].mxu0 %v1199_v10  ;;  %1134 = vmatmul.mubr.bf16.vlgmr.msra.gmra.mrb[0].mxu1 %v1200_v11 }
  0x28   : > { %1121 = vmatprep.mubr.bf16.mxu0 %v1201_v12  ;;  %1137 = vmatprep.mubr.bf16.mxu1 %v1202_v13 }
  0x2f   : > { %1122 = vmatmul.mubr.bf16.gmra.mrb[4].mxu0 %v1203_v14  ;;  %1138 = vmatmul.mubr.bf16.gmra.mrb[4].mxu1 %v1204_v15 }
  0x30   : > { %1125 = vmatprep.mubr.bf16.mxu0 %v1205_v16  ;;  %1141 = vmatprep.mubr.bf16.mxu1 %v1206_v17 }
  0x37   : > { %1126 = vmatmul.mubr.bf16.gmra.mrb[8].mxu0 %v1207_v18  ;;  %1142 = vmatmul.mubr.bf16.gmra.mrb[8].mxu1 %v1208_v19 }
  0x38   : > { %1129 = vmatprep.mubr.bf16.mxu0 %v1209_v20  ;;  %1145 = vmatprep.mubr.bf16.mxu1 %v1210_v21 }
  0x3f   : > { %1130 = vmatmul.mubr.bf16.gmra.mrb[12].mxu0 %v1211_v22  ;;  %1146 = vmatmul.mubr.bf16.gmra.mrb[12].mxu1 %v1212_v23 }
  0xfa   : > { %v1119_v25 = vpop.f32.mrb[0].mxu0  ;;  %v1135_v26 = vpop.f32.mrb[0].mxu1 }
  0xfb   : > { %v468_v27 = vadd.f32 %v1119_v25, %v1328_v24  ;;  %v532_v28 = vadd.f32 %v1135_v26, %v1328_v24  ;;  %v459_v29 = vpop.f32.mrb[1].mxu0  ;;  %v523_v30 = vpop.f32.mrb[1].mxu1 }
  0xfc   : > { %v460_v31 = vadd.f32 %v1328_v24, %v459_v29  ;;  %v524_v32 = vadd.f32 %v1328_v24, %v523_v30  ;;  %v1120_v33 = vpop.f32.mrb[2].mxu0  ;;  %v1136_v34 = vpop.f32.mrb[2].mxu1 }
  0xfd   : > { %v471_v35 = vadd.f32 %v1120_v33, %v1328_v24  ;;  %v535_v36 = vadd.f32 %v1136_v34, %v1328_v24  ;;  %v462_v37 = vpop.f32.mrb[3].mxu0  ;;  %v526_v38 = vpop.f32.mrb[3].mxu1  ;;  %v588_v41 = vmax.f32 %v468_v27, 0.0  ;;  %v604_v42 = vmax.f32 %v532_v28, 0.0 }
  0xfe   : > { %v463_v39 = vadd.f32 %v1328_v24, %v462_v37  ;;  %v527_v40 = vadd.f32 %v1328_v24, %v526_v38  ;;  %v586_v45 = vmax.f32 %v460_v31, 0.0  ;;  %v602_v46 = vmax.f32 %v524_v32, 0.0 }
  0xff   : > { %v589_v43 = vmax.f32 %v471_v35, 0.0  ;;  %v605_v44 = vmax.f32 %v535_v36, 0.0 }
 0x100   : > { %v587_v47 = vmax.f32 %v463_v39, 0.0  ;;  %v603_v48 = vmax.f32 %v527_v40, 0.0 }
 0x101   : > { %v990_v49 = vpack.c.bf16 %v589_v43, %v588_v41  ;;  %v1030_v50 = vpack.c.bf16 %v605_v44, %v604_v42 }
 0x102   : > { %v985_v51 = vpack.c.bf16 %v587_v47, %v586_v45  ;;  %v1025_v52 = vpack.c.bf16 %v603_v48, %v602_v46  ;;  %v1123_v53 = vpop.f32.mrb[4].mxu0  ;;  %v1139_v54 = vpop.f32.mrb[4].mxu1 }
 0x103   : > { %1062 = vst [vmem:[%s1343_s17 + $0x8] sm:$0xff] %v990_v49   ;;  %1070 = vst [vmem:[%s1343_s17 + $0x48] sm:$0xff] %v1030_v50   ;;  %v484_v55 = vadd.f32 %v1123_v53, %v1328_v24  ;;  %v548_v56 = vadd.f32 %v1139_v54, %v1328_v24  ;;  %v475_v57 = vpop.f32.mrb[5].mxu0  ;;  %v539_v58 = vpop.f32.mrb[5].mxu1 }
 0x104   : > { %986 = vst [vmem:[%s1343_s17] sm:$0xff] %v985_v51   ;;  %1069 = vst [vmem:[%s1343_s17 + $0x40] sm:$0xff] %v1025_v52   ;;  %v476_v59 = vadd.f32 %v1328_v24, %v475_v57  ;;  %v540_v60 = vadd.f32 %v1328_v24, %v539_v58  ;;  %v1124_v61 = vpop.f32.mrb[6].mxu0  ;;  %v1140_v62 = vpop.f32.mrb[6].mxu1 }
 0x105   : > { %v487_v63 = vadd.f32 %v1124_v61, %v1328_v24  ;;  %v551_v0 = vadd.f32 %v1140_v62, %v1328_v24  ;;  %v478_v1 = vpop.f32.mrb[7].mxu0  ;;  %v542_v2 = vpop.f32.mrb[7].mxu1  ;;  %v592_v5 = vmax.f32 %v484_v55, 0.0  ;;  %v608_v6 = vmax.f32 %v548_v56, 0.0 }
 0x106   : > { %v479_v3 = vadd.f32 %v1328_v24, %v478_v1  ;;  %v543_v4 = vadd.f32 %v1328_v24, %v542_v2  ;;  %v590_v9 = vmax.f32 %v476_v59, 0.0  ;;  %v606_v10 = vmax.f32 %v540_v60, 0.0 }
 0x107   : > { %v593_v7 = vmax.f32 %v487_v63, 0.0  ;;  %v609_v8 = vmax.f32 %v551_v0, 0.0 }
 0x108   : > { %v591_v11 = vmax.f32 %v479_v3, 0.0  ;;  %v607_v12 = vmax.f32 %v543_v4, 0.0 }
 0x109   : > { %v1000_v13 = vpack.c.bf16 %v593_v7, %v592_v5  ;;  %v1040_v14 = vpack.c.bf16 %v609_v8, %v608_v6 }
 0x10a   : > { %v995_v15 = vpack.c.bf16 %v591_v11, %v590_v9  ;;  %v1035_v16 = vpack.c.bf16 %v607_v12, %v606_v10  ;;  %v1127_v17 = vpop.f32.mrb[8].mxu0  ;;  %v1143_v18 = vpop.f32.mrb[8].mxu1 }
 0x10b   : > { %1064 = vst [vmem:[%s1343_s17 + $0x18] sm:$0xff] %v1000_v13   ;;  %1072 = vst [vmem:[%s1343_s17 + $0x58] sm:$0xff] %v1040_v14   ;;  %v500_v19 = vadd.f32 %v1127_v17, %v1328_v24  ;;  %v564_v20 = vadd.f32 %v1143_v18, %v1328_v24  ;;  %v491_v21 = vpop.f32.mrb[9].mxu0  ;;  %v555_v22 = vpop.f32.mrb[9].mxu1 }
 0x10c   : > { %1063 = vst [vmem:[%s1343_s17 + $0x10] sm:$0xff] %v995_v15   ;;  %1071 = vst [vmem:[%s1343_s17 + $0x50] sm:$0xff] %v1035_v16   ;;  %v492_v23 = vadd.f32 %v1328_v24, %v491_v21  ;;  %v556_v25 = vadd.f32 %v1328_v24, %v555_v22  ;;  %v1128_v26 = vpop.f32.mrb[10].mxu0  ;;  %v1144_v27 = vpop.f32.mrb[10].mxu1 }
 0x10d   : > { %v503_v28 = vadd.f32 %v1128_v26, %v1328_v24  ;;  %v567_v29 = vadd.f32 %v1144_v27, %v1328_v24  ;;  %v494_v30 = vpop.f32.mrb[11].mxu0  ;;  %v558_v31 = vpop.f32.mrb[11].mxu1  ;;  %v596_v34 = vmax.f32 %v500_v19, 0.0  ;;  %v612_v35 = vmax.f32 %v564_v20, 0.0 }
 0x10e   : > { %v495_v32 = vadd.f32 %v1328_v24, %v494_v30  ;;  %v559_v33 = vadd.f32 %v1328_v24, %v558_v31  ;;  %v594_v38 = vmax.f32 %v492_v23, 0.0  ;;  %v610_v39 = vmax.f32 %v556_v25, 0.0 }
 0x10f   : > { %v597_v36 = vmax.f32 %v503_v28, 0.0  ;;  %v613_v37 = vmax.f32 %v567_v29, 0.0 }
 0x110   : > { %v595_v40 = vmax.f32 %v495_v32, 0.0  ;;  %v611_v41 = vmax.f32 %v559_v33, 0.0 }
 0x111   : > { %v1010_v42 = vpack.c.bf16 %v597_v36, %v596_v34  ;;  %v1050_v43 = vpack.c.bf16 %v613_v37, %v612_v35 }
 0x112   : > { %v1005_v44 = vpack.c.bf16 %v595_v40, %v594_v38  ;;  %v1045_v45 = vpack.c.bf16 %v611_v41, %v610_v39  ;;  %v1131_v46 = vpop.f32.mrb[12].mxu0  ;;  %v1147_v47 = vpop.f32.mrb[12].mxu1 }
 0x113   : > { %1066 = vst [vmem:[%s1343_s17 + $0x28] sm:$0xff] %v1010_v42   ;;  %1074 = vst [vmem:[%s1343_s17 + $0x68] sm:$0xff] %v1050_v43   ;;  %v516_v48 = vadd.f32 %v1131_v46, %v1328_v24  ;;  %v580_v49 = vadd.f32 %v1147_v47, %v1328_v24  ;;  %v507_v50 = vpop.f32.mrb[13].mxu0  ;;  %v571_v51 = vpop.f32.mrb[13].mxu1 }
 0x114   : > { %1065 = vst [vmem:[%s1343_s17 + $0x20] sm:$0xff] %v1005_v44   ;;  %1073 = vst [vmem:[%s1343_s17 + $0x60] sm:$0xff] %v1045_v45   ;;  %v508_v52 = vadd.f32 %v1328_v24, %v507_v50  ;;  %v572_v53 = vadd.f32 %v1328_v24, %v571_v51  ;;  %v1132_v54 = vpop.f32.mrb[14].mxu0  ;;  %v1148_v55 = vpop.f32.mrb[14].mxu1 }
 0x115   : > { %v519_v56 = vadd.f32 %v1132_v54, %v1328_v24  ;;  %v583_v57 = vadd.f32 %v1148_v55, %v1328_v24  ;;  %v510_v58 = vpop.f32.mrb[15].mxu0  ;;  %v574_v59 = vpop.f32.mrb[15].mxu1  ;;  %v600_v62 = vmax.f32 %v516_v48, 0.0  ;;  %v616_v63 = vmax.f32 %v580_v49, 0.0 }
 0x116   : > { %v511_v60 = vadd.f32 %v1328_v24, %v510_v58  ;;  %v575_v61 = vadd.f32 %v1328_v24, %v574_v59  ;;  %v598_v2 = vmax.f32 %v508_v52, 0.0  ;;  %v614_v3 = vmax.f32 %v572_v53, 0.0 }
 0x117   : > { %v601_v0 = vmax.f32 %v519_v56, 0.0  ;;  %v617_v1 = vmax.f32 %v583_v57, 0.0 }
 0x118   : > { %v599_v4 = vmax.f32 %v511_v60, 0.0  ;;  %v615_v5 = vmax.f32 %v575_v61, 0.0 }
 0x119   : > { %v1020_v6 = vpack.c.bf16 %v601_v0, %v600_v62  ;;  %v1060_v7 = vpack.c.bf16 %v617_v1, %v616_v63 }
 0x11a   : > { %v1015_v8 = vpack.c.bf16 %v599_v4, %v598_v2  ;;  %v1055_v9 = vpack.c.bf16 %v615_v5, %v614_v3 }
 0x11b   : > { %1068 = vst [vmem:[%s1343_s17 + $0x38] sm:$0xff] %v1020_v6   ;;  %1076 = vst [vmem:[%s1343_s17 + $0x78] sm:$0xff] %v1060_v7  }
 0x11c   : > { %1067 = vst [vmem:[%s1343_s17 + $0x30] sm:$0xff] %v1015_v8   ;;  %1075 = vst [vmem:[%s1343_s17 + $0x70] sm:$0xff] %v1055_v9  }
 0x11d PF: > { %s13_s14 = sadd.s32 1, %s1235_s14   ;;  %s1398_s12 = smov %s1231_s13 }
 0x11e   : > { %p10_p5 = scmp.ge.s32.totalorder %s13_s14, 4   ;;  %s1399_s13 = smov %s1401_s15 }
 0x120   :  { %12 = sbr.rel (!%p10_p5) target bundleno = 2 (0x2), region = 68 }

// kernel: _lambda_.17
= control target key start
LH: loop header
LB: loop body
LE: loop exit
PB: predicated region body
PF: predicated region fallthrough
CT: control target
= control target key end

     0   :  { %s1911_s18 = smov 0   ;;  %s1913_s19 = smov 0   ;;  %s2091_s0 = inlined_call_operand.vmem [shape: bf16[512,128], index: 0, kind: input, shape index: {}]   ;;  %s2092_s1 = inlined_call_operand.vmem [shape: bf16[128,128], index: 1, kind: input, shape index: {}]   ;;  %s2093_s2 = inlined_call_operand.vmem [shape: bf16[512,128], index: 2, kind: input, shape index: {}]   ;;  %s2094_s3 = inlined_call_operand.vmem [shape: bf16[128,128], index: 3, kind: input, shape index: {}]   ;;  %s2095_s4 = inlined_call_operand.vmem [shape: f32[1,128], index: 4, kind: input, shape index: {}]   ;;  %s2096_s5 = inlined_call_operand.vmem [shape: bf16[512,128], index: 5, kind: output, shape index: {}]  }
   0x1   :  { %s1915_s20 = smov 0  }
   0x2 LB: > { %s27_s21 = sadd.s32 1, %s1875_s19  ;;  %p1392_p0 = scmp.ge.s32.totalorder %s1879_s20, 1  ;;  %s1879_s20 = sphi %s1915_s20, %s15_s20   ;;  %s1875_s19 = sphi %s1913_s19, %s2098_s19   ;;  %s1871_s18 = sphi %s1911_s18, %s2097_s18  }
   0x3   : > { %p29_p1 = scmp.ge.s32.totalorder %s27_s21, 2  ;;  %p239_p2 = scmp.lt.s32.totalorder %s1879_s20, 3 }
   0x5   : > { %s2100_s21 = smov (%p29_p1, %s27_s21), 0  ;;  %p240_p3 = pnand %p1392_p0, %p239_p2 }
   0x6   : > { %v1809_v0 = vld [vmem:[%s2094_s3] sm:$0xff] (!%p240_p3)   ;;  %s1393_s24 = sshll.u32 (!%p240_p3), %s1871_s18, 5  ;;  %v1811_v2 = vld [vmem:[%s2094_s3 + $0x8] sm:$0xff] (!%p240_p3)   ;;  %v1813_v4 = vld [vmem:[%s2094_s3 + $0x10] sm:$0xff] (!%p240_p3)  }
   0x7   : > { %243 = sbr.rel (%p240_p3) target bundleno = 320 (0x140), region = 40  ;;  %v1810_v1 = vld [vmem:[%s2092_s1] sm:$0xff] (!%p240_p3)   ;;  %1657 = vmatprep.subr.bf16.mxu1 (!%p240_p3), %v1809_v0  ;;  %p287_p4 = scmp.lt.s32.totalorder (!%p240_p3), %s1393_s24, 63  ;;  %v1812_v3 = vld [vmem:[%s2092_s1 + $0x8] sm:$0xff] (!%p240_p3)   ;;  %v1814_v5 = vld [vmem:[%s2092_s1 + $0x10] sm:$0xff] (!%p240_p3)  }
   0x8   : > { %1705 = vmatprep.subr.bf16.mxu0 (!%p240_p3), %v1810_v1  ;;  %1658 = vmatpush3.bf16.msra.mxu1 (!%p240_p3), %v1809_v0  ;;  %v1815_v6 = vld [vmem:[%s2094_s3 + $0x18] sm:$0xff] (!%p240_p3)   ;;  %v1817_v8 = vld [vmem:[%s2094_s3 + $0x20] sm:$0xff] (!%p240_p3)   ;;  %v1819_v10 = vld [vmem:[%s2094_s3 + $0x28] sm:$0xff] (!%p240_p3)  }
   0x9   : > { %1706 = vmatpush3.bf16.msra.mxu0 (!%p240_p3), %v1810_v1  ;;  %1659 = vmatprep.subr.bf16.mxu1 (!%p240_p3), %v1811_v2  ;;  %v1816_v7 = vld [vmem:[%s2092_s1 + $0x18] sm:$0xff] (!%p240_p3)   ;;  %v1818_v9 = vld [vmem:[%s2092_s1 + $0x20] sm:$0xff] (!%p240_p3)   ;;  %v1820_v11 = vld [vmem:[%s2092_s1 + $0x28] sm:$0xff] (!%p240_p3)  }
   0xa   : > { %1707 = vmatprep.subr.bf16.mxu0 (!%p240_p3), %v1812_v3  ;;  %v1821_v14 = vld [vmem:[%s2094_s3 + $0x30] sm:$0xff] (!%p240_p3)   ;;  %v1823_v16 = vld [vmem:[%s2094_s3 + $0x38] sm:$0xff] (!%p240_p3)   ;;  %v2026_v50 = vld [vmem:[%s2095_s4] ss:$0 sm:$0xff] (!%p240_p3) }
   0xb   : > { %v1822_v15 = vld [vmem:[%s2092_s1 + $0x30] sm:$0xff] (!%p240_p3)   ;;  %v1824_v17 = vld [vmem:[%s2092_s1 + $0x38] sm:$0xff] (!%p240_p3)  }
   0xc   : > { %1660 = vmatpush3.bf16.msra.mxu1 (!%p240_p3), %v1811_v2 }
   0xd   : > { %1708 = vmatpush3.bf16.msra.mxu0 (!%p240_p3), %v1812_v3  ;;  %1661 = vmatprep.subr.bf16.mxu1 (!%p240_p3), %v1813_v4 }
   0xe   : > { %s2102_s24 = smov (!%p287_p4, %s1393_s24), 63  ;;  %1709 = vmatprep.subr.bf16.mxu0 %v1814_v5 }
   0xf   : > { %s1953_s14 = sshll.u32 %s2102_s24, 2 }
  0x10   : > { %1662 = vmatpush3.bf16.msra.mxu1 %v1813_v4  ;;  %s1965_s25 = scalar_lea.vmem %s2093_s2, %s1953_s14  ;;  %s1974_s29 = scalar_lea.vmem %s2091_s0, %s1953_s14 }
  0x11   : > { %1710 = vmatpush3.bf16.msra.mxu0 %v1814_v5  ;;  %1663 = vmatprep.subr.bf16.mxu1 %v1815_v6  ;;  %v1825_v12 = vld [vmem:[%s1965_s25] sm:$0xff]   ;;  %v1827_v18 = vld [vmem:[%s1965_s25 + $0x8] sm:$0xff]   ;;  %v1829_v20 = vld [vmem:[%s1965_s25 + $0x10] sm:$0xff]   ;;  %s2036_s23 = scalar_lea.vmem %s2096_s5, %s1953_s14 }
  0x12   : > { %1711 = vmatprep.subr.bf16.mxu0 %v1816_v7  ;;  %v1826_v13 = vld [vmem:[%s1974_s29] sm:$0xff]   ;;  %1673 = vmatprep.mubr.bf16.mxu1 %v1825_v12  ;;  %v1828_v19 = vld [vmem:[%s1974_s29 + $0x8] sm:$0xff]   ;;  %v1830_v21 = vld [vmem:[%s1974_s29 + $0x10] sm:$0xff]  }
  0x13   : > { %1721 = vmatprep.mubr.bf16.mxu0 %v1826_v13  ;;  %v1831_v22 = vld [vmem:[%s1965_s25 + $0x18] sm:$0xff]   ;;  %v1833_v24 = vld [vmem:[%s1965_s25 + $0x20] sm:$0xff]   ;;  %v1835_v26 = vld [vmem:[%s1965_s25 + $0x28] sm:$0xff]  }
  0x14   : > { %1664 = vmatpush3.bf16.msra.mxu1 %v1815_v6  ;;  %v1832_v23 = vld [vmem:[%s1974_s29 + $0x18] sm:$0xff]   ;;  %v1834_v25 = vld [vmem:[%s1974_s29 + $0x20] sm:$0xff]   ;;  %v1836_v27 = vld [vmem:[%s1974_s29 + $0x28] sm:$0xff]  }
  0x15   : > { %1712 = vmatpush3.bf16.msra.mxu0 %v1816_v7  ;;  %1665 = vmatprep.subr.bf16.mxu1 %v1817_v8  ;;  %v1837_v28 = vld [vmem:[%s1965_s25 + $0x30] sm:$0xff]   ;;  %v1839_v30 = vld [vmem:[%s1965_s25 + $0x38] sm:$0xff]   ;;  %v1841_v32 = vld [vmem:[%s1965_s25 + $0x40] sm:$0xff]  }
  0x16   : > { %1713 = vmatprep.subr.bf16.mxu0 %v1818_v9  ;;  %v1838_v29 = vld [vmem:[%s1974_s29 + $0x30] sm:$0xff]   ;;  %v1840_v31 = vld [vmem:[%s1974_s29 + $0x38] sm:$0xff]   ;;  %v1842_v33 = vld [vmem:[%s1974_s29 + $0x40] sm:$0xff]  }
  0x17   : > { %v1843_v34 = vld [vmem:[%s1965_s25 + $0x48] sm:$0xff]   ;;  %v1845_v36 = vld [vmem:[%s1965_s25 + $0x50] sm:$0xff]   ;;  %v1847_v38 = vld [vmem:[%s1965_s25 + $0x58] sm:$0xff]  }
  0x18   : > { %1666 = vmatpush3.bf16.msra.mxu1 %v1817_v8  ;;  %v1844_v35 = vld [vmem:[%s1974_s29 + $0x48] sm:$0xff]   ;;  %v1846_v37 = vld [vmem:[%s1974_s29 + $0x50] sm:$0xff]   ;;  %v1848_v39 = vld [vmem:[%s1974_s29 + $0x58] sm:$0xff]  }
  0x19   : > { %1714 = vmatpush3.bf16.msra.mxu0 %v1818_v9  ;;  %1667 = vmatprep.subr.bf16.mxu1 %v1819_v10  ;;  %v1849_v40 = vld [vmem:[%s1965_s25 + $0x60] sm:$0xff]   ;;  %v1851_v42 = vld [vmem:[%s1965_s25 + $0x68] sm:$0xff]   ;;  %v1853_v44 = vld [vmem:[%s1965_s25 + $0x70] sm:$0xff]  }
  0x1a   : > { %1715 = vmatprep.subr.bf16.mxu0 %v1820_v11  ;;  %v1850_v41 = vld [vmem:[%s1974_s29 + $0x60] sm:$0xff]   ;;  %v1852_v43 = vld [vmem:[%s1974_s29 + $0x68] sm:$0xff]   ;;  %v1854_v45 = vld [vmem:[%s1974_s29 + $0x70] sm:$0xff]  }
  0x1b   : > { %v1855_v46 = vld [vmem:[%s1965_s25 + $0x78] sm:$0xff]  }
  0x1c   : > { %1668 = vmatpush3.bf16.msra.mxu1 %v1819_v10  ;;  %v1856_v47 = vld [vmem:[%s1974_s29 + $0x78] sm:$0xff]  }
  0x1d   : > { %1716 = vmatpush3.bf16.msra.mxu0 %v1820_v11  ;;  %1669 = vmatprep.subr.bf16.mxu1 %v1821_v14 }
  0x1e   : > { %1717 = vmatprep.subr.bf16.mxu0 %v1822_v15 }
  0x20   : > { %1670 = vmatpush3.bf16.msra.mxu1 %v1821_v14 }
  0x21   : > { %1718 = vmatpush3.bf16.msra.mxu0 %v1822_v15  ;;  %1671 = vmatprep.subr.bf16.mxu1 %v1823_v16 }
  0x22   : > { %1719 = vmatprep.subr.bf16.mxu0 %v1824_v17 }
  0x24   : > { %1672 = vmatpush3.bf16.msra.mxu1 %v1823_v16 }
  0x25   : > { %1720 = vmatpush3.bf16.msra.mxu0 %v1824_v17 }
  0x27   : > { %1674 = vmatmul.mubr.bf16.vlgmr.msra.gmra.mrb[0].mxu1 %v1827_v18 }
  0x28   : > { %1722 = vmatmul.mubr.bf16.vlgmr.msra.gmra.mrb[0].mxu0 %v1828_v19  ;;  %1677 = vmatprep.mubr.bf16.mxu1 %v1829_v20 }
  0x29   : > { %1725 = vmatprep.mubr.bf16.mxu0 %v1830_v21 }
  0x2f   : > { %1678 = vmatmul.mubr.bf16.gmra.mrb[4].mxu1 %v1831_v22 }
  0x30   : > { %1726 = vmatmul.mubr.bf16.gmra.mrb[4].mxu0 %v1832_v23  ;;  %1681 = vmatprep.mubr.bf16.mxu1 %v1833_v24 }
  0x31   : > { %1729 = vmatprep.mubr.bf16.mxu0 %v1834_v25 }
  0x37   : > { %1682 = vmatmul.mubr.bf16.gmra.mrb[8].mxu1 %v1835_v26 }
  0x38   : > { %1730 = vmatmul.mubr.bf16.gmra.mrb[8].mxu0 %v1836_v27  ;;  %1685 = vmatprep.mubr.bf16.mxu1 %v1837_v28 }
  0x39   : > { %1733 = vmatprep.mubr.bf16.mxu0 %v1838_v29 }
  0x3f   : > { %1686 = vmatmul.mubr.bf16.gmra.mrb[12].mxu1 %v1839_v30 }
  0x40   : > { %1734 = vmatmul.mubr.bf16.gmra.mrb[12].mxu0 %v1840_v31  ;;  %1689 = vmatprep.mubr.bf16.mxu1 %v1841_v32 }
  0x41   : > { %1737 = vmatprep.mubr.bf16.mxu0 %v1842_v33 }
  0x47   : > { %1690 = vmatmul.mubr.bf16.gmra.mrb[16].mxu1 %v1843_v34 }
  0x48   : > { %1738 = vmatmul.mubr.bf16.gmra.mrb[16].mxu0 %v1844_v35  ;;  %1693 = vmatprep.mubr.bf16.mxu1 %v1845_v36 }
  0x49   : > { %1741 = vmatprep.mubr.bf16.mxu0 %v1846_v37 }
  0x4f   : > { %1694 = vmatmul.mubr.bf16.gmra.mrb[20].mxu1 %v1847_v38 }
  0x50   : > { %1742 = vmatmul.mubr.bf16.gmra.mrb[20].mxu0 %v1848_v39  ;;  %1697 = vmatprep.mubr.bf16.mxu1 %v1849_v40 }
  0x51   : > { %1745 = vmatprep.mubr.bf16.mxu0 %v1850_v41 }
  0x57   : > { %1698 = vmatmul.mubr.bf16.gmra.mrb[24].mxu1 %v1851_v42 }
  0x58   : > { %1746 = vmatmul.mubr.bf16.gmra.mrb[24].mxu0 %v1852_v43  ;;  %1701 = vmatprep.mubr.bf16.mxu1 %v1853_v44 }
  0x59   : > { %1749 = vmatprep.mubr.bf16.mxu0 %v1854_v45 }
  0x5f   : > { %1702 = vmatmul.mubr.bf16.gmra.mrb[28].mxu1 %v1855_v46 }
  0x60   : > { %1750 = vmatmul.mubr.bf16.gmra.mrb[28].mxu0 %v1856_v47 }
  0xfa   : > { %v1675_v48 = vpop.f32.mrb[0].mxu1 }
  0xfb   : > { %v1723_v49 = vpop.f32.mrb[0].mxu0  ;;  %v593_v51 = vpop.f32.mrb[1].mxu1 }
  0xfc   : > { %v907_v52 = vadd.f32 %v1723_v49, %v1675_v48  ;;  %v898_v53 = vpop.f32.mrb[1].mxu0  ;;  %v1676_v54 = vpop.f32.mrb[2].mxu1 }
  0xfd   : > { %v899_v55 = vadd.f32 %v898_v53, %v593_v51  ;;  %v1724_v56 = vpop.f32.mrb[2].mxu0  ;;  %v596_v57 = vpop.f32.mrb[3].mxu1 }
  0xfe   : > { %v1034_v58 = vadd.f32 %v2026_v50, %v907_v52  ;;  %v910_v59 = vadd.f32 %v1724_v56, %v1676_v54  ;;  %v901_v60 = vpop.f32.mrb[3].mxu0 }
  0xff   : > { %v1032_v61 = vadd.f32 %v2026_v50, %v899_v55  ;;  %v902_v62 = vadd.f32 %v901_v60, %v596_v57 }
 0x100   : > { %v1035_v63 = vadd.f32 %v2026_v50, %v910_v59  ;;  %v1066_v1 = vmax.f32 %v1034_v58, 0.0 }
 0x101   : > { %v1033_v0 = vadd.f32 %v2026_v50, %v902_v62  ;;  %v1064_v4 = vmax.f32 %v1032_v61, 0.0 }
 0x102   : > { %v1067_v2 = vmax.f32 %v1035_v63, 0.0  ;;  %v1679_v3 = vpop.f32.mrb[4].mxu1 }
 0x103   : > { %v1065_v5 = vmax.f32 %v1033_v0, 0.0  ;;  %v1727_v6 = vpop.f32.mrb[4].mxu0  ;;  %v609_v7 = vpop.f32.mrb[5].mxu1 }
 0x104   : > { %v1522_v8 = vpack.c.bf16 %v1067_v2, %v1066_v1  ;;  %v923_v9 = vadd.f32 %v1727_v6, %v1679_v3  ;;  %v914_v10 = vpop.f32.mrb[5].mxu0  ;;  %v1680_v11 = vpop.f32.mrb[6].mxu1 }
 0x105   : > { %v1517_v12 = vpack.c.bf16 %v1065_v5, %v1064_v4  ;;  %v915_v13 = vadd.f32 %v914_v10, %v609_v7  ;;  %v1728_v14 = vpop.f32.mrb[6].mxu0  ;;  %v612_v15 = vpop.f32.mrb[7].mxu1 }
 0x106   : > { %1594 = vst [vmem:[%s2036_s23 + $0x8] sm:$0xff] %v1522_v8   ;;  %v1038_v16 = vadd.f32 %v2026_v50, %v923_v9  ;;  %v926_v17 = vadd.f32 %v1728_v14, %v1680_v11  ;;  %v917_v18 = vpop.f32.mrb[7].mxu0 }
 0x107   : > { %1518 = vst [vmem:[%s2036_s23] sm:$0xff] %v1517_v12   ;;  %v1036_v19 = vadd.f32 %v2026_v50, %v915_v13  ;;  %v918_v20 = vadd.f32 %v917_v18, %v612_v15 }
 0x108   : > { %v1039_v21 = vadd.f32 %v2026_v50, %v926_v17  ;;  %v1070_v23 = vmax.f32 %v1038_v16, 0.0 }
 0x109   : > { %v1037_v22 = vadd.f32 %v2026_v50, %v918_v20  ;;  %v1068_v26 = vmax.f32 %v1036_v19, 0.0 }
 0x10a   : > { %v1071_v24 = vmax.f32 %v1039_v21, 0.0  ;;  %v1683_v25 = vpop.f32.mrb[8].mxu1 }
 0x10b   : > { %v1069_v27 = vmax.f32 %v1037_v22, 0.0  ;;  %v1731_v28 = vpop.f32.mrb[8].mxu0  ;;  %v625_v29 = vpop.f32.mrb[9].mxu1 }
 0x10c   : > { %v1532_v30 = vpack.c.bf16 %v1071_v24, %v1070_v23  ;;  %v939_v31 = vadd.f32 %v1731_v28, %v1683_v25  ;;  %v930_v32 = vpop.f32.mrb[9].mxu0  ;;  %v1684_v33 = vpop.f32.mrb[10].mxu1 }
 0x10d   : > { %v1527_v34 = vpack.c.bf16 %v1069_v27, %v1068_v26  ;;  %v931_v35 = vadd.f32 %v930_v32, %v625_v29  ;;  %v1732_v36 = vpop.f32.mrb[10].mxu0  ;;  %v628_v37 = vpop.f32.mrb[11].mxu1 }
 0x10e   : > { %1596 = vst [vmem:[%s2036_s23 + $0x18] sm:$0xff] %v1532_v30   ;;  %v1042_v38 = vadd.f32 %v2026_v50, %v939_v31  ;;  %v942_v39 = vadd.f32 %v1732_v36, %v1684_v33  ;;  %v933_v40 = vpop.f32.mrb[11].mxu0 }
 0x10f   : > { %1595 = vst [vmem:[%s2036_s23 + $0x10] sm:$0xff] %v1527_v34   ;;  %v1040_v41 = vadd.f32 %v2026_v50, %v931_v35  ;;  %v934_v42 = vadd.f32 %v933_v40, %v628_v37 }
 0x110   : > { %v1043_v43 = vadd.f32 %v2026_v50, %v942_v39  ;;  %v1074_v45 = vmax.f32 %v1042_v38, 0.0 }
 0x111   : > { %v1041_v44 = vadd.f32 %v2026_v50, %v934_v42  ;;  %v1072_v48 = vmax.f32 %v1040_v41, 0.0 }
 0x112   : > { %v1075_v46 = vmax.f32 %v1043_v43, 0.0  ;;  %v1687_v47 = vpop.f32.mrb[12].mxu1 }
 0x113   : > { %v1073_v49 = vmax.f32 %v1041_v44, 0.0  ;;  %v1735_v51 = vpop.f32.mrb[12].mxu0  ;;  %v641_v52 = vpop.f32.mrb[13].mxu1 }
 0x114   : > { %v1542_v53 = vpack.c.bf16 %v1075_v46, %v1074_v45  ;;  %v955_v54 = vadd.f32 %v1735_v51, %v1687_v47  ;;  %v946_v55 = vpop.f32.mrb[13].mxu0  ;;  %v1688_v56 = vpop.f32.mrb[14].mxu1 }
 0x115   : > { %v1537_v57 = vpack.c.bf16 %v1073_v49, %v1072_v48  ;;  %v947_v58 = vadd.f32 %v946_v55, %v641_v52  ;;  %v1736_v59 = vpop.f32.mrb[14].mxu0  ;;  %v644_v60 = vpop.f32.mrb[15].mxu1 }
 0x116   : > { %1598 = vst [vmem:[%s2036_s23 + $0x28] sm:$0xff] %v1542_v53   ;;  %v1046_v61 = vadd.f32 %v2026_v50, %v955_v54  ;;  %v958_v62 = vadd.f32 %v1736_v59, %v1688_v56  ;;  %v949_v63 = vpop.f32.mrb[15].mxu0 }
 0x117   : > { %1597 = vst [vmem:[%s2036_s23 + $0x20] sm:$0xff] %v1537_v57   ;;  %v1044_v0 = vadd.f32 %v2026_v50, %v947_v58  ;;  %v950_v1 = vadd.f32 %v949_v63, %v644_v60 }
 0x118   : > { %v1047_v2 = vadd.f32 %v2026_v50, %v958_v62  ;;  %v1078_v4 = vmax.f32 %v1046_v61, 0.0 }
 0x119   : > { %v1045_v3 = vadd.f32 %v2026_v50, %v950_v1  ;;  %v1076_v7 = vmax.f32 %v1044_v0, 0.0 }
 0x11a   : > { %v1079_v5 = vmax.f32 %v1047_v2, 0.0  ;;  %v1691_v6 = vpop.f32.mrb[16].mxu1 }
 0x11b   : > { %v1077_v8 = vmax.f32 %v1045_v3, 0.0  ;;  %v1739_v9 = vpop.f32.mrb[16].mxu0  ;;  %v657_v10 = vpop.f32.mrb[17].mxu1 }
 0x11c   : > { %v1552_v11 = vpack.c.bf16 %v1079_v5, %v1078_v4  ;;  %v971_v12 = vadd.f32 %v1739_v9, %v1691_v6  ;;  %v962_v13 = vpop.f32.mrb[17].mxu0  ;;  %v1692_v14 = vpop.f32.mrb[18].mxu1 }
 0x11d   : > { %v1547_v15 = vpack.c.bf16 %v1077_v8, %v1076_v7  ;;  %v963_v16 = vadd.f32 %v962_v13, %v657_v10  ;;  %v1740_v17 = vpop.f32.mrb[18].mxu0  ;;  %v660_v18 = vpop.f32.mrb[19].mxu1 }
 0x11e   : > { %1600 = vst [vmem:[%s2036_s23 + $0x38] sm:$0xff] %v1552_v11   ;;  %v1050_v19 = vadd.f32 %v2026_v50, %v971_v12  ;;  %v974_v20 = vadd.f32 %v1740_v17, %v1692_v14  ;;  %v965_v21 = vpop.f32.mrb[19].mxu0 }
 0x11f   : > { %1599 = vst [vmem:[%s2036_s23 + $0x30] sm:$0xff] %v1547_v15   ;;  %v1048_v22 = vadd.f32 %v2026_v50, %v963_v16  ;;  %v966_v23 = vadd.f32 %v965_v21, %v660_v18 }
 0x120   : > { %v1051_v24 = vadd.f32 %v2026_v50, %v974_v20  ;;  %v1082_v26 = vmax.f32 %v1050_v19, 0.0 }
 0x121   : > { %v1049_v25 = vadd.f32 %v2026_v50, %v966_v23  ;;  %v1080_v29 = vmax.f32 %v1048_v22, 0.0 }
 0x122   : > { %v1083_v27 = vmax.f32 %v1051_v24, 0.0  ;;  %v1695_v28 = vpop.f32.mrb[20].mxu1 }
 0x123   : > { %v1081_v30 = vmax.f32 %v1049_v25, 0.0  ;;  %v1743_v31 = vpop.f32.mrb[20].mxu0  ;;  %v673_v32 = vpop.f32.mrb[21].mxu1 }
 0x124   : > { %v1562_v33 = vpack.c.bf16 %v1083_v27, %v1082_v26  ;;  %v987_v34 = vadd.f32 %v1743_v31, %v1695_v28  ;;  %v978_v35 = vpop.f32.mrb[21].mxu0  ;;  %v1696_v36 = vpop.f32.mrb[22].mxu1 }
 0x125   : > { %v1557_v37 = vpack.c.bf16 %v1081_v30, %v1080_v29  ;;  %v979_v38 = vadd.f32 %v978_v35, %v673_v32  ;;  %v1744_v39 = vpop.f32.mrb[22].mxu0  ;;  %v676_v40 = vpop.f32.mrb[23].mxu1 }
 0x126   : > { %1602 = vst [vmem:[%s2036_s23 + $0x48] sm:$0xff] %v1562_v33   ;;  %v1054_v41 = vadd.f32 %v2026_v50, %v987_v34  ;;  %v990_v42 = vadd.f32 %v1744_v39, %v1696_v36  ;;  %v981_v43 = vpop.f32.mrb[23].mxu0 }
 0x127   : > { %1601 = vst [vmem:[%s2036_s23 + $0x40] sm:$0xff] %v1557_v37   ;;  %v1052_v44 = vadd.f32 %v2026_v50, %v979_v38  ;;  %v982_v45 = vadd.f32 %v981_v43, %v676_v40 }
 0x128   : > { %v1055_v46 = vadd.f32 %v2026_v50, %v990_v42  ;;  %v1086_v48 = vmax.f32 %v1054_v41, 0.0 }
 0x129   : > { %v1053_v47 = vadd.f32 %v2026_v50, %v982_v45  ;;  %v1084_v52 = vmax.f32 %v1052_v44, 0.0 }
 0x12a   : > { %v1087_v49 = vmax.f32 %v1055_v46, 0.0  ;;  %v1699_v51 = vpop.f32.mrb[24].mxu1 }
 0x12b   : > { %v1085_v53 = vmax.f32 %v1053_v47, 0.0  ;;  %v1747_v54 = vpop.f32.mrb[24].mxu0  ;;  %v689_v55 = vpop.f32.mrb[25].mxu1 }
 0x12c   : > { %v1572_v56 = vpack.c.bf16 %v1087_v49, %v1086_v48  ;;  %v1003_v57 = vadd.f32 %v1747_v54, %v1699_v51  ;;  %v994_v58 = vpop.f32.mrb[25].mxu0  ;;  %v1700_v59 = vpop.f32.mrb[26].mxu1 }
 0x12d   : > { %v1567_v60 = vpack.c.bf16 %v1085_v53, %v1084_v52  ;;  %v995_v61 = vadd.f32 %v994_v58, %v689_v55  ;;  %v1748_v62 = vpop.f32.mrb[26].mxu0  ;;  %v692_v63 = vpop.f32.mrb[27].mxu1 }
 0x12e   : > { %1604 = vst [vmem:[%s2036_s23 + $0x58] sm:$0xff] %v1572_v56   ;;  %v1058_v0 = vadd.f32 %v2026_v50, %v1003_v57  ;;  %v1006_v1 = vadd.f32 %v1748_v62, %v1700_v59  ;;  %v997_v2 = vpop.f32.mrb[27].mxu0 }
 0x12f   : > { %1603 = vst [vmem:[%s2036_s23 + $0x50] sm:$0xff] %v1567_v60   ;;  %v1056_v3 = vadd.f32 %v2026_v50, %v995_v61  ;;  %v998_v4 = vadd.f32 %v997_v2, %v692_v63 }
 0x130   : > { %v1059_v5 = vadd.f32 %v2026_v50, %v1006_v1  ;;  %v1090_v7 = vmax.f32 %v1058_v0, 0.0 }
 0x131   : > { %v1057_v6 = vadd.f32 %v2026_v50, %v998_v4  ;;  %v1088_v10 = vmax.f32 %v1056_v3, 0.0 }
 0x132   : > { %v1091_v8 = vmax.f32 %v1059_v5, 0.0  ;;  %v1703_v9 = vpop.f32.mrb[28].mxu1 }
 0x133   : > { %v1089_v11 = vmax.f32 %v1057_v6, 0.0  ;;  %v1751_v12 = vpop.f32.mrb[28].mxu0  ;;  %v705_v13 = vpop.f32.mrb[29].mxu1 }
 0x134   : > { %v1582_v14 = vpack.c.bf16 %v1091_v8, %v1090_v7  ;;  %v1019_v15 = vadd.f32 %v1751_v12, %v1703_v9  ;;  %v1010_v16 = vpop.f32.mrb[29].mxu0  ;;  %v1704_v17 = vpop.f32.mrb[30].mxu1 }
 0x135   : > { %v1577_v18 = vpack.c.bf16 %v1089_v11, %v1088_v10  ;;  %v1011_v19 = vadd.f32 %v1010_v16, %v705_v13  ;;  %v1752_v20 = vpop.f32.mrb[30].mxu0  ;;  %v708_v21 = vpop.f32.mrb[31].mxu1 }
 0x136   : > { %1606 = vst [vmem:[%s2036_s23 + $0x68] sm:$0xff] %v1582_v14   ;;  %v1062_v22 = vadd.f32 %v2026_v50, %v1019_v15  ;;  %v1022_v23 = vadd.f32 %v1752_v20, %v1704_v17  ;;  %v1013_v24 = vpop.f32.mrb[31].mxu0 }
 0x137   : > { %1605 = vst [vmem:[%s2036_s23 + $0x60] sm:$0xff] %v1577_v18   ;;  %v1060_v25 = vadd.f32 %v2026_v50, %v1011_v19  ;;  %v1014_v26 = vadd.f32 %v1013_v24, %v708_v21 }
 0x138   : > { %v1063_v27 = vadd.f32 %v2026_v50, %v1022_v23  ;;  %v1094_v29 = vmax.f32 %v1062_v22, 0.0 }
 0x139   : > { %v1061_v28 = vadd.f32 %v2026_v50, %v1014_v26  ;;  %v1092_v31 = vmax.f32 %v1060_v25, 0.0 }
 0x13a   : > { %v1095_v30 = vmax.f32 %v1063_v27, 0.0 }
 0x13b   : > { %v1093_v32 = vmax.f32 %v1061_v28, 0.0 }
 0x13c   : > { %v1592_v33 = vpack.c.bf16 %v1095_v30, %v1094_v29 }
 0x13d   : > { %v1587_v34 = vpack.c.bf16 %v1093_v32, %v1092_v31 }
 0x13e   : > { %1608 = vst [vmem:[%s2036_s23 + $0x78] sm:$0xff] %v1592_v33  }
 0x13f   : > { %1607 = vst [vmem:[%s2036_s23 + $0x70] sm:$0xff] %v1587_v34  }
 0x140 PF: > { %s15_s20 = sadd.s32 1, %s1879_s20   ;;  %s2097_s18 = smov %s1875_s19 }
 0x141   : > { %p12_p5 = scmp.ge.s32.totalorder %s15_s20, 4   ;;  %s2098_s19 = smov %s2100_s21 }
 0x143   :  { %14 = sbr.rel (!%p12_p5) target bundleno = 2 (0x2), region = 82 }

// kernel: _lambda_.11
= control target key start
LH: loop header
LB: loop body
LE: loop exit
PB: predicated region body
PF: predicated region fallthrough
CT: control target
= control target key end

     0   :  { %s4394_s12 = smov 0   ;;  %s4396_s13 = smov 0   ;;  %s5147_s0 = inlined_call_operand.vmem [shape: bf16[2,576,128], index: 0, kind: input, shape index: {}]   ;;  %s5148_s1 = inlined_call_operand.vmem [shape: bf16[3,3,128,128], index: 1, kind: input, shape index: {}]   ;;  %s5149_s2 = inlined_call_operand.vmem [shape: f32[1,128], index: 2, kind: input, shape index: {}]   ;;  %s5150_s3 = inlined_call_operand.vmem [shape: bf16[2,16,16,128], index: 3, kind: output, shape index: {}]  }
   0x1   :  { %s4398_s14 = smov 0   ;;  %s4400_s15 = smov 0  }
   0x2   :  { %s4402_s16 = smov 0  }
   0x3 LB: > { %s28_s17 = sadd.s32 1, %s4364_s14  ;;  %s32_s18 = sadd.s32 1, %s4368_s15  ;;  %s4372_s16 = sphi %s4402_s16, %s13_s16   ;;  %s4368_s15 = sphi %s4400_s15, %s5154_s15   ;;  %s4364_s14 = sphi %s4398_s14, %s5153_s14   ;;  %s4360_s13 = sphi %s4396_s13, %s5152_s13   ;;  %s4356_s12 = sphi %s4394_s12, %s5151_s12  }
   0x4   : > { %p30_p0 = scmp.ge.s32.totalorder %s28_s17, 2  ;;  %p3027_p1 = scmp.ge.s32.totalorder %s4372_s16, 1 }
   0x5   : > { %p177_p2 = scmp.lt.s32.totalorder %s4372_s16, 5 }
   0x6   : > { %s5156_s17 = smov (%p30_p0, %s28_s17), 0  ;;  %s5158_s18 = smov (!%p30_p0, %s32_s18), %s4368_s15 }
   0x7   : > { %p178_p3 = pnand %p3027_p1, %p177_p2  ;;  %p34_p4 = scmp.ge.s32.totalorder %s5158_s18, 2 }
   0x8   : > { %v4214_v0 = vld [vmem:[%s5148_s1 + $0xc0] sm:$0xff] (!%p178_p3)   ;;  %p216_p5 = scmp.lt.s32.totalorder (!%p178_p3), %s4360_s13, 1  ;;  %v4215_v1 = vld [vmem:[%s5148_s1 + $0xc8] sm:$0xff] (!%p178_p3)   ;;  %s4433_s23 = sshll.u32 (!%p178_p3), %s4356_s12, 8  ;;  %v4216_v2 = vld [vmem:[%s5148_s1 + $0xd0] sm:$0xff] (!%p178_p3)  }
   0x9   : > { %s5160_s18 = smov (%p34_p4, %s5158_s18), 0  ;;  %181 = sbr.rel (%p178_p3) target bundleno = 552 (0x228), region = 32 }
   0xa   : > { %3597 = vmatprep.subr.bf16.mxu0 (!%p178_p3), %v4214_v0  ;;  %4029 = vmatprep.subr.bf16.mxu1 (!%p178_p3), %v4214_v0  ;;  %s296_s24 = sadd.s32 (!%p178_p3), 32, %s4433_s23  ;;  %v4217_v3 = vld [vmem:[%s5148_s1 + $0xd8] sm:$0xff] (!%p178_p3)   ;;  %v4218_v6 = vld [vmem:[%s5148_s1 + $0xe0] sm:$0xff] (!%p178_p3)   ;;  %v4219_v7 = vld [vmem:[%s5148_s1 + $0xe8] sm:$0xff] (!%p178_p3)   ;;  %s928_s7 = sadd.s32 (!%p178_p3), 64, %s4433_s23 }
   0xb   : > { %3598 = vmatpush3.bf16.msra.mxu0 (!%p178_p3), %v4214_v0  ;;  %4037 = vmatpush3.bf16.msra.mxu1 (!%p178_p3), %v4214_v0  ;;  %s297_s28 = sshra.s32 (!%p178_p3), %s296_s24, 3  ;;  %v4220_v8 = vld [vmem:[%s5148_s1 + $0xf0] sm:$0xff] (!%p178_p3)   ;;  %v4221_v9 = vld [vmem:[%s5148_s1 + $0xf8] sm:$0xff] (!%p178_p3)   ;;  %v4226_v10 = vld [vmem:[%s5148_s1] sm:$0xff] (!%p178_p3)   ;;  %s244_s9 = sshra.s32 (!%p178_p3), %s4433_s23, 3 }
   0xc   : > { %3599 = vmatprep.subr.bf16.mxu0 (!%p178_p3), %v4215_v1  ;;  %4030 = vmatprep.subr.bf16.mxu1 (!%p178_p3), %v4215_v1  ;;  %s3035_s5 = sshll.u32 (!%p178_p3), %s297_s28, 2  ;;  %v4227_v12 = vld [vmem:[%s5148_s1 + $0x180] sm:$0xff] (!%p178_p3)   ;;  %v4228_v14 = vld [vmem:[%s5148_s1 + $0x8] sm:$0xff] (!%p178_p3)   ;;  %s929_s10 = sshra.s32 (!%p178_p3), %s928_s7, 3  ;;  %v4234_v18 = vld [vmem:[%s5148_s1 + $0x10] sm:$0xff] (!%p178_p3)  }
   0xd   : > { %v4229_v15 = vld [vmem:[%s5148_s1 + $0x188] sm:$0xff] (!%p178_p3)   ;;  %v4235_v20 = vld [vmem:[%s5148_s1 + $0x190] sm:$0xff] (!%p178_p3)   ;;  %s3034_s21 = sshll.u32 (!%p178_p3), %s244_s9, 2  ;;  %s3100_s22 = sshll.u32 (!%p178_p3), %s929_s10, 2  ;;  %v4236_v22 = vld [vmem:[%s5148_s1 + $0x18] sm:$0xff] (!%p178_p3)  }
   0xe   : > { %v4237_v23 = vld [vmem:[%s5148_s1 + $0x198] sm:$0xff] (!%p178_p3)   ;;  %v4242_v26 = vld [vmem:[%s5148_s1 + $0x20] sm:$0xff] (!%p178_p3)   ;;  %v4244_v30 = vld [vmem:[%s5148_s1 + $0x28] sm:$0xff] (!%p178_p3)  }
   0xf   : > { %3600 = vmatpush3.bf16.msra.mxu0 (!%p178_p3), %v4215_v1  ;;  %4038 = vmatpush3.bf16.msra.mxu1 (!%p178_p3), %v4215_v1  ;;  %v4243_v28 = vld [vmem:[%s5148_s1 + $0x1a0] sm:$0xff] (!%p178_p3)   ;;  %v4245_v31 = vld [vmem:[%s5148_s1 + $0x1a8] sm:$0xff] (!%p178_p3)   ;;  %v4250_v34 = vld [vmem:[%s5148_s1 + $0x30] sm:$0xff] (!%p178_p3)  }
  0x10   : > { %s5162_s13 = smov (!%p216_p5, %s4360_s13), 1  ;;  %3601 = vmatprep.subr.bf16.mxu0 %v4216_v2  ;;  %4031 = vmatprep.subr.bf16.mxu1 %v4216_v2  ;;  %v4251_v36 = vld [vmem:[%s5148_s1 + $0x1b0] sm:$0xff]   ;;  %v4252_v38 = vld [vmem:[%s5148_s1 + $0x38] sm:$0xff]   ;;  %v4258_v42 = vld [vmem:[%s5148_s1 + $0x100] sm:$0xff]  }
  0x11   : > { %s4173_s27 = smul.u32 288, %s5162_s13  ;;  %v4253_v39 = vld [vmem:[%s5148_s1 + $0x1b8] sm:$0xff]   ;;  %v4259_v44 = vld [vmem:[%s5148_s1 + $0x140] sm:$0xff]   ;;  %v4264_v48 = vld [vmem:[%s5148_s1 + $0x108] sm:$0xff]  }
  0x12   : > { %v4265_v49 = vld [vmem:[%s5148_s1 + $0x148] sm:$0xff]   ;;  %v4270_v50 = vld [vmem:[%s5148_s1 + $0x110] sm:$0xff]   ;;  %v4276_v56 = vld [vmem:[%s5148_s1 + $0x118] sm:$0xff]  }
  0x13   : > { %s4445_s4 = scalar_lea.vmem %s5147_s0, %s4173_s27  ;;  %3602 = vmatpush3.bf16.msra.mxu0 %v4216_v2  ;;  %4039 = vmatpush3.bf16.msra.mxu1 %v4216_v2  ;;  %v4271_v52 = vld [vmem:[%s5148_s1 + $0x150] sm:$0xff]   ;;  %v4277_v57 = vld [vmem:[%s5148_s1 + $0x158] sm:$0xff]   ;;  %v4282_v60 = vld [vmem:[%s5148_s1 + $0x120] sm:$0xff]   ;;  %s3031_s27 = sshll.u32 %s5162_s13, 5 }
  0x14   : > { %s4451_s8 = scalar_lea.vmem %s4445_s4, %s3035_s5  ;;  %3603 = vmatprep.subr.bf16.mxu0 %v4217_v3  ;;  %4032 = vmatprep.subr.bf16.mxu1 %v4217_v3  ;;  %s4522_s28 = scalar_lea.vmem %s4445_s4, %s3034_s21  ;;  %v4283_v61 = vld [vmem:[%s5148_s1 + $0x160] sm:$0xff]   ;;  %v4288_v0 = vld [vmem:[%s5148_s1 + $0x128] sm:$0xff]  }
  0x15   : > { %v4454_v4 = vld [vmem:[%s4451_s8] sm:$0xff]   ;;  %v4477_v11 = vld [vmem:[%s4451_s8 + $0x8] sm:$0xff]   ;;  %v4493_v16 = vld [vmem:[%s4451_s8 + $0x10] sm:$0xff]   ;;  %s4528_s29 = scalar_lea.vmem %s4445_s4, %s3100_s22 }
  0x16   : > { %v4457_v5 = vld [vmem:[%s4451_s8 + $0x40] sm:$0xff]   ;;  %3613 = vmatprep.mubr.bf16.mxu0 %v4454_v4  ;;  %v4483_v13 = vld [vmem:[%s4451_s8 + $0x48] sm:$0xff]   ;;  %v4496_v17 = vld [vmem:[%s4451_s8 + $0x50] sm:$0xff]  }
  0x17   : > { %3629 = vmatprep.mubr.bf16.mxu1 %v4457_v5  ;;  %3604 = vmatpush3.bf16.msra.mxu0 %v4217_v3  ;;  %v4505_v19 = vld [vmem:[%s4451_s8 + $0x18] sm:$0xff]   ;;  %v4525_v24 = vld [vmem:[%s4451_s8 + $0x20] sm:$0xff]   ;;  %v4539_v27 = vld [vmem:[%s4451_s8 + $0x28] sm:$0xff]  }
  0x18   : > { %4040 = vmatpush3.bf16.msra.mxu1 %v4217_v3  ;;  %3605 = vmatprep.subr.bf16.mxu0 %v4218_v6  ;;  %v4513_v21 = vld [vmem:[%s4451_s8 + $0x58] sm:$0xff]   ;;  %v4531_v25 = vld [vmem:[%s4451_s8 + $0x60] sm:$0xff]   ;;  %v4547_v29 = vld [vmem:[%s4451_s8 + $0x68] sm:$0xff]  }
  0x19   : > { %4033 = vmatprep.subr.bf16.mxu1 %v4218_v6  ;;  %v4556_v32 = vld [vmem:[%s4451_s8 + $0x30] sm:$0xff]   ;;  %v4567_v35 = vld [vmem:[%s4451_s8 + $0x38] sm:$0xff]   ;;  %v4584_v40 = vld [vmem:[%s4522_s28] sm:$0xff]  }
  0x1a   : > { %v4559_v33 = vld [vmem:[%s4451_s8 + $0x70] sm:$0xff]   ;;  %v4575_v37 = vld [vmem:[%s4451_s8 + $0x78] sm:$0xff]   ;;  %v4587_v41 = vld [vmem:[%s4528_s29] sm:$0xff]   ;;  %s3029_s8 = sshll.u32 %s4356_s12, 3 }
  0x1b   : > { %3606 = vmatpush3.bf16.msra.mxu0 %v4218_v6  ;;  %v4595_v43 = vld [vmem:[%s4522_s28 + $0x8] sm:$0xff]   ;;  %v4606_v46 = vld [vmem:[%s4522_s28 + $0x10] sm:$0xff]   ;;  %v4625_v51 = vld [vmem:[%s4522_s28 + $0x18] sm:$0xff]   ;;  %p231_p6 = scmp.lt.s32.totalorder %s3029_s8, 15 }
  0x1c   : > { %4041 = vmatpush3.bf16.msra.mxu1 %v4218_v6  ;;  %3607 = vmatprep.subr.bf16.mxu0 %v4219_v7  ;;  %v4603_v45 = vld [vmem:[%s4528_s29 + $0x8] sm:$0xff]   ;;  %v4609_v47 = vld [vmem:[%s4528_s29 + $0x10] sm:$0xff]   ;;  %v4631_v53 = vld [vmem:[%s4528_s29 + $0x18] sm:$0xff]  }
  0x1d   : > { %4034 = vmatprep.subr.bf16.mxu1 %v4219_v7  ;;  %v4634_v54 = vld [vmem:[%s4522_s28 + $0x20] sm:$0xff]   ;;  %v4650_v58 = vld [vmem:[%s4522_s28 + $0x28] sm:$0xff]   ;;  %v4662_v62 = vld [vmem:[%s4522_s28 + $0x30] sm:$0xff]   ;;  %s5164_s8 = smov (!%p231_p6, %s3029_s8), 15 }
  0x1e   : > { %v4637_v55 = vld [vmem:[%s4528_s29 + $0x20] sm:$0xff]   ;;  %v4653_v59 = vld [vmem:[%s4528_s29 + $0x28] sm:$0xff]   ;;  %v4665_v63 = vld [vmem:[%s4528_s29 + $0x30] sm:$0xff]   ;;  %s3030_s12 = sshll.u32 %s5164_s8, 1 }
  0x1f   : > { %3608 = vmatpush3.bf16.msra.mxu0 %v4219_v7  ;;  %v4289_v1 = vld [vmem:[%s5148_s1 + $0x168] sm:$0xff]   ;;  %v4678_v2 = vld [vmem:[%s4522_s28 + $0x38] sm:$0xff]   ;;  %v4294_v6 = vld [vmem:[%s5148_s1 + $0x130] sm:$0xff]   ;;  %s238_s30 = sadd.s32 %s3031_s27, %s3030_s12 }
  0x20   : > { %4042 = vmatpush3.bf16.msra.mxu1 %v4219_v7  ;;  %3609 = vmatprep.subr.bf16.mxu0 %v4220_v8  ;;  %v4681_v3 = vld [vmem:[%s4528_s29 + $0x38] sm:$0xff]   ;;  %v4295_v7 = vld [vmem:[%s5148_s1 + $0x170] sm:$0xff]   ;;  %s3032_s13 = sshll.u32 %s238_s30, 2 }
  0x21   : > { %4035 = vmatprep.subr.bf16.mxu1 %v4220_v8  ;;  %s5038_s6 = scalar_lea.vmem %s5150_s3, %s3032_s13 }
  0x23   : > { %3610 = vmatpush3.bf16.msra.mxu0 %v4220_v8 }
  0x24   : > { %4043 = vmatpush3.bf16.msra.mxu1 %v4220_v8  ;;  %3611 = vmatprep.subr.bf16.mxu0 %v4221_v9  ;;  %v4690_v8 = vld [vmem:[%s4522_s28 + $0x40] sm:$0xff]  }
  0x25   : > { %4036 = vmatprep.subr.bf16.mxu1 %v4221_v9 }
  0x27   : > { %3612 = vmatpush3.bf16.msra.mxu0 %v4221_v9 }
  0x28   : > { %4044 = vmatpush3.bf16.msra.mxu1 %v4221_v9  ;;  %3693 = vmatprep.subr.bf16.mxu0 %v4227_v12  ;;  %v4693_v9 = vld [vmem:[%s4528_s29 + $0x40] sm:$0xff]  }
  0x29   : > { %3645 = vmatprep.subr.bf16.mxu1 %v4226_v10 }
  0x2a   : > { %3614 = vmatmul.mubr.bf16.vlgmr.msra.gmra.mrb[0].mxu0 %v4477_v11 }
  0x2b   : > { %3630 = vmatmul.mubr.bf16.vlgmr.msra.gmra.mrb[0].mxu1 %v4483_v13  ;;  %3694 = vmatpush3.bf16.msra.mxu0 %v4227_v12  ;;  %v4301_v12 = vld [vmem:[%s5148_s1 + $0x178] sm:$0xff]  }
  0x2c   : > { %3646 = vmatpush3.bf16.msra.mxu1 %v4226_v10  ;;  %3695 = vmatprep.subr.bf16.mxu0 %v4229_v15  ;;  %v4300_v10 = vld [vmem:[%s5148_s1 + $0x138] sm:$0xff]  }
  0x2d   : > { %3647 = vmatprep.subr.bf16.mxu1 %v4228_v14  ;;  %3617 = vmatprep.mubr.bf16.mxu0 %v4493_v16 }
  0x2e   : > { %3633 = vmatprep.mubr.bf16.mxu1 %v4496_v17 }
  0x2f   : > { %3696 = vmatpush3.bf16.msra.mxu0 %v4229_v15  ;;  %v4709_v15 = vld [vmem:[%s4528_s29 + $0x48] sm:$0xff]  }
  0x30   : > { %3648 = vmatpush3.bf16.msra.mxu1 %v4228_v14  ;;  %3697 = vmatprep.subr.bf16.mxu0 %v4235_v20  ;;  %v4706_v14 = vld [vmem:[%s4522_s28 + $0x48] sm:$0xff]  }
  0x31   : > { %3649 = vmatprep.subr.bf16.mxu1 %v4234_v18 }
  0x32   : > { %3618 = vmatmul.mubr.bf16.gmra.mrb[4].mxu0 %v4505_v19 }
  0x33   : > { %3634 = vmatmul.mubr.bf16.gmra.mrb[4].mxu1 %v4513_v21  ;;  %3698 = vmatpush3.bf16.msra.mxu0 %v4235_v20  ;;  %v4303_v20 = vld [vmem:[%s5148_s1 + $0x80] sm:$0xff]  }
  0x34   : > { %3650 = vmatpush3.bf16.msra.mxu1 %v4234_v18  ;;  %3699 = vmatprep.subr.bf16.mxu0 %v4237_v23  ;;  %v4302_v18 = vld [vmem:[%s5148_s1 + $0x40] sm:$0xff]  }
  0x35   : > { %3651 = vmatprep.subr.bf16.mxu1 %v4236_v22  ;;  %3621 = vmatprep.mubr.bf16.mxu0 %v4525_v24 }
  0x36   : > { %3637 = vmatprep.mubr.bf16.mxu1 %v4531_v25 }
  0x37   : > { %3700 = vmatpush3.bf16.msra.mxu0 %v4237_v23  ;;  %v4721_v23 = vld [vmem:[%s4528_s29 + $0x50] sm:$0xff]  }
  0x38   : > { %3652 = vmatpush3.bf16.msra.mxu1 %v4236_v22  ;;  %3701 = vmatprep.subr.bf16.mxu0 %v4243_v28  ;;  %v4718_v22 = vld [vmem:[%s4522_s28 + $0x50] sm:$0xff]  }
  0x39   : > { %3653 = vmatprep.subr.bf16.mxu1 %v4242_v26 }
  0x3a   : > { %3622 = vmatmul.mubr.bf16.gmra.mrb[8].mxu0 %v4539_v27 }
  0x3b   : > { %3638 = vmatmul.mubr.bf16.gmra.mrb[8].mxu1 %v4547_v29  ;;  %3702 = vmatpush3.bf16.msra.mxu0 %v4243_v28  ;;  %v4731_v28 = vld [vmem:[%s4528_s29 + $0x58] sm:$0xff]  }
  0x3c   : > { %3654 = vmatpush3.bf16.msra.mxu1 %v4242_v26  ;;  %3703 = vmatprep.subr.bf16.mxu0 %v4245_v31  ;;  %v4728_v26 = vld [vmem:[%s4522_s28 + $0x58] sm:$0xff]  }
  0x3d   : > { %3655 = vmatprep.subr.bf16.mxu1 %v4244_v30  ;;  %3625 = vmatprep.mubr.bf16.mxu0 %v4556_v32 }
  0x3e   : > { %3641 = vmatprep.mubr.bf16.mxu1 %v4559_v33 }
  0x3f   : > { %3704 = vmatpush3.bf16.msra.mxu0 %v4245_v31  ;;  %v4737_v31 = vld [vmem:[%s4528_s29 + $0x60] sm:$0xff]  }
  0x40   : > { %3656 = vmatpush3.bf16.msra.mxu1 %v4244_v30  ;;  %3705 = vmatprep.subr.bf16.mxu0 %v4251_v36  ;;  %v4734_v30 = vld [vmem:[%s4522_s28 + $0x60] sm:$0xff]  }
  0x41   : > { %3657 = vmatprep.subr.bf16.mxu1 %v4250_v34 }
  0x42   : > { %3626 = vmatmul.mubr.bf16.gmra.mrb[12].mxu0 %v4567_v35 }
  0x43   : > { %3642 = vmatmul.mubr.bf16.gmra.mrb[12].mxu1 %v4575_v37  ;;  %3706 = vmatpush3.bf16.msra.mxu0 %v4251_v36  ;;  %v4747_v36 = vld [vmem:[%s4528_s29 + $0x68] sm:$0xff]  }
  0x44   : > { %3658 = vmatpush3.bf16.msra.mxu1 %v4250_v34  ;;  %3707 = vmatprep.subr.bf16.mxu0 %v4253_v39  ;;  %v4744_v34 = vld [vmem:[%s4522_s28 + $0x68] sm:$0xff]  }
  0x45   : > { %3659 = vmatprep.subr.bf16.mxu1 %v4252_v38  ;;  %3661 = vmatprep.mubr.bf16.mxu1 %v4584_v40 }
  0x46   : > { %3709 = vmatprep.mubr.bf16.mxu0 %v4587_v41 }
  0x47   : > { %3708 = vmatpush3.bf16.msra.mxu0 %v4253_v39  ;;  %v4753_v39 = vld [vmem:[%s4528_s29 + $0x70] sm:$0xff]  }
  0x48   : > { %3660 = vmatpush3.bf16.msra.mxu1 %v4252_v38  ;;  %3885 = vmatprep.subr.bf16.mxu0 %v4259_v44  ;;  %v4750_v38 = vld [vmem:[%s4522_s28 + $0x70] sm:$0xff]  }
  0x49   : > { %3741 = vmatprep.subr.bf16.mxu1 %v4258_v42 }
  0x4a   : > { %3710 = vmatmul.mubr.bf16.vlgmr.msra.gmra.mrb[16].mxu0 %v4603_v45 }
  0x4b   : > { %3662 = vmatmul.mubr.bf16.vlgmr.msra.gmra.mrb[16].mxu1 %v4595_v43  ;;  %3886 = vmatpush3.bf16.msra.mxu0 %v4259_v44  ;;  %v4763_v44 = vld [vmem:[%s4528_s29 + $0x78] sm:$0xff]  }
  0x4c   : > { %3742 = vmatpush3.bf16.msra.mxu1 %v4258_v42  ;;  %3665 = vmatprep.mubr.bf16.mxu1 %v4606_v46  ;;  %v4760_v42 = vld [vmem:[%s4522_s28 + $0x78] sm:$0xff]  }
  0x4d   : > { %3713 = vmatprep.mubr.bf16.mxu0 %v4609_v47  ;;  %3743 = vmatprep.subr.bf16.mxu1 %v4264_v48 }
  0x4e   : > { %3887 = vmatprep.subr.bf16.mxu0 %v4265_v49 }
  0x4f   : > { %3888 = vmatpush3.bf16.msra.mxu0 %v4265_v49  ;;  %v4305_v49 = vld [vmem:[%s5148_s1 + $0x88] sm:$0xff]  }
  0x50   : > { %3744 = vmatpush3.bf16.msra.mxu1 %v4264_v48  ;;  %3889 = vmatprep.subr.bf16.mxu0 %v4271_v52  ;;  %v4304_v48 = vld [vmem:[%s5148_s1 + $0x48] sm:$0xff]  }
  0x51   : > { %3745 = vmatprep.subr.bf16.mxu1 %v4270_v50 }
  0x52   : > { %3714 = vmatmul.mubr.bf16.gmra.mrb[20].mxu0 %v4631_v53 }
  0x53   : > { %3666 = vmatmul.mubr.bf16.gmra.mrb[20].mxu1 %v4625_v51  ;;  %3717 = vmatprep.mubr.bf16.mxu0 %v4637_v55 }
  0x54   : > { %3669 = vmatprep.mubr.bf16.mxu1 %v4634_v54  ;;  %3746 = vmatpush3.bf16.msra.mxu1 %v4270_v50  ;;  %v4307_v50 = vld [vmem:[%s5148_s1 + $0x90] sm:$0xff]  }
  0x55   : > { %3890 = vmatpush3.bf16.msra.mxu0 %v4271_v52  ;;  %3747 = vmatprep.subr.bf16.mxu1 %v4276_v56  ;;  %v4310_v52 = vld [vmem:[%s5148_s1 + $0x60] sm:$0xff]  }
  0x56   : > { %3891 = vmatprep.subr.bf16.mxu0 %v4277_v57 }
  0x58   : > { %3748 = vmatpush3.bf16.msra.mxu1 %v4276_v56  ;;  %v4311_v56 = vld [vmem:[%s5148_s1 + $0xa0] sm:$0xff]  }
  0x59   : > { %3892 = vmatpush3.bf16.msra.mxu0 %v4277_v57  ;;  %3749 = vmatprep.subr.bf16.mxu1 %v4282_v60  ;;  %v4314_v57 = vld [vmem:[%s5148_s1 + $0x70] sm:$0xff]  }
  0x5a   : > { %3893 = vmatprep.subr.bf16.mxu0 %v4283_v61  ;;  %3718 = vmatmul.mubr.bf16.gmra.mrb[24].mxu0 %v4653_v59 }
  0x5b   : > { %3670 = vmatmul.mubr.bf16.gmra.mrb[24].mxu1 %v4650_v58  ;;  %3721 = vmatprep.mubr.bf16.mxu0 %v4665_v63 }
  0x5c   : > { %3673 = vmatprep.mubr.bf16.mxu1 %v4662_v62  ;;  %3750 = vmatpush3.bf16.msra.mxu1 %v4282_v60  ;;  %v4315_v60 = vld [vmem:[%s5148_s1 + $0xb0] sm:$0xff]  }
  0x5d   : > { %3894 = vmatpush3.bf16.msra.mxu0 %v4283_v61  ;;  %3751 = vmatprep.subr.bf16.mxu1 %v4288_v0  ;;  %v4318_v61 = vld [vmem:[%s5148_s1 + $0x1c0] sm:$0xff]  }
  0x5e   : > { %3895 = vmatprep.subr.bf16.mxu0 %v4289_v1 }
  0x60   : > { %3752 = vmatpush3.bf16.msra.mxu1 %v4288_v0  ;;  %v4319_v0 = vld [vmem:[%s5148_s1 + $0x200] sm:$0xff]  }
  0x61   : > { %3896 = vmatpush3.bf16.msra.mxu0 %v4289_v1  ;;  %3753 = vmatprep.subr.bf16.mxu1 %v4294_v6 }
  0x62   : > { %3897 = vmatprep.subr.bf16.mxu0 %v4295_v7  ;;  %3722 = vmatmul.mubr.bf16.gmra.mrb[28].mxu0 %v4681_v3 }
  0x63   : > { %3674 = vmatmul.mubr.bf16.gmra.mrb[28].mxu1 %v4678_v2  ;;  %3725 = vmatprep.mubr.bf16.mxu0 %v4693_v9 }
  0x64   : > { %3677 = vmatprep.mubr.bf16.mxu1 %v4690_v8  ;;  %3754 = vmatpush3.bf16.msra.mxu1 %v4294_v6 }
  0x65   : > { %3898 = vmatpush3.bf16.msra.mxu0 %v4295_v7  ;;  %3755 = vmatprep.subr.bf16.mxu1 %v4300_v10 }
  0x66   : > { %3899 = vmatprep.subr.bf16.mxu0 %v4301_v12 }
  0x68   : > { %3756 = vmatpush3.bf16.msra.mxu1 %v4300_v10 }
  0x69   : > { %3900 = vmatpush3.bf16.msra.mxu0 %v4301_v12  ;;  %3789 = vmatprep.subr.bf16.mxu1 %v4302_v18 }
  0x6a   : > { %3933 = vmatprep.subr.bf16.mxu0 %v4303_v20  ;;  %3726 = vmatmul.mubr.bf16.gmra.mrb[32].mxu0 %v4709_v15 }
  0x6b   : > { %3678 = vmatmul.mubr.bf16.gmra.mrb[32].mxu1 %v4706_v14  ;;  %3729 = vmatprep.mubr.bf16.mxu0 %v4721_v23 }
  0x6c   : > { %3681 = vmatprep.mubr.bf16.mxu1 %v4718_v22 }
  0x72   : > { %3730 = vmatmul.mubr.bf16.gmra.mrb[36].mxu0 %v4731_v28 }
  0x73   : > { %3682 = vmatmul.mubr.bf16.gmra.mrb[36].mxu1 %v4728_v26  ;;  %3733 = vmatprep.mubr.bf16.mxu0 %v4737_v31 }
  0x74   : > { %3685 = vmatprep.mubr.bf16.mxu1 %v4734_v30 }
  0x7a   : > { %3734 = vmatmul.mubr.bf16.gmra.mrb[40].mxu0 %v4747_v36 }
  0x7b   : > { %3686 = vmatmul.mubr.bf16.gmra.mrb[40].mxu1 %v4744_v34  ;;  %3737 = vmatprep.mubr.bf16.mxu0 %v4753_v39 }
  0x7c   : > { %3689 = vmatprep.mubr.bf16.mxu1 %v4750_v38 }
  0x82   : > { %3738 = vmatmul.mubr.bf16.gmra.mrb[44].mxu0 %v4763_v44 }
  0x83   : > { %3690 = vmatmul.mubr.bf16.gmra.mrb[44].mxu1 %v4760_v42  ;;  %3901 = vmatprep.mubr.bf16.mxu0 %v4454_v4 }
  0x84   : > { %3757 = vmatprep.mubr.bf16.mxu1 %v4454_v4  ;;  %v4306_v4 = vld [vmem:[%s5148_s1 + $0x50] sm:$0xff]  }
  0x8a   : > { %3902 = vmatmul.mubr.bf16.vlgmr.msra.gmra.mrb[48].mxu0 %v4477_v11 }
  0x8b   : > { %3758 = vmatmul.mubr.bf16.vlgmr.msra.gmra.mrb[48].mxu1 %v4477_v11  ;;  %3934 = vmatpush3.bf16.msra.mxu0 %v4303_v20  ;;  %v4308_v11 = vld [vmem:[%s5148_s1 + $0x58] sm:$0xff]  }
  0x8c   : > { %3790 = vmatpush3.bf16.msra.mxu1 %v4302_v18  ;;  %3761 = vmatprep.mubr.bf16.mxu1 %v4493_v16 }
  0x8d   : > { %3905 = vmatprep.mubr.bf16.mxu0 %v4493_v16  ;;  %3791 = vmatprep.subr.bf16.mxu1 %v4304_v48  ;;  %v4309_v16 = vld [vmem:[%s5148_s1 + $0x98] sm:$0xff]  }
  0x8e   : > { %3935 = vmatprep.subr.bf16.mxu0 %v4305_v49 }
  0x8f   : > { %3936 = vmatpush3.bf16.msra.mxu0 %v4305_v49 }
  0x90   : > { %3792 = vmatpush3.bf16.msra.mxu1 %v4304_v48  ;;  %3937 = vmatprep.subr.bf16.mxu0 %v4307_v50 }
  0x91   : > { %3793 = vmatprep.subr.bf16.mxu1 %v4306_v4 }
  0x92   : > { %3906 = vmatmul.mubr.bf16.gmra.mrb[52].mxu0 %v4505_v19 }
  0x93   : > { %3762 = vmatmul.mubr.bf16.gmra.mrb[52].mxu1 %v4505_v19  ;;  %3909 = vmatprep.mubr.bf16.mxu0 %v4525_v24  ;;  %v4312_v19 = vld [vmem:[%s5148_s1 + $0x68] sm:$0xff]  }
  0x94   : > { %3765 = vmatprep.mubr.bf16.mxu1 %v4525_v24  ;;  %3794 = vmatpush3.bf16.msra.mxu1 %v4306_v4  ;;  %v4313_v24 = vld [vmem:[%s5148_s1 + $0xa8] sm:$0xff]  }
  0x95   : > { %3938 = vmatpush3.bf16.msra.mxu0 %v4307_v50  ;;  %3795 = vmatprep.subr.bf16.mxu1 %v4308_v11 }
  0x96   : > { %3939 = vmatprep.subr.bf16.mxu0 %v4309_v16 }
  0x98   : > { %3796 = vmatpush3.bf16.msra.mxu1 %v4308_v11 }
  0x99   : > { %3940 = vmatpush3.bf16.msra.mxu0 %v4309_v16  ;;  %3797 = vmatprep.subr.bf16.mxu1 %v4310_v52 }
  0x9a   : > { %3941 = vmatprep.subr.bf16.mxu0 %v4311_v56  ;;  %3910 = vmatmul.mubr.bf16.gmra.mrb[56].mxu0 %v4539_v27 }
  0x9b   : > { %3766 = vmatmul.mubr.bf16.gmra.mrb[56].mxu1 %v4539_v27  ;;  %3913 = vmatprep.mubr.bf16.mxu0 %v4556_v32  ;;  %v4316_v27 = vld [vmem:[%s5148_s1 + $0x78] sm:$0xff]  }
  0x9c   : > { %3769 = vmatprep.mubr.bf16.mxu1 %v4556_v32  ;;  %3798 = vmatpush3.bf16.msra.mxu1 %v4310_v52  ;;  %v4317_v32 = vld [vmem:[%s5148_s1 + $0xb8] sm:$0xff]  }
  0x9d   : > { %3942 = vmatpush3.bf16.msra.mxu0 %v4311_v56  ;;  %3799 = vmatprep.subr.bf16.mxu1 %v4312_v19 }
  0x9e   : > { %3943 = vmatprep.subr.bf16.mxu0 %v4313_v24 }
  0xa0   : > { %3800 = vmatpush3.bf16.msra.mxu1 %v4312_v19 }
  0xa1   : > { %3944 = vmatpush3.bf16.msra.mxu0 %v4313_v24  ;;  %3801 = vmatprep.subr.bf16.mxu1 %v4314_v57 }
  0xa2   : > { %3945 = vmatprep.subr.bf16.mxu0 %v4315_v60  ;;  %3914 = vmatmul.mubr.bf16.gmra.mrb[60].mxu0 %v4567_v35 }
  0xa3   : > { %3770 = vmatmul.mubr.bf16.gmra.mrb[60].mxu1 %v4567_v35  ;;  %3917 = vmatprep.mubr.bf16.mxu0 %v4457_v5  ;;  %v4327_v35 = vld [vmem:[%s5148_s1 + $0x220] sm:$0xff]  }
  0xa4   : > { %3773 = vmatprep.mubr.bf16.mxu1 %v4457_v5  ;;  %3802 = vmatpush3.bf16.msra.mxu1 %v4314_v57  ;;  %v4320_v5 = vld [vmem:[%s5148_s1 + $0x1c8] sm:$0xff]  }
  0xa5   : > { %3946 = vmatpush3.bf16.msra.mxu0 %v4315_v60  ;;  %3803 = vmatprep.subr.bf16.mxu1 %v4316_v27 }
  0xa6   : > { %3947 = vmatprep.subr.bf16.mxu0 %v4317_v32 }
  0xa8   : > { %3804 = vmatpush3.bf16.msra.mxu1 %v4316_v27 }
  0xa9   : > { %3948 = vmatpush3.bf16.msra.mxu0 %v4317_v32  ;;  %3837 = vmatprep.subr.bf16.mxu1 %v4318_v61 }
  0xaa   : > { %3981 = vmatprep.subr.bf16.mxu0 %v4319_v0  ;;  %3918 = vmatmul.mubr.bf16.gmra.mrb[64].mxu0 %v4483_v13 }
  0xab   : > { %3774 = vmatmul.mubr.bf16.gmra.mrb[64].mxu1 %v4483_v13  ;;  %3921 = vmatprep.mubr.bf16.mxu0 %v4496_v17  ;;  %v4321_v13 = vld [vmem:[%s5148_s1 + $0x208] sm:$0xff]  }
  0xac   : > { %3777 = vmatprep.mubr.bf16.mxu1 %v4496_v17  ;;  %v4322_v17 = vld [vmem:[%s5148_s1 + $0x1d0] sm:$0xff]  }
  0xb2   : > { %3922 = vmatmul.mubr.bf16.gmra.mrb[68].mxu0 %v4513_v21 }
  0xb3   : > { %3778 = vmatmul.mubr.bf16.gmra.mrb[68].mxu1 %v4513_v21  ;;  %3925 = vmatprep.mubr.bf16.mxu0 %v4531_v25  ;;  %v4323_v21 = vld [vmem:[%s5148_s1 + $0x210] sm:$0xff]  }
  0xb4   : > { %3781 = vmatprep.mubr.bf16.mxu1 %v4531_v25  ;;  %v4324_v25 = vld [vmem:[%s5148_s1 + $0x1d8] sm:$0xff]  }
  0xba   : > { %3926 = vmatmul.mubr.bf16.gmra.mrb[72].mxu0 %v4547_v29 }
  0xbb   : > { %3782 = vmatmul.mubr.bf16.gmra.mrb[72].mxu1 %v4547_v29  ;;  %3929 = vmatprep.mubr.bf16.mxu0 %v4559_v33  ;;  %v4325_v29 = vld [vmem:[%s5148_s1 + $0x218] sm:$0xff]  }
  0xbc   : > { %3785 = vmatprep.mubr.bf16.mxu1 %v4559_v33  ;;  %v4326_v33 = vld [vmem:[%s5148_s1 + $0x1e0] sm:$0xff]  }
  0xc2   : > { %3930 = vmatmul.mubr.bf16.gmra.mrb[76].mxu0 %v4575_v37 }
  0xc3   : > { %3786 = vmatmul.mubr.bf16.gmra.mrb[76].mxu1 %v4575_v37  ;;  %3949 = vmatprep.mubr.bf16.mxu0 %v4584_v40  ;;  %v4328_v37 = vld [vmem:[%s5148_s1 + $0x1e8] sm:$0xff]  }
  0xc4   : > { %3805 = vmatprep.mubr.bf16.mxu1 %v4584_v40  ;;  %v4329_v40 = vld [vmem:[%s5148_s1 + $0x228] sm:$0xff]  }
  0xca   : > { %3950 = vmatmul.mubr.bf16.vlgmr.msra.gmra.mrb[48].mxu0 %v4595_v43 }
  0xcb   : > { %3806 = vmatmul.mubr.bf16.vlgmr.msra.gmra.mrb[48].mxu1 %v4595_v43  ;;  %3982 = vmatpush3.bf16.msra.mxu0 %v4319_v0  ;;  %v4330_v43 = vld [vmem:[%s5148_s1 + $0x1f0] sm:$0xff]  }
  0xcc   : > { %3838 = vmatpush3.bf16.msra.mxu1 %v4318_v61  ;;  %3809 = vmatprep.mubr.bf16.mxu1 %v4606_v46 }
  0xcd   : > { %3953 = vmatprep.mubr.bf16.mxu0 %v4606_v46  ;;  %3839 = vmatprep.subr.bf16.mxu1 %v4320_v5  ;;  %v4331_v46 = vld [vmem:[%s5148_s1 + $0x230] sm:$0xff]  }
  0xce   : > { %3983 = vmatprep.subr.bf16.mxu0 %v4321_v13 }
  0xcf   : > { %3984 = vmatpush3.bf16.msra.mxu0 %v4321_v13 }
  0xd0   : > { %3840 = vmatpush3.bf16.msra.mxu1 %v4320_v5  ;;  %3985 = vmatprep.subr.bf16.mxu0 %v4323_v21 }
  0xd1   : > { %3841 = vmatprep.subr.bf16.mxu1 %v4322_v17 }
  0xd2   : > { %3954 = vmatmul.mubr.bf16.gmra.mrb[52].mxu0 %v4625_v51 }
  0xd3   : > { %3810 = vmatmul.mubr.bf16.gmra.mrb[52].mxu1 %v4625_v51  ;;  %3957 = vmatprep.mubr.bf16.mxu0 %v4634_v54  ;;  %v4332_v51 = vld [vmem:[%s5148_s1 + $0x1f8] sm:$0xff]  }
  0xd4   : > { %3813 = vmatprep.mubr.bf16.mxu1 %v4634_v54  ;;  %3842 = vmatpush3.bf16.msra.mxu1 %v4322_v17  ;;  %v4333_v54 = vld [vmem:[%s5148_s1 + $0x238] sm:$0xff]  }
  0xd5   : > { %3986 = vmatpush3.bf16.msra.mxu0 %v4323_v21  ;;  %3843 = vmatprep.subr.bf16.mxu1 %v4324_v25 }
  0xd6   : > { %3987 = vmatprep.subr.bf16.mxu0 %v4325_v29 }
  0xd8   : > { %3844 = vmatpush3.bf16.msra.mxu1 %v4324_v25 }
  0xd9   : > { %3988 = vmatpush3.bf16.msra.mxu0 %v4325_v29  ;;  %3845 = vmatprep.subr.bf16.mxu1 %v4326_v33 }
  0xda   : > { %3989 = vmatprep.subr.bf16.mxu0 %v4327_v35  ;;  %3958 = vmatmul.mubr.bf16.gmra.mrb[56].mxu0 %v4650_v58 }
  0xdb   : > { %3814 = vmatmul.mubr.bf16.gmra.mrb[56].mxu1 %v4650_v58  ;;  %3961 = vmatprep.mubr.bf16.mxu0 %v4662_v62 }
  0xdc   : > { %3817 = vmatprep.mubr.bf16.mxu1 %v4662_v62  ;;  %3846 = vmatpush3.bf16.msra.mxu1 %v4326_v33 }
  0xdd   : > { %3990 = vmatpush3.bf16.msra.mxu0 %v4327_v35  ;;  %3847 = vmatprep.subr.bf16.mxu1 %v4328_v37 }
  0xde   : > { %3991 = vmatprep.subr.bf16.mxu0 %v4329_v40 }
  0xe0   : > { %3848 = vmatpush3.bf16.msra.mxu1 %v4328_v37 }
  0xe1   : > { %3992 = vmatpush3.bf16.msra.mxu0 %v4329_v40  ;;  %3849 = vmatprep.subr.bf16.mxu1 %v4330_v43 }
  0xe2   : > { %3993 = vmatprep.subr.bf16.mxu0 %v4331_v46  ;;  %3962 = vmatmul.mubr.bf16.gmra.mrb[60].mxu0 %v4678_v2 }
  0xe3   : > { %3818 = vmatmul.mubr.bf16.gmra.mrb[60].mxu1 %v4678_v2  ;;  %3965 = vmatprep.mubr.bf16.mxu0 %v4690_v8 }
  0xe4   : > { %3821 = vmatprep.mubr.bf16.mxu1 %v4690_v8  ;;  %3850 = vmatpush3.bf16.msra.mxu1 %v4330_v43 }
  0xe5   : > { %3994 = vmatpush3.bf16.msra.mxu0 %v4331_v46  ;;  %3851 = vmatprep.subr.bf16.mxu1 %v4332_v51 }
  0xe6   : > { %3995 = vmatprep.subr.bf16.mxu0 %v4333_v54 }
  0xe8   : > { %3852 = vmatpush3.bf16.msra.mxu1 %v4332_v51 }
  0xe9   : > { %3996 = vmatpush3.bf16.msra.mxu0 %v4333_v54 }
  0xea   : > { %3966 = vmatmul.mubr.bf16.gmra.mrb[64].mxu0 %v4706_v14 }
  0xeb   : > { %3822 = vmatmul.mubr.bf16.gmra.mrb[64].mxu1 %v4706_v14  ;;  %3969 = vmatprep.mubr.bf16.mxu0 %v4718_v22 }
  0xec   : > { %3825 = vmatprep.mubr.bf16.mxu1 %v4718_v22 }
  0xf2   : > { %3970 = vmatmul.mubr.bf16.gmra.mrb[68].mxu0 %v4728_v26 }
  0xf3   : > { %3826 = vmatmul.mubr.bf16.gmra.mrb[68].mxu1 %v4728_v26  ;;  %3973 = vmatprep.mubr.bf16.mxu0 %v4734_v30 }
  0xf4   : > { %3829 = vmatprep.mubr.bf16.mxu1 %v4734_v30 }
  0xfa   : > { %3974 = vmatmul.mubr.bf16.gmra.mrb[72].mxu0 %v4744_v34 }
  0xfb   : > { %3830 = vmatmul.mubr.bf16.gmra.mrb[72].mxu1 %v4744_v34  ;;  %3977 = vmatprep.mubr.bf16.mxu0 %v4750_v38 }
  0xfc   : > { %3833 = vmatprep.mubr.bf16.mxu1 %v4750_v38 }
  0xfd   : > { %v3615_v58 = vpop.f32.mrb[0].mxu0 }
  0xfe   : > { %v3631_v62 = vpop.f32.mrb[0].mxu1  ;;  %v528_v1 = vpop.f32.mrb[1].mxu0 }
  0xff   : > { %v4919_v2 = vpop.f32.mrb[1].mxu1  ;;  %v3616_v6 = vpop.f32.mrb[2].mxu0 }
 0x100   : > { %v3632_v7 = vpop.f32.mrb[2].mxu1  ;;  %v531_v8 = vpop.f32.mrb[3].mxu0 }
 0x101   : > { %v4921_v10 = vpop.f32.mrb[3].mxu1 }
 0x102   : > { %3978 = vmatmul.mubr.bf16.gmra.mrb[76].mxu0 %v4760_v42 }
 0x103   : > { %3834 = vmatmul.mubr.bf16.gmra.mrb[76].mxu1 %v4760_v42  ;;  %3997 = vmatprep.mubr.bf16.mxu0 %v4587_v41 }
 0x104   : > { %3853 = vmatprep.mubr.bf16.mxu1 %v4587_v41 }
 0x105   : > { %v3619_v12 = vpop.f32.mrb[4].mxu0 }
 0x106   : > { %v3635_v14 = vpop.f32.mrb[4].mxu1  ;;  %v542_v18 = vpop.f32.mrb[5].mxu0 }
 0x107   : > { %v4927_v20 = vpop.f32.mrb[5].mxu1  ;;  %v3620_v22 = vpop.f32.mrb[6].mxu0 }
 0x108   : > { %v3636_v26 = vpop.f32.mrb[6].mxu1  ;;  %v545_v30 = vpop.f32.mrb[7].mxu0 }
 0x109   : > { %v4929_v34 = vpop.f32.mrb[7].mxu1 }
 0x10a   : > { %3998 = vmatmul.mubr.bf16.vlgmr.msra.gmra.mrb[48].mxu0 %v4603_v45 }
 0x10b   : > { %3854 = vmatmul.mubr.bf16.vlgmr.msra.gmra.mrb[48].mxu1 %v4603_v45  ;;  %4001 = vmatprep.mubr.bf16.mxu0 %v4609_v47 }
 0x10c   : > { %3857 = vmatprep.mubr.bf16.mxu1 %v4609_v47 }
 0x10d   : > { %v3623_v38 = vpop.f32.mrb[8].mxu0 }
 0x10e   : > { %v3639_v41 = vpop.f32.mrb[8].mxu1  ;;  %v556_v42 = vpop.f32.mrb[9].mxu0 }
 0x10f   : > { %v4935_v48 = vpop.f32.mrb[9].mxu1  ;;  %v3624_v49 = vpop.f32.mrb[10].mxu0 }
 0x110   : > { %v3640_v4 = vpop.f32.mrb[10].mxu1  ;;  %v559_v50 = vpop.f32.mrb[11].mxu0 }
 0x111   : > { %v4937_v11 = vpop.f32.mrb[11].mxu1 }
 0x112   : > { %4002 = vmatmul.mubr.bf16.gmra.mrb[52].mxu0 %v4631_v53 }
 0x113   : > { %3858 = vmatmul.mubr.bf16.gmra.mrb[52].mxu1 %v4631_v53  ;;  %4005 = vmatprep.mubr.bf16.mxu0 %v4637_v55 }
 0x114   : > { %3861 = vmatprep.mubr.bf16.mxu1 %v4637_v55 }
 0x115   : > { %v3627_v45 = vpop.f32.mrb[12].mxu0 }
 0x116   : > { %v3643_v47 = vpop.f32.mrb[12].mxu1  ;;  %v570_v16 = vpop.f32.mrb[13].mxu0 }
 0x117   : > { %v4943_v52 = vpop.f32.mrb[13].mxu1  ;;  %v3628_v56 = vpop.f32.mrb[14].mxu0 }
 0x118   : > { %v3644_v19 = vpop.f32.mrb[14].mxu1  ;;  %v4945_v24 = vpop.f32.mrb[15].mxu0 }
 0x119   : > { %v4947_v57 = vpop.f32.mrb[15].mxu1 }
 0x11a   : > { %4006 = vmatmul.mubr.bf16.gmra.mrb[56].mxu0 %v4653_v59 }
 0x11b   : > { %3862 = vmatmul.mubr.bf16.gmra.mrb[56].mxu1 %v4653_v59  ;;  %4009 = vmatprep.mubr.bf16.mxu0 %v4665_v63 }
 0x11c   : > { %3865 = vmatprep.mubr.bf16.mxu1 %v4665_v63 }
 0x11d   : > { %v3711_v55 = vpop.f32.mrb[16].mxu0 }
 0x11e   : > { %v3663_v53 = vpop.f32.mrb[16].mxu1  ;;  %v1160_v27 = vpop.f32.mrb[17].mxu0 }
 0x11f   : > { %v817_v60 = vpop.f32.mrb[17].mxu1  ;;  %v3712_v0 = vpop.f32.mrb[18].mxu0 }
 0x120   : > { %v818_v32 = vadd.f32 %v817_v60, %v528_v1  ;;  %v3664_v61 = vpop.f32.mrb[18].mxu1  ;;  %v1163_v13 = vpop.f32.mrb[19].mxu0 }
 0x121   : > { %v820_v5 = vpop.f32.mrb[19].mxu1 }
 0x122   : > { %v4953_v17 = vadd.f32 %v1160_v27, %v818_v32  ;;  %v821_v21 = vadd.f32 %v820_v5, %v531_v8  ;;  %4010 = vmatmul.mubr.bf16.gmra.mrb[60].mxu0 %v4681_v3 }
 0x123   : > { %3866 = vmatmul.mubr.bf16.gmra.mrb[60].mxu1 %v4681_v3  ;;  %4013 = vmatprep.mubr.bf16.mxu0 %v4693_v9 }
 0x124   : > { %v4957_v59 = vadd.f32 %v1163_v13, %v821_v21  ;;  %3869 = vmatprep.mubr.bf16.mxu1 %v4693_v9 }
 0x125   : > { %v3715_v25 = vpop.f32.mrb[20].mxu0 }
 0x126   : > { %v3667_v63 = vpop.f32.mrb[20].mxu1  ;;  %v1174_v33 = vpop.f32.mrb[21].mxu0 }
 0x127   : > { %v831_v29 = vpop.f32.mrb[21].mxu1  ;;  %v3716_v40 = vpop.f32.mrb[22].mxu0 }
 0x128   : > { %v832_v35 = vadd.f32 %v831_v29, %v542_v18  ;;  %v3668_v37 = vpop.f32.mrb[22].mxu1  ;;  %v1177_v46 = vpop.f32.mrb[23].mxu0 }
 0x129   : > { %v834_v43 = vpop.f32.mrb[23].mxu1 }
 0x12a   : > { %v4961_v51 = vadd.f32 %v1174_v33, %v832_v35  ;;  %v835_v54 = vadd.f32 %v834_v43, %v545_v30  ;;  %4014 = vmatmul.mubr.bf16.gmra.mrb[64].mxu0 %v4709_v15 }
 0x12b   : > { %3870 = vmatmul.mubr.bf16.gmra.mrb[64].mxu1 %v4709_v15  ;;  %4017 = vmatprep.mubr.bf16.mxu0 %v4721_v23 }
 0x12c   : > { %v4965_v3 = vadd.f32 %v1177_v46, %v835_v54  ;;  %3873 = vmatprep.mubr.bf16.mxu1 %v4721_v23 }
 0x12d   : > { %v3719_v58 = vpop.f32.mrb[24].mxu0 }
 0x12e   : > { %v3671_v9 = vpop.f32.mrb[24].mxu1  ;;  %v1188_v1 = vpop.f32.mrb[25].mxu0 }
 0x12f   : > { %v845_v62 = vpop.f32.mrb[25].mxu1  ;;  %v3720_v8 = vpop.f32.mrb[26].mxu0 }
 0x130   : > { %v846_v6 = vadd.f32 %v845_v62, %v556_v42  ;;  %v3672_v7 = vpop.f32.mrb[26].mxu1  ;;  %v1191_v14 = vpop.f32.mrb[27].mxu0 }
 0x131   : > { %v848_v12 = vpop.f32.mrb[27].mxu1 }
 0x132   : > { %v4969_v18 = vadd.f32 %v1188_v1, %v846_v6  ;;  %v849_v22 = vadd.f32 %v848_v12, %v559_v50  ;;  %4018 = vmatmul.mubr.bf16.gmra.mrb[68].mxu0 %v4731_v28 }
 0x133   : > { %3874 = vmatmul.mubr.bf16.gmra.mrb[68].mxu1 %v4731_v28  ;;  %4021 = vmatprep.mubr.bf16.mxu0 %v4737_v31 }
 0x134   : > { %v4973_v15 = vadd.f32 %v1191_v14, %v849_v22  ;;  %3877 = vmatprep.mubr.bf16.mxu1 %v4737_v31 }
 0x135   : > { %v3723_v26 = vpop.f32.mrb[28].mxu0 }
 0x136   : > { %v3675_v23 = vpop.f32.mrb[28].mxu1  ;;  %v1202_v38 = vpop.f32.mrb[29].mxu0 }
 0x137   : > { %v859_v30 = vpop.f32.mrb[29].mxu1  ;;  %v3724_v49 = vpop.f32.mrb[30].mxu0 }
 0x138   : > { %v860_v41 = vadd.f32 %v859_v30, %v570_v16  ;;  %v3676_v42 = vpop.f32.mrb[30].mxu1  ;;  %v1205_v45 = vpop.f32.mrb[31].mxu0 }
 0x139   : > { %v862_v4 = vpop.f32.mrb[31].mxu1 }
 0x13a   : > { %v4977_v50 = vadd.f32 %v1202_v38, %v860_v41  ;;  %v863_v47 = vadd.f32 %v862_v4, %v4945_v24  ;;  %4022 = vmatmul.mubr.bf16.gmra.mrb[72].mxu0 %v4747_v36 }
 0x13b   : > { %3878 = vmatmul.mubr.bf16.gmra.mrb[72].mxu1 %v4747_v36  ;;  %4025 = vmatprep.mubr.bf16.mxu0 %v4753_v39 }
 0x13c   : > { %v4982_v28 = vadd.f32 %v1205_v45, %v863_v47  ;;  %3881 = vmatprep.mubr.bf16.mxu1 %v4753_v39 }
 0x13d   : > { %v3727_v16 = vpop.f32.mrb[32].mxu0 }
 0x13e   : > { %v3679_v31 = vpop.f32.mrb[32].mxu1  ;;  %v1216_v19 = vpop.f32.mrb[33].mxu0 }
 0x13f   : > { %v873_v56 = vpop.f32.mrb[33].mxu1  ;;  %v3728_v60 = vpop.f32.mrb[34].mxu0 }
 0x140   : > { %v874_v53 = vadd.f32 %v873_v56, %v4919_v2  ;;  %v3680_v55 = vpop.f32.mrb[34].mxu1  ;;  %v1219_v24 = vpop.f32.mrb[35].mxu0 }
 0x141   : > { %v876_v27 = vpop.f32.mrb[35].mxu1 }
 0x142   : > { %v4987_v32 = vadd.f32 %v1216_v19, %v874_v53  ;;  %v877_v36 = vadd.f32 %v876_v27, %v4921_v10  ;;  %4026 = vmatmul.mubr.bf16.gmra.mrb[76].mxu0 %v4763_v44 }
 0x143   : > { %3882 = vmatmul.mubr.bf16.gmra.mrb[76].mxu1 %v4763_v44 }
 0x144   : > { %v4992_v61 = vadd.f32 %v1219_v24, %v877_v36 }
 0x145   : > { %v3731_v0 = vpop.f32.mrb[36].mxu0 }
 0x146   : > { %v3683_v39 = vpop.f32.mrb[36].mxu1  ;;  %v1230_v13 = vpop.f32.mrb[37].mxu0 }
 0x147   : > { %v887_v5 = vpop.f32.mrb[37].mxu1  ;;  %v3732_v63 = vpop.f32.mrb[38].mxu0 }
 0x148   : > { %v888_v2 = vadd.f32 %v887_v5, %v4927_v20  ;;  %v3684_v21 = vpop.f32.mrb[38].mxu1  ;;  %v1233_v29 = vpop.f32.mrb[39].mxu0 }
 0x149   : > { %v890_v25 = vpop.f32.mrb[39].mxu1 }
 0x14a   : > { %v4995_v33 = vadd.f32 %v1230_v13, %v888_v2  ;;  %v891_v10 = vadd.f32 %v890_v25, %v4929_v34  ;;  %v5031_v2 = vld [vmem:[%s5149_s2] ss:$0 sm:$0xff] }
 0x14c   : > { %v4998_v35 = vadd.f32 %v1233_v29, %v891_v10 }
 0x14d   : > { %v3735_v44 = vpop.f32.mrb[40].mxu0 }
 0x14e   : > { %v3687_v37 = vpop.f32.mrb[40].mxu1  ;;  %v1244_v43 = vpop.f32.mrb[41].mxu0 }
 0x14f   : > { %v901_v40 = vpop.f32.mrb[41].mxu1  ;;  %v3736_v9 = vpop.f32.mrb[42].mxu0 }
 0x150   : > { %v902_v46 = vadd.f32 %v901_v40, %v4935_v48  ;;  %v3688_v54 = vpop.f32.mrb[42].mxu1  ;;  %v1247_v20 = vpop.f32.mrb[43].mxu0 }
 0x151   : > { %v904_v58 = vpop.f32.mrb[43].mxu1 }
 0x152   : > { %v5001_v62 = vadd.f32 %v1244_v43, %v902_v46  ;;  %v905_v1 = vadd.f32 %v904_v58, %v4937_v11  ;;  %v1989_v11 = vlaneseq }
 0x154   : > { %v5004_v6 = vadd.f32 %v1247_v20, %v905_v1  ;;  %v5013_v42 = vshrl.u32 %v1989_v11, 7 }
 0x155   : > { %v3739_v7 = vpop.f32.mrb[44].mxu0 }
 0x156   : > { %v3691_v34 = vpop.f32.mrb[44].mxu1  ;;  %v1258_v12 = vpop.f32.mrb[45].mxu0  ;;  %vm1991_vm0 = vcmp.lt.s32.totalorder %v5013_v42, 7  ;;  %vm2726_vm1 = vcmp.lt.s32.totalorder %v5013_v42, 6 }
 0x157   : > { %v915_v8 = vpop.f32.mrb[45].mxu1  ;;  %v3740_v23 = vpop.f32.mrb[46].mxu0 }
 0x158   : > { %v916_v14 = vadd.f32 %v915_v8, %v4943_v52  ;;  %v3692_v22 = vpop.f32.mrb[46].mxu1  ;;  %v1261_v26 = vpop.f32.mrb[47].mxu0 }
 0x159   : > { %v918_v48 = vpop.f32.mrb[47].mxu1 }
 0x15a   : > { %v5007_v30 = vadd.f32 %v1258_v12, %v916_v14  ;;  %v919_v38 = vadd.f32 %v918_v48, %v4947_v57 }
 0x15c   : > { %v5010_v41 = vadd.f32 %v1261_v26, %v919_v38 }
 0x1dd   : > { %v3999_v4 = vpop.f32.mrb[48].mxu0 }
 0x1de   : > { %v3855_v49 = vpop.f32.mrb[48].mxu1  ;;  %v2559_v52 = vpop.f32.mrb[49].mxu0  ;;  %v2704_v56 = vrot.slane %v3999_v4, 2 }
 0x1df   : > { %v1822_v45 = vpop.f32.mrb[49].mxu1  ;;  %v4000_v31 = vpop.f32.mrb[50].mxu0  ;;  %v1967_v16 = vrot.slane %v3855_v49, 1  ;;  %v2702_v55 = vrot.slane %v2559_v52, 2 }
 0x1e0   : > { %v3856_v47 = vpop.f32.mrb[50].mxu1  ;;  %v2562_v57 = vpop.f32.mrb[51].mxu0  ;;  %v1965_v53 = vrot.slane %v1822_v45, 1 }
 0x1e1   : > { %v1825_v19 = vpop.f32.mrb[51].mxu1  ;;  %v2703_v27 = vrot.slane %v2562_v57, 2 }
 0x1e2   : > { %v1966_v60 = vrot.slane %v1825_v19, 1 }
 0x1e3   : > { %v2741_v39 = vsel %vm2726_vm1, %v2703_v27, %v2704_v56  ;;  %v2742_v0 = vsel %vm2726_vm1, %v2702_v55, %v2703_v27 }
 0x1e4   : > { %v2006_v24 = vsel %vm1991_vm0, %v1966_v60, %v1967_v16  ;;  %v2007_v36 = vsel %vm1991_vm0, %v1965_v53, %v1966_v60 }
 0x1e5   : > { %v2008_v5 = vadd.f32 %v2007_v36, %v4953_v17  ;;  %v2009_v13 = vadd.f32 %v2006_v24, %v4957_v59  ;;  %v4003_v63 = vpop.f32.mrb[52].mxu0 }
 0x1e6   : > { %v3859_v21 = vpop.f32.mrb[52].mxu1  ;;  %v2574_v37 = vpop.f32.mrb[53].mxu0  ;;  %v2707_v46 = vrot.slane %v4003_v63, 2 }
 0x1e7   : > { %v2743_v25 = vadd.f32 %v2742_v0, %v2008_v5  ;;  %v2744_v29 = vadd.f32 %v2741_v39, %v2009_v13  ;;  %v1837_v10 = vpop.f32.mrb[53].mxu1  ;;  %v4004_v40 = vpop.f32.mrb[54].mxu0  ;;  %v1970_v59 = vrot.slane %v3859_v21, 1  ;;  %v2705_v20 = vrot.slane %v2574_v37, 2 }
 0x1e8   : > { %v3860_v44 = vpop.f32.mrb[54].mxu1  ;;  %v2577_v9 = vpop.f32.mrb[55].mxu0  ;;  %v1968_v58 = vrot.slane %v1837_v10, 1 }
 0x1e9   : > { %v2766_v43 = vadd.f32 %v5031_v2, %v2743_v25  ;;  %v2767_v17 = vadd.f32 %v5031_v2, %v2744_v29  ;;  %v1840_v54 = vpop.f32.mrb[55].mxu1  ;;  %v2706_v34 = vrot.slane %v2577_v9, 2 }
 0x1ea   : > { %v1969_v1 = vrot.slane %v1840_v54, 1 }
 0x1eb   : > { %v2782_v7 = vmax.f32 %v2766_v43, 0.0  ;;  %v2783_v8 = vmax.f32 %v2767_v17, 0.0  ;;  %v2739_v22 = vsel %vm2726_vm1, %v2706_v34, %v2707_v46  ;;  %v2740_v23 = vsel %vm2726_vm1, %v2705_v20, %v2706_v34 }
 0x1ec   : > { %v2004_v12 = vsel %vm1991_vm0, %v1969_v1, %v1970_v59  ;;  %v2005_v14 = vsel %vm1991_vm0, %v1968_v58, %v1969_v1 }
 0x1ed   : > { %v3337_v48 = vpack.c.bf16 %v2783_v8, %v2782_v7  ;;  %v2010_v26 = vadd.f32 %v2005_v14, %v4961_v51  ;;  %v2011_v38 = vadd.f32 %v2004_v12, %v4965_v3  ;;  %v4007_v49 = vpop.f32.mrb[56].mxu0 }
 0x1ee   : > { %v3863_v11 = vpop.f32.mrb[56].mxu1  ;;  %v2589_v47 = vpop.f32.mrb[57].mxu0  ;;  %v2710_v53 = vrot.slane %v4007_v49, 2 }
 0x1ef   : > { %3338 = vst [vmem:[%s5038_s6] sm:$0xff] %v3337_v48   ;;  %v2745_v4 = vadd.f32 %v2740_v23, %v2010_v26  ;;  %v2746_v45 = vadd.f32 %v2739_v22, %v2011_v38  ;;  %v1852_v52 = vpop.f32.mrb[57].mxu1  ;;  %v4008_v16 = vpop.f32.mrb[58].mxu0  ;;  %v1973_v57 = vrot.slane %v3863_v11, 1  ;;  %v2708_v3 = vrot.slane %v2589_v47, 2 }
 0x1f0   : > { %v3864_v31 = vpop.f32.mrb[58].mxu1  ;;  %v2592_v60 = vpop.f32.mrb[59].mxu0  ;;  %v1971_v51 = vrot.slane %v1852_v52, 1 }
 0x1f1   : > { %v2768_v56 = vadd.f32 %v5031_v2, %v2745_v4  ;;  %v2769_v19 = vadd.f32 %v5031_v2, %v2746_v45  ;;  %v1855_v55 = vpop.f32.mrb[59].mxu1  ;;  %v2709_v24 = vrot.slane %v2592_v60, 2 }
 0x1f2   : > { %v1972_v27 = vrot.slane %v1855_v55, 1 }
 0x1f3   : > { %v2784_v36 = vmax.f32 %v2768_v56, 0.0  ;;  %v2785_v39 = vmax.f32 %v2769_v19, 0.0  ;;  %v2737_v13 = vsel %vm2726_vm1, %v2709_v24, %v2710_v53  ;;  %v2738_v21 = vsel %vm2726_vm1, %v2708_v3, %v2709_v24 }
 0x1f4   : > { %v2002_v0 = vsel %vm1991_vm0, %v1972_v27, %v1973_v57  ;;  %v2003_v5 = vsel %vm1991_vm0, %v1971_v51, %v1972_v27 }
 0x1f5   : > { %v3342_v63 = vpack.c.bf16 %v2785_v39, %v2784_v36  ;;  %v2012_v25 = vadd.f32 %v2003_v5, %v4969_v18  ;;  %v2013_v29 = vadd.f32 %v2002_v0, %v4973_v15  ;;  %v4011_v37 = vpop.f32.mrb[60].mxu0 }
 0x1f6   : > { %v3867_v10 = vpop.f32.mrb[60].mxu1  ;;  %v2604_v17 = vpop.f32.mrb[61].mxu0  ;;  %v2713_v20 = vrot.slane %v4011_v37, 2 }
 0x1f7   : > { %3374 = vst [vmem:[%s5038_s6 + $0x8] sm:$0xff] %v3342_v63   ;;  %v2747_v44 = vadd.f32 %v2738_v21, %v2012_v25  ;;  %v2748_v40 = vadd.f32 %v2737_v13, %v2013_v29  ;;  %v1867_v43 = vpop.f32.mrb[61].mxu1  ;;  %v4012_v46 = vpop.f32.mrb[62].mxu0  ;;  %v1976_v58 = vrot.slane %v3867_v10, 1  ;;  %v2711_v15 = vrot.slane %v2604_v17, 2 }
 0x1f8   : > { %v3868_v59 = vpop.f32.mrb[62].mxu1  ;;  %v2607_v34 = vpop.f32.mrb[63].mxu0  ;;  %v1974_v18 = vrot.slane %v1867_v43, 1 }
 0x1f9   : > { %v2770_v54 = vadd.f32 %v5031_v2, %v2747_v44  ;;  %v2771_v9 = vadd.f32 %v5031_v2, %v2748_v40  ;;  %v1870_v1 = vpop.f32.mrb[63].mxu1  ;;  %v2712_v8 = vrot.slane %v2607_v34, 2 }
 0x1fa   : > { %v1975_v7 = vrot.slane %v1870_v1, 1 }
 0x1fb   : > { %v2786_v12 = vmax.f32 %v2770_v54, 0.0  ;;  %v2787_v14 = vmax.f32 %v2771_v9, 0.0  ;;  %v2735_v48 = vsel %vm2726_vm1, %v2712_v8, %v2713_v20  ;;  %v2736_v26 = vsel %vm2726_vm1, %v2711_v15, %v2712_v8 }
 0x1fc   : > { %v2000_v22 = vsel %vm1991_vm0, %v1975_v7, %v1976_v58  ;;  %v2001_v23 = vsel %vm1991_vm0, %v1974_v18, %v1975_v7 }
 0x1fd   : > { %v3347_v38 = vpack.c.bf16 %v2787_v14, %v2786_v12  ;;  %v2014_v11 = vadd.f32 %v2001_v23, %v4977_v50  ;;  %v2015_v49 = vadd.f32 %v2000_v22, %v4982_v28  ;;  %v4015_v45 = vpop.f32.mrb[64].mxu0 }
 0x1fe   : > { %v3871_v4 = vpop.f32.mrb[64].mxu1  ;;  %v2619_v16 = vpop.f32.mrb[65].mxu0  ;;  %v2716_v60 = vrot.slane %v4015_v45, 2 }
 0x1ff   : > { %3375 = vst [vmem:[%s5038_s6 + $0x10] sm:$0xff] %v3347_v38   ;;  %v2749_v52 = vadd.f32 %v2736_v26, %v2014_v11  ;;  %v2750_v47 = vadd.f32 %v2735_v48, %v2015_v49  ;;  %v1882_v31 = vpop.f32.mrb[65].mxu1  ;;  %v4016_v19 = vpop.f32.mrb[66].mxu0  ;;  %v1979_v55 = vrot.slane %v3871_v4, 1  ;;  %v2714_v28 = vrot.slane %v2619_v16, 2 }
 0x200   : > { %v3872_v56 = vpop.f32.mrb[66].mxu1  ;;  %v2622_v3 = vpop.f32.mrb[67].mxu0  ;;  %v1977_v50 = vrot.slane %v1882_v31, 1 }
 0x201   : > { %v2772_v57 = vadd.f32 %v5031_v2, %v2749_v52  ;;  %v2773_v53 = vadd.f32 %v5031_v2, %v2750_v47  ;;  %v1885_v51 = vpop.f32.mrb[67].mxu1  ;;  %v2715_v24 = vrot.slane %v2622_v3, 2 }
 0x202   : > { %v1978_v27 = vrot.slane %v1885_v51, 1 }
 0x203   : > { %v2788_v36 = vmax.f32 %v2772_v57, 0.0  ;;  %v2789_v39 = vmax.f32 %v2773_v53, 0.0  ;;  %v2733_v13 = vsel %vm2726_vm1, %v2715_v24, %v2716_v60  ;;  %v2734_v21 = vsel %vm2726_vm1, %v2714_v28, %v2715_v24 }
 0x204   : > { %v1998_v0 = vsel %vm1991_vm0, %v1978_v27, %v1979_v55  ;;  %v1999_v5 = vsel %vm1991_vm0, %v1977_v50, %v1978_v27 }
 0x205   : > { %v3352_v63 = vpack.c.bf16 %v2789_v39, %v2788_v36  ;;  %v2016_v25 = vadd.f32 %v1999_v5, %v4987_v32  ;;  %v2017_v29 = vadd.f32 %v1998_v0, %v4992_v61  ;;  %v4019_v37 = vpop.f32.mrb[68].mxu0 }
 0x206   : > { %v3875_v10 = vpop.f32.mrb[68].mxu1  ;;  %v2634_v17 = vpop.f32.mrb[69].mxu0  ;;  %v2719_v20 = vrot.slane %v4019_v37, 2 }
 0x207   : > { %3376 = vst [vmem:[%s5038_s6 + $0x18] sm:$0xff] %v3352_v63   ;;  %v2751_v44 = vadd.f32 %v2734_v21, %v2016_v25  ;;  %v2752_v40 = vadd.f32 %v2733_v13, %v2017_v29  ;;  %v1897_v43 = vpop.f32.mrb[69].mxu1  ;;  %v4020_v46 = vpop.f32.mrb[70].mxu0  ;;  %v1982_v58 = vrot.slane %v3875_v10, 1  ;;  %v2717_v61 = vrot.slane %v2634_v17, 2 }
 0x208   : > { %v3876_v59 = vpop.f32.mrb[70].mxu1  ;;  %v2637_v34 = vpop.f32.mrb[71].mxu0  ;;  %v1980_v32 = vrot.slane %v1897_v43, 1 }
 0x209   : > { %v2774_v54 = vadd.f32 %v5031_v2, %v2751_v44  ;;  %v2775_v9 = vadd.f32 %v5031_v2, %v2752_v40  ;;  %v1900_v1 = vpop.f32.mrb[71].mxu1  ;;  %v2718_v15 = vrot.slane %v2637_v34, 2 }
 0x20a   : > { %v1981_v18 = vrot.slane %v1900_v1, 1 }
 0x20b   : > { %v2790_v7 = vmax.f32 %v2774_v54, 0.0  ;;  %v2791_v8 = vmax.f32 %v2775_v9, 0.0  ;;  %v2731_v22 = vsel %vm2726_vm1, %v2718_v15, %v2719_v20  ;;  %v2732_v23 = vsel %vm2726_vm1, %v2717_v61, %v2718_v15 }
 0x20c   : > { %v1996_v12 = vsel %vm1991_vm0, %v1981_v18, %v1982_v58  ;;  %v1997_v14 = vsel %vm1991_vm0, %v1980_v32, %v1981_v18 }
 0x20d   : > { %v3357_v48 = vpack.c.bf16 %v2791_v8, %v2790_v7  ;;  %v2018_v26 = vadd.f32 %v1997_v14, %v4995_v33  ;;  %v2019_v38 = vadd.f32 %v1996_v12, %v4998_v35  ;;  %v4023_v49 = vpop.f32.mrb[72].mxu0 }
 0x20e   : > { %v3879_v11 = vpop.f32.mrb[72].mxu1  ;;  %v2649_v47 = vpop.f32.mrb[73].mxu0  ;;  %v2722_v53 = vrot.slane %v4023_v49, 2 }
 0x20f   : > { %3377 = vst [vmem:[%s5038_s6 + $0x20] sm:$0xff] %v3357_v48   ;;  %v2753_v4 = vadd.f32 %v2732_v23, %v2018_v26  ;;  %v2754_v45 = vadd.f32 %v2731_v22, %v2019_v38  ;;  %v1912_v52 = vpop.f32.mrb[73].mxu1  ;;  %v4024_v16 = vpop.f32.mrb[74].mxu0  ;;  %v1985_v57 = vrot.slane %v3879_v11, 1  ;;  %v2720_v35 = vrot.slane %v2649_v47, 2 }
 0x210   : > { %v3880_v31 = vpop.f32.mrb[74].mxu1  ;;  %v2652_v60 = vpop.f32.mrb[75].mxu0  ;;  %v1983_v33 = vrot.slane %v1912_v52, 1 }
 0x211   : > { %v2776_v56 = vadd.f32 %v5031_v2, %v2753_v4  ;;  %v2777_v19 = vadd.f32 %v5031_v2, %v2754_v45  ;;  %v1915_v55 = vpop.f32.mrb[75].mxu1  ;;  %v2721_v3 = vrot.slane %v2652_v60, 2 }
 0x212   : > { %v1984_v51 = vrot.slane %v1915_v55, 1 }
 0x213   : > { %v2792_v50 = vmax.f32 %v2776_v56, 0.0  ;;  %v2793_v28 = vmax.f32 %v2777_v19, 0.0  ;;  %v2729_v36 = vsel %vm2726_vm1, %v2721_v3, %v2722_v53  ;;  %v2730_v39 = vsel %vm2726_vm1, %v2720_v35, %v2721_v3 }
 0x214   : > { %v1994_v27 = vsel %vm1991_vm0, %v1984_v51, %v1985_v57  ;;  %v1995_v24 = vsel %vm1991_vm0, %v1983_v33, %v1984_v51 }
 0x215   : > { %v3362_v0 = vpack.c.bf16 %v2793_v28, %v2792_v50  ;;  %v2020_v5 = vadd.f32 %v1995_v24, %v5001_v62  ;;  %v2021_v13 = vadd.f32 %v1994_v27, %v5004_v6  ;;  %v4027_v63 = vpop.f32.mrb[76].mxu0 }
 0x216   : > { %v3883_v21 = vpop.f32.mrb[76].mxu1  ;;  %v2664_v37 = vpop.f32.mrb[77].mxu0  ;;  %v2725_v46 = vrot.slane %v4027_v63, 2 }
 0x217   : > { %3378 = vst [vmem:[%s5038_s6 + $0x28] sm:$0xff] %v3362_v0   ;;  %v2755_v25 = vadd.f32 %v2730_v39, %v2020_v5  ;;  %v2756_v29 = vadd.f32 %v2729_v36, %v2021_v13  ;;  %v1927_v10 = vpop.f32.mrb[77].mxu1  ;;  %v4028_v40 = vpop.f32.mrb[78].mxu0  ;;  %v1988_v59 = vrot.slane %v3883_v21, 1  ;;  %v2723_v6 = vrot.slane %v2664_v37, 2 }
 0x218   : > { %v3884_v44 = vpop.f32.mrb[78].mxu1  ;;  %v2667_v62 = vpop.f32.mrb[79].mxu0  ;;  %v1986_v9 = vrot.slane %v1927_v10, 1 }
 0x219   : > { %v2778_v43 = vadd.f32 %v5031_v2, %v2755_v25  ;;  %v2779_v17 = vadd.f32 %v5031_v2, %v2756_v29  ;;  %v1930_v54 = vpop.f32.mrb[79].mxu1  ;;  %v2724_v20 = vrot.slane %v2667_v62, 2 }
 0x21a   : > { %v1987_v58 = vrot.slane %v1930_v54, 1 }
 0x21b   : > { %v2794_v1 = vmax.f32 %v2778_v43, 0.0  ;;  %v2795_v34 = vmax.f32 %v2779_v17, 0.0  ;;  %v2727_v18 = vsel %vm2726_vm1, %v2724_v20, %v2725_v46  ;;  %v2728_v15 = vsel %vm2726_vm1, %v2723_v6, %v2724_v20 }
 0x21c   : > { %v1992_v32 = vsel %vm1991_vm0, %v1987_v58, %v1988_v59  ;;  %v1993_v61 = vsel %vm1991_vm0, %v1986_v9, %v1987_v58 }
 0x21d   : > { %v3367_v7 = vpack.c.bf16 %v2795_v34, %v2794_v1  ;;  %v2022_v8 = vadd.f32 %v1993_v61, %v5007_v30  ;;  %v2023_v12 = vadd.f32 %v1992_v32, %v5010_v41 }
 0x21f   : > { %3379 = vst [vmem:[%s5038_s6 + $0x30] sm:$0xff] %v3367_v7   ;;  %v2757_v14 = vadd.f32 %v2728_v15, %v2022_v8  ;;  %v2758_v22 = vadd.f32 %v2727_v18, %v2023_v12 }
 0x221   : > { %v2780_v23 = vadd.f32 %v5031_v2, %v2757_v14  ;;  %v2781_v48 = vadd.f32 %v5031_v2, %v2758_v22 }
 0x223   : > { %v2796_v26 = vmax.f32 %v2780_v23, 0.0  ;;  %v2797_v38 = vmax.f32 %v2781_v48, 0.0 }
 0x225   : > { %v3372_v11 = vpack.c.bf16 %v2797_v38, %v2796_v26 }
 0x227   : > { %3380 = vst [vmem:[%s5038_s6 + $0x38] sm:$0xff] %v3372_v11  }
 0x228 PF: > { %s13_s16 = sadd.s32 1, %s4372_s16   ;;  %s5151_s12 = smov %s4364_s14 }
 0x229   : > { %p10_p7 = scmp.ge.s32.totalorder %s13_s16, 6   ;;  %s5152_s13 = smov %s4368_s15 }
 0x22a   : > { %s5153_s14 = smov %s5156_s17  ;;  %s5154_s15 = smov %s5160_s18 }
 0x22b   :  { %12 = sbr.rel (!%p10_p7) target bundleno = 3 (0x3), region = 86 }

</bundles_post_ra>
